<compile_context>
chip_gen: v7x
topology: tpu7x:2x2x1
jax: 0.10.0
libtpu: 0.0.40
codegen_flags: <defaults>
</compile_context>

<pallas_src>
import functools

import numpy as np
import jax
import jax.numpy as jnp
from jax import lax
from jax.experimental import pallas as pl


# ============================================================================
# Pallas kernel: the ENTIRE VQ-VAE forward in one kernel
# ============================================================================
def _fused_forward_kernel(
        # --- inputs --------------------------------------------------------
        x_ref,                                          # (N*H, W*Cin) slab
        e1s, e1m, e1b, e2s, e2m, e2b, e3s, e3m, e3b,    # encoder conv mats
        d1s, d1m, d1b, d2s, d2m, d2b, d3s, d3m, d3b,    # decoder conv mats
        gl_ref, gc_ref, sl_ref, sc_ref,                 # VQ gather/scatter mats
        cb_ref, cbt_ref, cbsq_ref,                      # codebook, cb^T, |cb|^2
        # --- outputs -------------------------------------------------------
        recon_ref, idx_ref, prox_ref, loss_ref, perp_ref,
        *, commitment_cost):

    def conv(x, s_ref, m_ref, b_ref, relu):
        # Y = sum_di (S_di @ X) @ M_di + bias ; padding / stride / nearest
        # upsample are all folded into the host-precomputed S / M matrices.
        acc = None
        for di in range(s_ref.shape[0]):
            rows = jnp.dot(s_ref[di], x, preferred_element_type=jnp.float32)
            term = jnp.dot(rows, m_ref[di], preferred_element_type=jnp.float32)
            acc = term if acc is None else acc + term
        acc = acc + b_ref[...]
        return jnp.maximum(acc, 0.0) if relu else acc

    # ------------------ encoder (activations never leave VMEM) --------------
    x = x_ref[...]
    h = conv(x, e1s, e1m, e1b, relu=True)
    h = conv(h, e2s, e2m, e2b, relu=True)
    z = conv(h, e3s, e3m, e3b, relu=False)              # (N*Hq, Wq*D) slab

    # ------------------ gather slab -> (M, D) token matrix ------------------
    # z_flat row order is (n, h, w), matching PyTorch's (B, H, W) flatten.
    zf = None
    for w in range(gl_ref.shape[0]):
        cols = jnp.dot(z, gc_ref[w], preferred_element_type=jnp.float32)
        part = jnp.dot(gl_ref[w], cols, preferred_element_type=jnp.float32)
        zf = part if zf is None else zf + part          # (M, D)

    # ------------------ vector quantizer ------------------------------------
    cbt = cbt_ref[...]                                  # (D, Kc), pre-transposed
    kc = cbt.shape[1]
    z_sq = jnp.sum(zf * zf, axis=1, keepdims=True)      # (M, 1)
    cross = jnp.dot(zf, cbt, preferred_element_type=jnp.float32)
    dist = z_sq + cbsq_ref[...] - 2.0 * cross           # (M, Kc)

    col = lax.broadcasted_iota(jnp.int32, dist.shape, 1)
    min_d = jnp.min(dist, axis=1, keepdims=True)
    idx = jnp.min(jnp.where(dist <= min_d, col, kc), axis=1, keepdims=True)

    onehot = (col == idx).astype(jnp.float32)           # (M, Kc)
    q = jnp.dot(onehot, cb_ref[...], preferred_element_type=jnp.float32)

    # normalized proximities = softmax(-dist); EUP approx reciprocal
    e = jnp.exp(min_d - dist)
    prox = e * pl.reciprocal(jnp.sum(e, axis=1, keepdims=True), approx=True)

    # vq_loss = q_latent_loss + commitment_cost * e_latent_loss
    # (both equal mse(q, z) in the forward pass)
    mse = jnp.mean((q - zf) ** 2)
    loss = (1.0 + commitment_cost) * mse

    avg_p = jnp.mean(onehot, axis=0, keepdims=True)     # (1, Kc)
    perp = jnp.exp(-jnp.sum(avg_p * jnp.log(avg_p + 1e-10)))

    # ------------------ scatter quantized tokens back to a slab -------------
    qslab = None
    for w in range(sl_ref.shape[0]):
        rows = jnp.dot(sl_ref[w], q, preferred_element_type=jnp.float32)
        part = jnp.dot(rows, sc_ref[w], preferred_element_type=jnp.float32)
        qslab = part if qslab is None else qslab + part  # (N*Hq, Wq*D)

    # ------------------ decoder (x2 upsamples folded into dec2/dec3 mats) ---
    h = conv(qslab, d1s, d1m, d1b, relu=True)
    h = conv(h, d2s, d2m, d2b, relu=True)
    r = conv(h, d3s, d3m, d3b, relu=False)              # (N*H, W*Cin)

    recon_ref[...] = r
    idx_ref[...] = idx.astype(jnp.int32)
    prox_ref[...] = prox
    loss_ref[...] = loss.reshape(1, 1)
    perp_ref[...] = perp.reshape(1, 1)


# ============================================================================
# Host-side weight preprocessing: conv -> (S_di, M_di, bias_row) matrices
# ============================================================================
def _build_conv_mats(w_hwio, b, n_batch, h_in, w_in, stride, pad, upsample=1):
    """Conv (cross-correlation, zero pad) on a nearest-x`upsample`d input,
    expressed as Y_slab = sum_di (S_di @ X_slab) @ M_di + bias_row where
    X_slab is (n_batch*h_in, w_in*cin) and Y_slab is (n_batch*ho, wo*cout)."""
    w_np = np.asarray(w_hwio, dtype=np.float32)
    b_np = np.asarray(b, dtype=np.float32)
    kh, kw, cin, cout = w_np.shape
    hl, wl = upsample * h_in, upsample * w_in
    ho = (hl + 2 * pad - kh) // stride + 1
    wo = (wl + 2 * pad - kw) // stride + 1

    # row-selection matrices (also encode vertical padding / stride / upsample)
    s_mats = np.zeros((kh, n_batch * ho, n_batch * h_in), np.float32)
    for di in range(kh):
        for n in range(n_batch):
            for r in range(ho):
                hlog = stride * r + di - pad
                if 0 <= hlog < hl:
                    s_mats[di, n * ho + r, n * h_in + hlog // upsample] = 1.0

    # block-Toeplitz weight matrices (encode horizontal taps / pad / upsample)
    m_mats = np.zeros((kh, w_in * cin, wo * cout), np.float32)
    for di in range(kh):
        for c in range(wo):
            for dj in range(kw):
                wlog = stride * c + dj - pad
                if 0 <= wlog < wl:
                    wi = wlog // upsample
                    m_mats[di, wi * cin:(wi + 1) * cin,
                           c * cout:(c + 1) * cout] += w_np[di, dj]

    bias_row = np.tile(b_np[None, :], (1, wo))           # (1, wo*cout)
    return (jnp.asarray(s_mats), jnp.asarray(m_mats), jnp.asarray(bias_row),
            ho, wo)


def _build_vq_mats(n_batch, hq, wq, d):
    """Matmul-based gather (slab -> (M, D) tokens) and scatter (back)."""
    m_rows = n_batch * hq * wq
    gl = np.zeros((wq, m_rows, n_batch * hq), np.float32)
    gc = np.zeros((wq, wq * d, d), np.float32)
    for w in range(wq):
        for j in range(n_batch * hq):
            gl[w, j * wq + w, j] = 1.0
        for k in range(d):
            gc[w, w * d + k, k] = 1.0
    sl = np.transpose(gl, (0, 2, 1)).copy()
    sc = np.transpose(gc, (0, 2, 1)).copy()
    return tuple(jnp.asarray(a) for a in (gl, gc, sl, sc))


def prepare_operands(params, *, batch, height, width):
    in_ch = params["enc1_w"].shape[2]

    e1s, e1m, e1b, h1, w1 = _build_conv_mats(
        params["enc1_w"], params["enc1_b"], batch, height, width, stride=2, pad=1)
    e2s, e2m, e2b, h2, w2 = _build_conv_mats(
        params["enc2_w"], params["enc2_b"], batch, h1, w1, stride=2, pad=1)
    e3s, e3m, e3b, hq, wq = _build_conv_mats(
        params["enc3_w"], params["enc3_b"], batch, h2, w2, stride=1, pad=1)
    d1s, d1m, d1b, hd1, wd1 = _build_conv_mats(
        params["dec1_w"], params["dec1_b"], batch, hq, wq, stride=1, pad=1)
    d2s, d2m, d2b, hd2, wd2 = _build_conv_mats(
        params["dec2_w"], params["dec2_b"], batch, hd1, wd1,
        stride=1, pad=1, upsample=2)
    d3s, d3m, d3b, hout, wout = _build_conv_mats(
        params["dec3_w"], params["dec3_b"], batch, hd2, wd2,
        stride=1, pad=1, upsample=2)

    assert (hout, wout) == (height, width)
    assert int(params["dec3_w"].shape[3]) == int(in_ch)

    z_ch = int(params["enc3_w"].shape[3])
    gl, gc, sl, sc = _build_vq_mats(batch, hq, wq, z_ch)

    cb_np = np.asarray(params["codebook"], np.float32)
    cb = jnp.asarray(cb_np)
    cbt = jnp.asarray(cb_np.T.copy())                       # pre-transposed
    cbsq = jnp.asarray((cb_np ** 2).sum(axis=1)[None, :])   # (1, Kc)

    operands = (e1s, e1m, e1b, e2s, e2m, e2b, e3s, e3m, e3b,
                d1s, d1m, d1b, d2s, d2m, d2b, d3s, d3m, d3b,
                gl, gc, sl, sc, cb, cbt, cbsq)
    meta = dict(batch=batch, height=height, width=width, in_ch=int(in_ch),
                hq=hq, wq=wq, codebook_size=int(cb_np.shape[0]))
    return operands, meta


def make_forward_fn(meta, commitment_cost=0.25):
    n, h, w, cin = meta["batch"], meta["height"], meta["width"], meta["in_ch"]
    m_rows = meta["batch"] * meta["hq"] * meta["wq"]
    kc = meta["codebook_size"]

    fused = pl.pallas_call(
        functools.partial(_fused_forward_kernel,
                          commitment_cost=commitment_cost),
        out_shape=(
            jax.ShapeDtypeStruct((n * h, w * cin), jnp.float32),  # recon slab
            jax.ShapeDtypeStruct((m_rows, 1), jnp.int32),         # indices
            jax.ShapeDtypeStruct((m_rows, kc), jnp.float32),      # proximities
            jax.ShapeDtypeStruct((1, 1), jnp.float32),            # vq_loss
            jax.ShapeDtypeStruct((1, 1), jnp.float32),            # perplexity
        ),
    )

    @jax.jit
    def forward(x_nchw, operands):
        x = jnp.transpose(x_nchw, (0, 2, 3, 1)).astype(jnp.float32)
        x_slab = x.reshape(n * h, w * cin)
        recon_slab, idx, prox, loss, perp = fused(x_slab, *operands)
        recon = recon_slab.reshape(n, h, w, cin).transpose(0, 3, 1, 2)
        return recon, loss[0, 0], perp[0, 0], idx, prox

    return forward


# ============================================================================
# Model parameters (deterministic init; standard VQ-VAE assumed)
# ============================================================================
def init_params(key, in_ch=4, hidden=32, z_ch=8, codebook_size=64):
    ks = jax.random.split(key, 8)

    def wgt(k, shape):
        return (0.1 * jax.random.normal(k, shape)).astype(jnp.float32)

    return {
        "enc1_w": wgt(ks[0], (4, 4, in_ch, hidden)),
        "enc1_b": jnp.zeros((hidden,), jnp.float32),
        "enc2_w": wgt(ks[1], (4, 4, hidden, hidden)),
        "enc2_b": jnp.zeros((hidden,), jnp.float32),
        "enc3_w": wgt(ks[2], (3, 3, hidden, z_ch)),
        "enc3_b": jnp.zeros((z_ch,), jnp.float32),
        "dec1_w": wgt(ks[3], (3, 3, z_ch, hidden)),
        "dec1_b": jnp.zeros((hidden,), jnp.float32),
        "dec2_w": wgt(ks[4], (3, 3, hidden, hidden)),
        "dec2_b": jnp.zeros((hidden,), jnp.float32),
        "dec3_w": wgt(ks[5], (3, 3, hidden, in_ch)),
        "dec3_b": jnp.zeros((in_ch,), jnp.float32),
        "codebook": wgt(ks[6], (codebook_size, z_ch)),
    }


# ============================================================================
# Pure-JAX (XLA) reference forward, for a correctness check in __main__
# ============================================================================
def _reference_forward(x_nchw, params, commitment_cost=0.25):
    x = jnp.transpose(x_nchw, (0, 2, 3, 1)).astype(jnp.float32)

    def conv(h, w_hwio, b, stride, pad, relu):
        y = lax.conv_general_dilated(
            h, w_hwio, window_strides=(stride, stride),
            padding=[(pad, pad), (pad, pad)],
            dimension_numbers=("NHWC", "HWIO", "NHWC"))
        y = y + b
        return jnp.maximum(y, 0.0) if relu else y

    def up2(h):
        return jnp.repeat(jnp.repeat(h, 2, axis=1), 2, axis=2)

    h = conv(x, params["enc1_w"], params["enc1_b"], 2, 1, True)
    h = conv(h, params["enc2_w"], params["enc2_b"], 2, 1, True)
    z = conv(h, params["enc3_w"], params["enc3_b"], 1, 1, False)

    b_, hq, wq, d = z.shape
    zf = z.reshape(b_ * hq * wq, d)
    cb = params["codebook"]
    dist = (jnp.sum(zf ** 2, 1, keepdims=True) + jnp.sum(cb ** 2, 1)[None, :]
            - 2.0 * zf @ cb.T)
    idx = jnp.argmin(dist, axis=1)
    q = cb[idx]
    prox = jax.nn.softmax(-dist, axis=1)
    mse = jnp.mean((q - zf) ** 2)
    loss = (1.0 + commitment_cost) * mse
    onehot = jax.nn.one_hot(idx, cb.shape[0])
    avg_p = jnp.mean(onehot, axis=0)
    perp = jnp.exp(-jnp.sum(avg_p * jnp.log(avg_p + 1e-10)))

    qz = q.reshape(b_, hq, wq, d)
    h = conv(qz, params["dec1_w"], params["dec1_b"], 1, 1, True)
    h = conv(up2(h), params["dec2_w"], params["dec2_b"], 1, 1, True)
    r = conv(up2(h), params["dec3_w"], params["dec3_b"], 1, 1, False)
    return jnp.transpose(r, (0, 3, 1, 2)), loss, perp, idx, prox


# ============================================================================
if __name__ == "__main__":
    key = jax.random.PRNGKey(0)
    k_param, k_x = jax.random.split(key)

    params = init_params(k_param, in_ch=4, hidden=32, z_ch=8, codebook_size=64)
    x = jax.random.normal(k_x, (2, 4, 16, 16), dtype=jnp.float32)   # NCHW

    operands, meta = prepare_operands(params, batch=2, height=16, width=16)
    forward = make_forward_fn(meta, commitment_cost=0.25)

    recon_x, vq_loss, perplexity, encoding_indices, normalized_proximities = \
        forward(x, operands)
    jax.block_until_ready(
        (recon_x, vq_loss, perplexity, encoding_indices,
         normalized_proximities))

    assert recon_x.shape == x.shape
    assert encoding_indices.shape == (2 * 4 * 4, 1)
    assert normalized_proximities.shape == (2 * 4 * 4, 64)

    # correctness check against a pure-JAX (XLA) reference forward
    r_ref, l_ref, p_ref, _, prox_ref = _reference_forward(x, params)
    np.testing.assert_allclose(np.asarray(recon_x), np.asarray(r_ref),
                               rtol=1e-3, atol=1e-3)
    np.testing.assert_allclose(float(vq_loss), float(l_ref), rtol=1e-3)
    np.testing.assert_allclose(float(perplexity), float(p_ref), rtol=1e-3)
    np.testing.assert_allclose(np.asarray(normalized_proximities),
                               np.asarray(prox_ref), rtol=2e-2, atol=5e-3)

    print("KERNEL_OK")
</pallas_src>

<mosaic_0001>
module attributes {stable_mosaic.version = 11 : i64} {
  func.func @_fused_forward_kernel(%arg0: memref<32x64xf32, #tpu.memory_space<vmem>>, %arg1: memref<4x16x32xf32, #tpu.memory_space<vmem>>, %arg2: memref<4x64x256xf32, #tpu.memory_space<vmem>>, %arg3: memref<1x256xf32, #tpu.memory_space<vmem>>, %arg4: memref<4x8x16xf32, #tpu.memory_space<vmem>>, %arg5: memref<4x256x128xf32, #tpu.memory_space<vmem>>, %arg6: memref<1x128xf32, #tpu.memory_space<vmem>>, %arg7: memref<3x8x8xf32, #tpu.memory_space<vmem>>, %arg8: memref<3x128x32xf32, #tpu.memory_space<vmem>>, %arg9: memref<1x32xf32, #tpu.memory_space<vmem>>, %arg10: memref<3x8x8xf32, #tpu.memory_space<vmem>>, %arg11: memref<3x32x128xf32, #tpu.memory_space<vmem>>, %arg12: memref<1x128xf32, #tpu.memory_space<vmem>>, %arg13: memref<3x16x8xf32, #tpu.memory_space<vmem>>, %arg14: memref<3x128x256xf32, #tpu.memory_space<vmem>>, %arg15: memref<1x256xf32, #tpu.memory_space<vmem>>, %arg16: memref<3x32x16xf32, #tpu.memory_space<vmem>>, %arg17: memref<3x256x64xf32, #tpu.memory_space<vmem>>, %arg18: memref<1x64xf32, #tpu.memory_space<vmem>>, %arg19: memref<4x32x8xf32, #tpu.memory_space<vmem>>, %arg20: memref<4x32x8xf32, #tpu.memory_space<vmem>>, %arg21: memref<4x8x32xf32, #tpu.memory_space<vmem>>, %arg22: memref<4x8x32xf32, #tpu.memory_space<vmem>>, %arg23: memref<64x8xf32, #tpu.memory_space<vmem>>, %arg24: memref<8x64xf32, #tpu.memory_space<vmem>>, %arg25: memref<1x64xf32, #tpu.memory_space<vmem>>, %arg26: memref<32x64xf32, #tpu.memory_space<vmem>>, %arg27: memref<32x1xi32, #tpu.memory_space<vmem>>, %arg28: memref<32x64xf32, #tpu.memory_space<vmem>>, %arg29: memref<1x1xf32, #tpu.memory_space<vmem>>, %arg30: memref<1x1xf32, #tpu.memory_space<vmem>>) attributes {dimension_semantics = [], scalar_prefetch = 0 : i64, scratch_operands = 0 : i64, tpu.core_type = #tpu.core_type<tc>} {
    %c0 = arith.constant 0 : index
    %c0_0 = arith.constant 0 : index
    %0 = vector.load %arg0[%c0, %c0_0] : memref<32x64xf32, #tpu.memory_space<vmem>>, vector<32x64xf32>
    %c0_1 = arith.constant 0 : index
    %c0_2 = arith.constant 0 : index
    %c0_3 = arith.constant 0 : index
    %1 = vector.load %arg1[%c0_1, %c0_2, %c0_3] : memref<4x16x32xf32, #tpu.memory_space<vmem>>, vector<1x16x32xf32>
    %2 = vector.shape_cast %1 : vector<1x16x32xf32> to vector<16x32xf32>
    %cst = arith.constant dense<0.000000e+00> : vector<16x64xf32>
    %3 = tpu.matmul %2, %0, %cst {dimension_numbers = #tpu.dot_dimension_numbers<[1], [0], [0], [1], [0, 0, 1, 1], [], []>} : vector<16x32xf32>, vector<32x64xf32>, vector<16x64xf32> -> vector<16x64xf32>
    %c0_4 = arith.constant 0 : index
    %c0_5 = arith.constant 0 : index
    %c0_6 = arith.constant 0 : index
    %4 = vector.load %arg2[%c0_4, %c0_5, %c0_6] : memref<4x64x256xf32, #tpu.memory_space<vmem>>, vector<1x64x256xf32>
    %5 = vector.shape_cast %4 : vector<1x64x256xf32> to vector<64x256xf32>
    %cst_7 = arith.constant dense<0.000000e+00> : vector<16x256xf32>
    %6 = tpu.matmul %3, %5, %cst_7 {dimension_numbers = #tpu.dot_dimension_numbers<[1], [0], [0], [1], [0, 0, 1, 1], [], []>} : vector<16x64xf32>, vector<64x256xf32>, vector<16x256xf32> -> vector<16x256xf32>
    %c1 = arith.constant 1 : index
    %c0_8 = arith.constant 0 : index
    %c0_9 = arith.constant 0 : index
    %7 = vector.load %arg1[%c1, %c0_8, %c0_9] : memref<4x16x32xf32, #tpu.memory_space<vmem>>, vector<1x16x32xf32>
    %8 = vector.shape_cast %7 : vector<1x16x32xf32> to vector<16x32xf32>
    %cst_10 = arith.constant dense<0.000000e+00> : vector<16x64xf32>
    %9 = tpu.matmul %8, %0, %cst_10 {dimension_numbers = #tpu.dot_dimension_numbers<[1], [0], [0], [1], [0, 0, 1, 1], [], []>} : vector<16x32xf32>, vector<32x64xf32>, vector<16x64xf32> -> vector<16x64xf32>
    %c1_11 = arith.constant 1 : index
    %c0_12 = arith.constant 0 : index
    %c0_13 = arith.constant 0 : index
    %10 = vector.load %arg2[%c1_11, %c0_12, %c0_13] : memref<4x64x256xf32, #tpu.memory_space<vmem>>, vector<1x64x256xf32>
    %11 = vector.shape_cast %10 : vector<1x64x256xf32> to vector<64x256xf32>
    %cst_14 = arith.constant dense<0.000000e+00> : vector<16x256xf32>
    %12 = tpu.matmul %9, %11, %cst_14 {dimension_numbers = #tpu.dot_dimension_numbers<[1], [0], [0], [1], [0, 0, 1, 1], [], []>} : vector<16x64xf32>, vector<64x256xf32>, vector<16x256xf32> -> vector<16x256xf32>
    %13 = arith.addf %6, %12 : vector<16x256xf32>
    %c2 = arith.constant 2 : index
    %c0_15 = arith.constant 0 : index
    %c0_16 = arith.constant 0 : index
    %14 = vector.load %arg1[%c2, %c0_15, %c0_16] : memref<4x16x32xf32, #tpu.memory_space<vmem>>, vector<1x16x32xf32>
    %15 = vector.shape_cast %14 : vector<1x16x32xf32> to vector<16x32xf32>
    %cst_17 = arith.constant dense<0.000000e+00> : vector<16x64xf32>
    %16 = tpu.matmul %15, %0, %cst_17 {dimension_numbers = #tpu.dot_dimension_numbers<[1], [0], [0], [1], [0, 0, 1, 1], [], []>} : vector<16x32xf32>, vector<32x64xf32>, vector<16x64xf32> -> vector<16x64xf32>
    %c2_18 = arith.constant 2 : index
    %c0_19 = arith.constant 0 : index
    %c0_20 = arith.constant 0 : index
    %17 = vector.load %arg2[%c2_18, %c0_19, %c0_20] : memref<4x64x256xf32, #tpu.memory_space<vmem>>, vector<1x64x256xf32>
    %18 = vector.shape_cast %17 : vector<1x64x256xf32> to vector<64x256xf32>
    %cst_21 = arith.constant dense<0.000000e+00> : vector<16x256xf32>
    %19 = tpu.matmul %16, %18, %cst_21 {dimension_numbers = #tpu.dot_dimension_numbers<[1], [0], [0], [1], [0, 0, 1, 1], [], []>} : vector<16x64xf32>, vector<64x256xf32>, vector<16x256xf32> -> vector<16x256xf32>
    %20 = arith.addf %13, %19 : vector<16x256xf32>
    %c3 = arith.constant 3 : index
    %c0_22 = arith.constant 0 : index
    %c0_23 = arith.constant 0 : index
    %21 = vector.load %arg1[%c3, %c0_22, %c0_23] : memref<4x16x32xf32, #tpu.memory_space<vmem>>, vector<1x16x32xf32>
    %22 = vector.shape_cast %21 : vector<1x16x32xf32> to vector<16x32xf32>
    %cst_24 = arith.constant dense<0.000000e+00> : vector<16x64xf32>
    %23 = tpu.matmul %22, %0, %cst_24 {dimension_numbers = #tpu.dot_dimension_numbers<[1], [0], [0], [1], [0, 0, 1, 1], [], []>} : vector<16x32xf32>, vector<32x64xf32>, vector<16x64xf32> -> vector<16x64xf32>
    %c3_25 = arith.constant 3 : index
    %c0_26 = arith.constant 0 : index
    %c0_27 = arith.constant 0 : index
    %24 = vector.load %arg2[%c3_25, %c0_26, %c0_27] : memref<4x64x256xf32, #tpu.memory_space<vmem>>, vector<1x64x256xf32>
    %25 = vector.shape_cast %24 : vector<1x64x256xf32> to vector<64x256xf32>
    %cst_28 = arith.constant dense<0.000000e+00> : vector<16x256xf32>
    %26 = tpu.matmul %23, %25, %cst_28 {dimension_numbers = #tpu.dot_dimension_numbers<[1], [0], [0], [1], [0, 0, 1, 1], [], []>} : vector<16x64xf32>, vector<64x256xf32>, vector<16x256xf32> -> vector<16x256xf32>
    %27 = arith.addf %20, %26 : vector<16x256xf32>
    %c0_29 = arith.constant 0 : index
    %c0_30 = arith.constant 0 : index
    %28 = vector.load %arg3[%c0_29, %c0_30] : memref<1x256xf32, #tpu.memory_space<vmem>>, vector<1x256xf32>
    %29 = vector.broadcast %28 : vector<1x256xf32> to vector<16x256xf32>
    %30 = arith.addf %27, %29 : vector<16x256xf32>
    %cst_31 = arith.constant 0.000000e+00 : f32
    %31 = vector.broadcast %cst_31 : f32 to vector<16x256xf32>
    %32 = arith.maximumf %30, %31 : vector<16x256xf32>
    %c0_32 = arith.constant 0 : index
    %c0_33 = arith.constant 0 : index
    %c0_34 = arith.constant 0 : index
    %33 = vector.load %arg4[%c0_32, %c0_33, %c0_34] : memref<4x8x16xf32, #tpu.memory_space<vmem>>, vector<1x8x16xf32>
    %34 = vector.shape_cast %33 : vector<1x8x16xf32> to vector<8x16xf32>
    %cst_35 = arith.constant dense<0.000000e+00> : vector<8x256xf32>
    %35 = tpu.matmul %34, %32, %cst_35 {dimension_numbers = #tpu.dot_dimension_numbers<[1], [0], [0], [1], [0, 0, 1, 1], [], []>} : vector<8x16xf32>, vector<16x256xf32>, vector<8x256xf32> -> vector<8x256xf32>
    %c0_36 = arith.constant 0 : index
    %c0_37 = arith.constant 0 : index
    %c0_38 = arith.constant 0 : index
    %36 = vector.load %arg5[%c0_36, %c0_37, %c0_38] : memref<4x256x128xf32, #tpu.memory_space<vmem>>, vector<1x256x128xf32>
    %37 = vector.shape_cast %36 : vector<1x256x128xf32> to vector<256x128xf32>
    %cst_39 = arith.constant dense<0.000000e+00> : vector<8x128xf32>
    %38 = tpu.matmul %35, %37, %cst_39 {dimension_numbers = #tpu.dot_dimension_numbers<[1], [0], [0], [1], [0, 0, 1, 1], [], []>} : vector<8x256xf32>, vector<256x128xf32>, vector<8x128xf32> -> vector<8x128xf32>
    %c1_40 = arith.constant 1 : index
    %c0_41 = arith.constant 0 : index
    %c0_42 = arith.constant 0 : index
    %39 = vector.load %arg4[%c1_40, %c0_41, %c0_42] : memref<4x8x16xf32, #tpu.memory_space<vmem>>, vector<1x8x16xf32>
    %40 = vector.shape_cast %39 : vector<1x8x16xf32> to vector<8x16xf32>
    %cst_43 = arith.constant dense<0.000000e+00> : vector<8x256xf32>
    %41 = tpu.matmul %40, %32, %cst_43 {dimension_numbers = #tpu.dot_dimension_numbers<[1], [0], [0], [1], [0, 0, 1, 1], [], []>} : vector<8x16xf32>, vector<16x256xf32>, vector<8x256xf32> -> vector<8x256xf32>
    %c1_44 = arith.constant 1 : index
    %c0_45 = arith.constant 0 : index
    %c0_46 = arith.constant 0 : index
    %42 = vector.load %arg5[%c1_44, %c0_45, %c0_46] : memref<4x256x128xf32, #tpu.memory_space<vmem>>, vector<1x256x128xf32>
    %43 = vector.shape_cast %42 : vector<1x256x128xf32> to vector<256x128xf32>
    %cst_47 = arith.constant dense<0.000000e+00> : vector<8x128xf32>
    %44 = tpu.matmul %41, %43, %cst_47 {dimension_numbers = #tpu.dot_dimension_numbers<[1], [0], [0], [1], [0, 0, 1, 1], [], []>} : vector<8x256xf32>, vector<256x128xf32>, vector<8x128xf32> -> vector<8x128xf32>
    %45 = arith.addf %38, %44 : vector<8x128xf32>
    %c2_48 = arith.constant 2 : index
    %c0_49 = arith.constant 0 : index
    %c0_50 = arith.constant 0 : index
    %46 = vector.load %arg4[%c2_48, %c0_49, %c0_50] : memref<4x8x16xf32, #tpu.memory_space<vmem>>, vector<1x8x16xf32>
    %47 = vector.shape_cast %46 : vector<1x8x16xf32> to vector<8x16xf32>
    %cst_51 = arith.constant dense<0.000000e+00> : vector<8x256xf32>
    %48 = tpu.matmul %47, %32, %cst_51 {dimension_numbers = #tpu.dot_dimension_numbers<[1], [0], [0], [1], [0, 0, 1, 1], [], []>} : vector<8x16xf32>, vector<16x256xf32>, vector<8x256xf32> -> vector<8x256xf32>
    %c2_52 = arith.constant 2 : index
    %c0_53 = arith.constant 0 : index
    %c0_54 = arith.constant 0 : index
    %49 = vector.load %arg5[%c2_52, %c0_53, %c0_54] : memref<4x256x128xf32, #tpu.memory_space<vmem>>, vector<1x256x128xf32>
    %50 = vector.shape_cast %49 : vector<1x256x128xf32> to vector<256x128xf32>
    %cst_55 = arith.constant dense<0.000000e+00> : vector<8x128xf32>
    %51 = tpu.matmul %48, %50, %cst_55 {dimension_numbers = #tpu.dot_dimension_numbers<[1], [0], [0], [1], [0, 0, 1, 1], [], []>} : vector<8x256xf32>, vector<256x128xf32>, vector<8x128xf32> -> vector<8x128xf32>
    %52 = arith.addf %45, %51 : vector<8x128xf32>
    %c3_56 = arith.constant 3 : index
    %c0_57 = arith.constant 0 : index
    %c0_58 = arith.constant 0 : index
    %53 = vector.load %arg4[%c3_56, %c0_57, %c0_58] : memref<4x8x16xf32, #tpu.memory_space<vmem>>, vector<1x8x16xf32>
    %54 = vector.shape_cast %53 : vector<1x8x16xf32> to vector<8x16xf32>
    %cst_59 = arith.constant dense<0.000000e+00> : vector<8x256xf32>
    %55 = tpu.matmul %54, %32, %cst_59 {dimension_numbers = #tpu.dot_dimension_numbers<[1], [0], [0], [1], [0, 0, 1, 1], [], []>} : vector<8x16xf32>, vector<16x256xf32>, vector<8x256xf32> -> vector<8x256xf32>
    %c3_60 = arith.constant 3 : index
    %c0_61 = arith.constant 0 : index
    %c0_62 = arith.constant 0 : index
    %56 = vector.load %arg5[%c3_60, %c0_61, %c0_62] : memref<4x256x128xf32, #tpu.memory_space<vmem>>, vector<1x256x128xf32>
    %57 = vector.shape_cast %56 : vector<1x256x128xf32> to vector<256x128xf32>
    %cst_63 = arith.constant dense<0.000000e+00> : vector<8x128xf32>
    %58 = tpu.matmul %55, %57, %cst_63 {dimension_numbers = #tpu.dot_dimension_numbers<[1], [0], [0], [1], [0, 0, 1, 1], [], []>} : vector<8x256xf32>, vector<256x128xf32>, vector<8x128xf32> -> vector<8x128xf32>
    %59 = arith.addf %52, %58 : vector<8x128xf32>
    %c0_64 = arith.constant 0 : index
    %c0_65 = arith.constant 0 : index
    %60 = vector.load %arg6[%c0_64, %c0_65] : memref<1x128xf32, #tpu.memory_space<vmem>>, vector<1x128xf32>
    %61 = vector.broadcast %60 : vector<1x128xf32> to vector<8x128xf32>
    %62 = arith.addf %59, %61 : vector<8x128xf32>
    %cst_66 = arith.constant 0.000000e+00 : f32
    %63 = vector.broadcast %cst_66 : f32 to vector<8x128xf32>
    %64 = arith.maximumf %62, %63 : vector<8x128xf32>
    %c0_67 = arith.constant 0 : index
    %c0_68 = arith.constant 0 : index
    %c0_69 = arith.constant 0 : index
    %65 = vector.load %arg7[%c0_67, %c0_68, %c0_69] : memref<3x8x8xf32, #tpu.memory_space<vmem>>, vector<1x8x8xf32>
    %66 = vector.shape_cast %65 : vector<1x8x8xf32> to vector<8x8xf32>
    %cst_70 = arith.constant dense<0.000000e+00> : vector<8x128xf32>
    %67 = tpu.matmul %66, %64, %cst_70 {dimension_numbers = #tpu.dot_dimension_numbers<[1], [0], [0], [1], [0, 0, 1, 1], [], []>} : vector<8x8xf32>, vector<8x128xf32>, vector<8x128xf32> -> vector<8x128xf32>
    %c0_71 = arith.constant 0 : index
    %c0_72 = arith.constant 0 : index
    %c0_73 = arith.constant 0 : index
    %68 = vector.load %arg8[%c0_71, %c0_72, %c0_73] : memref<3x128x32xf32, #tpu.memory_space<vmem>>, vector<1x128x32xf32>
    %69 = vector.shape_cast %68 : vector<1x128x32xf32> to vector<128x32xf32>
    %cst_74 = arith.constant dense<0.000000e+00> : vector<8x32xf32>
    %70 = tpu.matmul %67, %69, %cst_74 {dimension_numbers = #tpu.dot_dimension_numbers<[1], [0], [0], [1], [0, 0, 1, 1], [], []>} : vector<8x128xf32>, vector<128x32xf32>, vector<8x32xf32> -> vector<8x32xf32>
    %c1_75 = arith.constant 1 : index
    %c0_76 = arith.constant 0 : index
    %c0_77 = arith.constant 0 : index
    %71 = vector.load %arg7[%c1_75, %c0_76, %c0_77] : memref<3x8x8xf32, #tpu.memory_space<vmem>>, vector<1x8x8xf32>
    %72 = vector.shape_cast %71 : vector<1x8x8xf32> to vector<8x8xf32>
    %cst_78 = arith.constant dense<0.000000e+00> : vector<8x128xf32>
    %73 = tpu.matmul %72, %64, %cst_78 {dimension_numbers = #tpu.dot_dimension_numbers<[1], [0], [0], [1], [0, 0, 1, 1], [], []>} : vector<8x8xf32>, vector<8x128xf32>, vector<8x128xf32> -> vector<8x128xf32>
    %c1_79 = arith.constant 1 : index
    %c0_80 = arith.constant 0 : index
    %c0_81 = arith.constant 0 : index
    %74 = vector.load %arg8[%c1_79, %c0_80, %c0_81] : memref<3x128x32xf32, #tpu.memory_space<vmem>>, vector<1x128x32xf32>
    %75 = vector.shape_cast %74 : vector<1x128x32xf32> to vector<128x32xf32>
    %cst_82 = arith.constant dense<0.000000e+00> : vector<8x32xf32>
    %76 = tpu.matmul %73, %75, %cst_82 {dimension_numbers = #tpu.dot_dimension_numbers<[1], [0], [0], [1], [0, 0, 1, 1], [], []>} : vector<8x128xf32>, vector<128x32xf32>, vector<8x32xf32> -> vector<8x32xf32>
    %77 = arith.addf %70, %76 : vector<8x32xf32>
    %c2_83 = arith.constant 2 : index
    %c0_84 = arith.constant 0 : index
    %c0_85 = arith.constant 0 : index
    %78 = vector.load %arg7[%c2_83, %c0_84, %c0_85] : memref<3x8x8xf32, #tpu.memory_space<vmem>>, vector<1x8x8xf32>
    %79 = vector.shape_cast %78 : vector<1x8x8xf32> to vector<8x8xf32>
    %cst_86 = arith.constant dense<0.000000e+00> : vector<8x128xf32>
    %80 = tpu.matmul %79, %64, %cst_86 {dimension_numbers = #tpu.dot_dimension_numbers<[1], [0], [0], [1], [0, 0, 1, 1], [], []>} : vector<8x8xf32>, vector<8x128xf32>, vector<8x128xf32> -> vector<8x128xf32>
    %c2_87 = arith.constant 2 : index
    %c0_88 = arith.constant 0 : index
    %c0_89 = arith.constant 0 : index
    %81 = vector.load %arg8[%c2_87, %c0_88, %c0_89] : memref<3x128x32xf32, #tpu.memory_space<vmem>>, vector<1x128x32xf32>
    %82 = vector.shape_cast %81 : vector<1x128x32xf32> to vector<128x32xf32>
    %cst_90 = arith.constant dense<0.000000e+00> : vector<8x32xf32>
    %83 = tpu.matmul %80, %82, %cst_90 {dimension_numbers = #tpu.dot_dimension_numbers<[1], [0], [0], [1], [0, 0, 1, 1], [], []>} : vector<8x128xf32>, vector<128x32xf32>, vector<8x32xf32> -> vector<8x32xf32>
    %84 = arith.addf %77, %83 : vector<8x32xf32>
    %c0_91 = arith.constant 0 : index
    %c0_92 = arith.constant 0 : index
    %85 = vector.load %arg9[%c0_91, %c0_92] : memref<1x32xf32, #tpu.memory_space<vmem>>, vector<1x32xf32>
    %86 = vector.broadcast %85 : vector<1x32xf32> to vector<8x32xf32>
    %87 = arith.addf %84, %86 : vector<8x32xf32>
    %c0_93 = arith.constant 0 : index
    %c0_94 = arith.constant 0 : index
    %c0_95 = arith.constant 0 : index
    %88 = vector.load %arg20[%c0_93, %c0_94, %c0_95] : memref<4x32x8xf32, #tpu.memory_space<vmem>>, vector<1x32x8xf32>
    %89 = vector.shape_cast %88 : vector<1x32x8xf32> to vector<32x8xf32>
    %cst_96 = arith.constant dense<0.000000e+00> : vector<8x8xf32>
    %90 = tpu.matmul %87, %89, %cst_96 {dimension_numbers = #tpu.dot_dimension_numbers<[1], [0], [0], [1], [0, 0, 1, 1], [], []>} : vector<8x32xf32>, vector<32x8xf32>, vector<8x8xf32> -> vector<8x8xf32>
    %c0_97 = arith.constant 0 : index
    %c0_98 = arith.constant 0 : index
    %c0_99 = arith.constant 0 : index
    %91 = vector.load %arg19[%c0_97, %c0_98, %c0_99] : memref<4x32x8xf32, #tpu.memory_space<vmem>>, vector<1x32x8xf32>
    %92 = vector.shape_cast %91 : vector<1x32x8xf32> to vector<32x8xf32>
    %cst_100 = arith.constant dense<0.000000e+00> : vector<32x8xf32>
    %93 = tpu.matmul %92, %90, %cst_100 {dimension_numbers = #tpu.dot_dimension_numbers<[1], [0], [0], [1], [0, 0, 1, 1], [], []>} : vector<32x8xf32>, vector<8x8xf32>, vector<32x8xf32> -> vector<32x8xf32>
    %c1_101 = arith.constant 1 : index
    %c0_102 = arith.constant 0 : index
    %c0_103 = arith.constant 0 : index
    %94 = vector.load %arg20[%c1_101, %c0_102, %c0_103] : memref<4x32x8xf32, #tpu.memory_space<vmem>>, vector<1x32x8xf32>
    %95 = vector.shape_cast %94 : vector<1x32x8xf32> to vector<32x8xf32>
    %cst_104 = arith.constant dense<0.000000e+00> : vector<8x8xf32>
    %96 = tpu.matmul %87, %95, %cst_104 {dimension_numbers = #tpu.dot_dimension_numbers<[1], [0], [0], [1], [0, 0, 1, 1], [], []>} : vector<8x32xf32>, vector<32x8xf32>, vector<8x8xf32> -> vector<8x8xf32>
    %c1_105 = arith.constant 1 : index
    %c0_106 = arith.constant 0 : index
    %c0_107 = arith.constant 0 : index
    %97 = vector.load %arg19[%c1_105, %c0_106, %c0_107] : memref<4x32x8xf32, #tpu.memory_space<vmem>>, vector<1x32x8xf32>
    %98 = vector.shape_cast %97 : vector<1x32x8xf32> to vector<32x8xf32>
    %cst_108 = arith.constant dense<0.000000e+00> : vector<32x8xf32>
    %99 = tpu.matmul %98, %96, %cst_108 {dimension_numbers = #tpu.dot_dimension_numbers<[1], [0], [0], [1], [0, 0, 1, 1], [], []>} : vector<32x8xf32>, vector<8x8xf32>, vector<32x8xf32> -> vector<32x8xf32>
    %100 = arith.addf %93, %99 : vector<32x8xf32>
    %c2_109 = arith.constant 2 : index
    %c0_110 = arith.constant 0 : index
    %c0_111 = arith.constant 0 : index
    %101 = vector.load %arg20[%c2_109, %c0_110, %c0_111] : memref<4x32x8xf32, #tpu.memory_space<vmem>>, vector<1x32x8xf32>
    %102 = vector.shape_cast %101 : vector<1x32x8xf32> to vector<32x8xf32>
    %cst_112 = arith.constant dense<0.000000e+00> : vector<8x8xf32>
    %103 = tpu.matmul %87, %102, %cst_112 {dimension_numbers = #tpu.dot_dimension_numbers<[1], [0], [0], [1], [0, 0, 1, 1], [], []>} : vector<8x32xf32>, vector<32x8xf32>, vector<8x8xf32> -> vector<8x8xf32>
    %c2_113 = arith.constant 2 : index
    %c0_114 = arith.constant 0 : index
    %c0_115 = arith.constant 0 : index
    %104 = vector.load %arg19[%c2_113, %c0_114, %c0_115] : memref<4x32x8xf32, #tpu.memory_space<vmem>>, vector<1x32x8xf32>
    %105 = vector.shape_cast %104 : vector<1x32x8xf32> to vector<32x8xf32>
    %cst_116 = arith.constant dense<0.000000e+00> : vector<32x8xf32>
    %106 = tpu.matmul %105, %103, %cst_116 {dimension_numbers = #tpu.dot_dimension_numbers<[1], [0], [0], [1], [0, 0, 1, 1], [], []>} : vector<32x8xf32>, vector<8x8xf32>, vector<32x8xf32> -> vector<32x8xf32>
    %107 = arith.addf %100, %106 : vector<32x8xf32>
    %c3_117 = arith.constant 3 : index
    %c0_118 = arith.constant 0 : index
    %c0_119 = arith.constant 0 : index
    %108 = vector.load %arg20[%c3_117, %c0_118, %c0_119] : memref<4x32x8xf32, #tpu.memory_space<vmem>>, vector<1x32x8xf32>
    %109 = vector.shape_cast %108 : vector<1x32x8xf32> to vector<32x8xf32>
    %cst_120 = arith.constant dense<0.000000e+00> : vector<8x8xf32>
    %110 = tpu.matmul %87, %109, %cst_120 {dimension_numbers = #tpu.dot_dimension_numbers<[1], [0], [0], [1], [0, 0, 1, 1], [], []>} : vector<8x32xf32>, vector<32x8xf32>, vector<8x8xf32> -> vector<8x8xf32>
    %c3_121 = arith.constant 3 : index
    %c0_122 = arith.constant 0 : index
    %c0_123 = arith.constant 0 : index
    %111 = vector.load %arg19[%c3_121, %c0_122, %c0_123] : memref<4x32x8xf32, #tpu.memory_space<vmem>>, vector<1x32x8xf32>
    %112 = vector.shape_cast %111 : vector<1x32x8xf32> to vector<32x8xf32>
    %cst_124 = arith.constant dense<0.000000e+00> : vector<32x8xf32>
    %113 = tpu.matmul %112, %110, %cst_124 {dimension_numbers = #tpu.dot_dimension_numbers<[1], [0], [0], [1], [0, 0, 1, 1], [], []>} : vector<32x8xf32>, vector<8x8xf32>, vector<32x8xf32> -> vector<32x8xf32>
    %114 = arith.addf %107, %113 : vector<32x8xf32>
    %c0_125 = arith.constant 0 : index
    %c0_126 = arith.constant 0 : index
    %115 = vector.load %arg24[%c0_125, %c0_126] : memref<8x64xf32, #tpu.memory_space<vmem>>, vector<8x64xf32>
    %116 = arith.mulf %114, %114 : vector<32x8xf32>
    %cst_127 = arith.constant dense<0.000000e+00> : vector<32xf32>
    %117 = vector.multi_reduction <add>, %116, %cst_127 [1] : vector<32x8xf32> to vector<32xf32>
    %118 = vector.shape_cast %117 : vector<32xf32> to vector<32x1xf32>
    %cst_128 = arith.constant dense<0.000000e+00> : vector<32x64xf32>
    %119 = tpu.matmul %114, %115, %cst_128 {dimension_numbers = #tpu.dot_dimension_numbers<[1], [0], [0], [1], [0, 0, 1, 1], [], []>} : vector<32x8xf32>, vector<8x64xf32>, vector<32x64xf32> -> vector<32x64xf32>
    %c0_129 = arith.constant 0 : index
    %c0_130 = arith.constant 0 : index
    %120 = vector.load %arg25[%c0_129, %c0_130] : memref<1x64xf32, #tpu.memory_space<vmem>>, vector<1x64xf32>
    %121 = vector.broadcast %118 : vector<32x1xf32> to vector<32x64xf32>
    %122 = vector.broadcast %120 : vector<1x64xf32> to vector<32x64xf32>
    %123 = arith.addf %121, %122 : vector<32x64xf32>
    %cst_131 = arith.constant 2.000000e+00 : f32
    %124 = vector.broadcast %cst_131 : f32 to vector<32x64xf32>
    %125 = arith.mulf %124, %119 : vector<32x64xf32>
    %126 = arith.subf %123, %125 : vector<32x64xf32>
    %127 = tpu.iota {dimensions = array<i32: 1>} : vector<32x64xi32>
    %cst_132 = arith.constant dense<0x7F800000> : vector<32xf32>
    %128 = vector.multi_reduction <minimumf>, %126, %cst_132 [1] : vector<32x64xf32> to vector<32xf32>
    %129 = vector.shape_cast %128 : vector<32xf32> to vector<32x1xf32>
    %130 = vector.broadcast %129 : vector<32x1xf32> to vector<32x64xf32>
    %131 = arith.cmpf ole, %126, %130 : vector<32x64xf32>
    %c64_i32 = arith.constant 64 : i32
    %132 = vector.broadcast %c64_i32 : i32 to vector<32x64xi32>
    %133 = arith.select %131, %127, %132 : vector<32x64xi1>, vector<32x64xi32>
    %cst_133 = arith.constant dense<2147483647> : vector<32xi32>
    %134 = vector.multi_reduction <minsi>, %133, %cst_133 [1] : vector<32x64xi32> to vector<32xi32>
    %135 = vector.shape_cast %134 : vector<32xi32> to vector<32x1xi32>
    %136 = vector.broadcast %135 : vector<32x1xi32> to vector<32x64xi32>
    %137 = arith.cmpi eq, %127, %136 : vector<32x64xi32>
    %138 = arith.extui %137 : vector<32x64xi1> to vector<32x64xi32>
    %139 = arith.sitofp %138 : vector<32x64xi32> to vector<32x64xf32>
    %c0_134 = arith.constant 0 : index
    %c0_135 = arith.constant 0 : index
    %140 = vector.load %arg23[%c0_134, %c0_135] : memref<64x8xf32, #tpu.memory_space<vmem>>, vector<64x8xf32>
    %cst_136 = arith.constant dense<0.000000e+00> : vector<32x8xf32>
    %141 = tpu.matmul %139, %140, %cst_136 {dimension_numbers = #tpu.dot_dimension_numbers<[1], [0], [0], [1], [0, 0, 1, 1], [], []>} : vector<32x64xf32>, vector<64x8xf32>, vector<32x8xf32> -> vector<32x8xf32>
    %142 = vector.broadcast %129 : vector<32x1xf32> to vector<32x64xf32>
    %143 = arith.subf %142, %126 : vector<32x64xf32>
    %144 = math.exp %143 : vector<32x64xf32>
    %cst_137 = arith.constant dense<0.000000e+00> : vector<32xf32>
    %145 = vector.multi_reduction <add>, %144, %cst_137 [1] : vector<32x64xf32> to vector<32xf32>
    %146 = vector.shape_cast %145 : vector<32xf32> to vector<32x1xf32>
    %147 = tpu.reciprocal %146 {approx = true} : vector<32x1xf32> -> vector<32x1xf32>
    %148 = vector.broadcast %147 : vector<32x1xf32> to vector<32x64xf32>
    %149 = arith.mulf %144, %148 : vector<32x64xf32>
    %150 = arith.subf %141, %114 : vector<32x8xf32>
    %151 = arith.mulf %150, %150 : vector<32x8xf32>
    %152 = vector.shape_cast %151 : vector<32x8xf32> to vector<1x32x8xf32>
    %cst_138 = arith.constant dense<0.000000e+00> : vector<1xf32>
    %153 = vector.multi_reduction <add>, %152, %cst_138 [1, 2] : vector<1x32x8xf32> to vector<1xf32>
    %154 = vector.shape_cast %153 : vector<1xf32> to vector<1x1x1xf32>
    %155 = vector.extract %154[0, 0, 0] : f32 from vector<1x1x1xf32>
    %cst_139 = arith.constant 2.560000e+02 : f32
    %156 = arith.divf %155, %cst_139 : f32
    %cst_140 = arith.constant 1.250000e+00 : f32
    %157 = arith.mulf %cst_140, %156 : f32
    %cst_141 = arith.constant dense<0.000000e+00> : vector<64xf32>
    %158 = vector.multi_reduction <add>, %139, %cst_141 [0] : vector<32x64xf32> to vector<64xf32>
    %159 = vector.shape_cast %158 : vector<64xf32> to vector<1x64xf32>
    %cst_142 = arith.constant 3.200000e+01 : f32
    %160 = vector.broadcast %cst_142 : f32 to vector<1x64xf32>
    %161 = arith.divf %159, %160 : vector<1x64xf32>
    %cst_143 = arith.constant 1.000000e-10 : f32
    %162 = vector.broadcast %cst_143 : f32 to vector<1x64xf32>
    %163 = arith.addf %161, %162 : vector<1x64xf32>
    %164 = math.log %163 : vector<1x64xf32>
    %165 = arith.mulf %161, %164 : vector<1x64xf32>
    %166 = vector.shape_cast %165 : vector<1x64xf32> to vector<1x1x64xf32>
    %cst_144 = arith.constant dense<0.000000e+00> : vector<1xf32>
    %167 = vector.multi_reduction <add>, %166, %cst_144 [1, 2] : vector<1x1x64xf32> to vector<1xf32>
    %168 = vector.shape_cast %167 : vector<1xf32> to vector<1x1x1xf32>
    %169 = vector.extract %168[0, 0, 0] : f32 from vector<1x1x1xf32>
    %cst_145 = arith.constant 0.000000e+00 : f32
    %170 = arith.subf %cst_145, %169 : f32
    %171 = math.exp %170 : f32
    %c0_146 = arith.constant 0 : index
    %c0_147 = arith.constant 0 : index
    %c0_148 = arith.constant 0 : index
    %172 = vector.load %arg21[%c0_146, %c0_147, %c0_148] : memref<4x8x32xf32, #tpu.memory_space<vmem>>, vector<1x8x32xf32>
    %173 = vector.shape_cast %172 : vector<1x8x32xf32> to vector<8x32xf32>
    %cst_149 = arith.constant dense<0.000000e+00> : vector<8x8xf32>
    %174 = tpu.matmul %173, %141, %cst_149 {dimension_numbers = #tpu.dot_dimension_numbers<[1], [0], [0], [1], [0, 0, 1, 1], [], []>} : vector<8x32xf32>, vector<32x8xf32>, vector<8x8xf32> -> vector<8x8xf32>
    %c0_150 = arith.constant 0 : index
    %c0_151 = arith.constant 0 : index
    %c0_152 = arith.constant 0 : index
    %175 = vector.load %arg22[%c0_150, %c0_151, %c0_152] : memref<4x8x32xf32, #tpu.memory_space<vmem>>, vector<1x8x32xf32>
    %176 = vector.shape_cast %175 : vector<1x8x32xf32> to vector<8x32xf32>
    %cst_153 = arith.constant dense<0.000000e+00> : vector<8x32xf32>
    %177 = tpu.matmul %174, %176, %cst_153 {dimension_numbers = #tpu.dot_dimension_numbers<[1], [0], [0], [1], [0, 0, 1, 1], [], []>} : vector<8x8xf32>, vector<8x32xf32>, vector<8x32xf32> -> vector<8x32xf32>
    %c1_154 = arith.constant 1 : index
    %c0_155 = arith.constant 0 : index
    %c0_156 = arith.constant 0 : index
    %178 = vector.load %arg21[%c1_154, %c0_155, %c0_156] : memref<4x8x32xf32, #tpu.memory_space<vmem>>, vector<1x8x32xf32>
    %179 = vector.shape_cast %178 : vector<1x8x32xf32> to vector<8x32xf32>
    %cst_157 = arith.constant dense<0.000000e+00> : vector<8x8xf32>
    %180 = tpu.matmul %179, %141, %cst_157 {dimension_numbers = #tpu.dot_dimension_numbers<[1], [0], [0], [1], [0, 0, 1, 1], [], []>} : vector<8x32xf32>, vector<32x8xf32>, vector<8x8xf32> -> vector<8x8xf32>
    %c1_158 = arith.constant 1 : index
    %c0_159 = arith.constant 0 : index
    %c0_160 = arith.constant 0 : index
    %181 = vector.load %arg22[%c1_158, %c0_159, %c0_160] : memref<4x8x32xf32, #tpu.memory_space<vmem>>, vector<1x8x32xf32>
    %182 = vector.shape_cast %181 : vector<1x8x32xf32> to vector<8x32xf32>
    %cst_161 = arith.constant dense<0.000000e+00> : vector<8x32xf32>
    %183 = tpu.matmul %180, %182, %cst_161 {dimension_numbers = #tpu.dot_dimension_numbers<[1], [0], [0], [1], [0, 0, 1, 1], [], []>} : vector<8x8xf32>, vector<8x32xf32>, vector<8x32xf32> -> vector<8x32xf32>
    %184 = arith.addf %177, %183 : vector<8x32xf32>
    %c2_162 = arith.constant 2 : index
    %c0_163 = arith.constant 0 : index
    %c0_164 = arith.constant 0 : index
    %185 = vector.load %arg21[%c2_162, %c0_163, %c0_164] : memref<4x8x32xf32, #tpu.memory_space<vmem>>, vector<1x8x32xf32>
    %186 = vector.shape_cast %185 : vector<1x8x32xf32> to vector<8x32xf32>
    %cst_165 = arith.constant dense<0.000000e+00> : vector<8x8xf32>
    %187 = tpu.matmul %186, %141, %cst_165 {dimension_numbers = #tpu.dot_dimension_numbers<[1], [0], [0], [1], [0, 0, 1, 1], [], []>} : vector<8x32xf32>, vector<32x8xf32>, vector<8x8xf32> -> vector<8x8xf32>
    %c2_166 = arith.constant 2 : index
    %c0_167 = arith.constant 0 : index
    %c0_168 = arith.constant 0 : index
    %188 = vector.load %arg22[%c2_166, %c0_167, %c0_168] : memref<4x8x32xf32, #tpu.memory_space<vmem>>, vector<1x8x32xf32>
    %189 = vector.shape_cast %188 : vector<1x8x32xf32> to vector<8x32xf32>
    %cst_169 = arith.constant dense<0.000000e+00> : vector<8x32xf32>
    %190 = tpu.matmul %187, %189, %cst_169 {dimension_numbers = #tpu.dot_dimension_numbers<[1], [0], [0], [1], [0, 0, 1, 1], [], []>} : vector<8x8xf32>, vector<8x32xf32>, vector<8x32xf32> -> vector<8x32xf32>
    %191 = arith.addf %184, %190 : vector<8x32xf32>
    %c3_170 = arith.constant 3 : index
    %c0_171 = arith.constant 0 : index
    %c0_172 = arith.constant 0 : index
    %192 = vector.load %arg21[%c3_170, %c0_171, %c0_172] : memref<4x8x32xf32, #tpu.memory_space<vmem>>, vector<1x8x32xf32>
    %193 = vector.shape_cast %192 : vector<1x8x32xf32> to vector<8x32xf32>
    %cst_173 = arith.constant dense<0.000000e+00> : vector<8x8xf32>
    %194 = tpu.matmul %193, %141, %cst_173 {dimension_numbers = #tpu.dot_dimension_numbers<[1], [0], [0], [1], [0, 0, 1, 1], [], []>} : vector<8x32xf32>, vector<32x8xf32>, vector<8x8xf32> -> vector<8x8xf32>
    %c3_174 = arith.constant 3 : index
    %c0_175 = arith.constant 0 : index
    %c0_176 = arith.constant 0 : index
    %195 = vector.load %arg22[%c3_174, %c0_175, %c0_176] : memref<4x8x32xf32, #tpu.memory_space<vmem>>, vector<1x8x32xf32>
    %196 = vector.shape_cast %195 : vector<1x8x32xf32> to vector<8x32xf32>
    %cst_177 = arith.constant dense<0.000000e+00> : vector<8x32xf32>
    %197 = tpu.matmul %194, %196, %cst_177 {dimension_numbers = #tpu.dot_dimension_numbers<[1], [0], [0], [1], [0, 0, 1, 1], [], []>} : vector<8x8xf32>, vector<8x32xf32>, vector<8x32xf32> -> vector<8x32xf32>
    %198 = arith.addf %191, %197 : vector<8x32xf32>
    %c0_178 = arith.constant 0 : index
    %c0_179 = arith.constant 0 : index
    %c0_180 = arith.constant 0 : index
    %199 = vector.load %arg10[%c0_178, %c0_179, %c0_180] : memref<3x8x8xf32, #tpu.memory_space<vmem>>, vector<1x8x8xf32>
    %200 = vector.shape_cast %199 : vector<1x8x8xf32> to vector<8x8xf32>
    %cst_181 = arith.constant dense<0.000000e+00> : vector<8x32xf32>
    %201 = tpu.matmul %200, %198, %cst_181 {dimension_numbers = #tpu.dot_dimension_numbers<[1], [0], [0], [1], [0, 0, 1, 1], [], []>} : vector<8x8xf32>, vector<8x32xf32>, vector<8x32xf32> -> vector<8x32xf32>
    %c0_182 = arith.constant 0 : index
    %c0_183 = arith.constant 0 : index
    %c0_184 = arith.constant 0 : index
    %202 = vector.load %arg11[%c0_182, %c0_183, %c0_184] : memref<3x32x128xf32, #tpu.memory_space<vmem>>, vector<1x32x128xf32>
    %203 = vector.shape_cast %202 : vector<1x32x128xf32> to vector<32x128xf32>
    %cst_185 = arith.constant dense<0.000000e+00> : vector<8x128xf32>
    %204 = tpu.matmul %201, %203, %cst_185 {dimension_numbers = #tpu.dot_dimension_numbers<[1], [0], [0], [1], [0, 0, 1, 1], [], []>} : vector<8x32xf32>, vector<32x128xf32>, vector<8x128xf32> -> vector<8x128xf32>
    %c1_186 = arith.constant 1 : index
    %c0_187 = arith.constant 0 : index
    %c0_188 = arith.constant 0 : index
    %205 = vector.load %arg10[%c1_186, %c0_187, %c0_188] : memref<3x8x8xf32, #tpu.memory_space<vmem>>, vector<1x8x8xf32>
    %206 = vector.shape_cast %205 : vector<1x8x8xf32> to vector<8x8xf32>
    %cst_189 = arith.constant dense<0.000000e+00> : vector<8x32xf32>
    %207 = tpu.matmul %206, %198, %cst_189 {dimension_numbers = #tpu.dot_dimension_numbers<[1], [0], [0], [1], [0, 0, 1, 1], [], []>} : vector<8x8xf32>, vector<8x32xf32>, vector<8x32xf32> -> vector<8x32xf32>
    %c1_190 = arith.constant 1 : index
    %c0_191 = arith.constant 0 : index
    %c0_192 = arith.constant 0 : index
    %208 = vector.load %arg11[%c1_190, %c0_191, %c0_192] : memref<3x32x128xf32, #tpu.memory_space<vmem>>, vector<1x32x128xf32>
    %209 = vector.shape_cast %208 : vector<1x32x128xf32> to vector<32x128xf32>
    %cst_193 = arith.constant dense<0.000000e+00> : vector<8x128xf32>
    %210 = tpu.matmul %207, %209, %cst_193 {dimension_numbers = #tpu.dot_dimension_numbers<[1], [0], [0], [1], [0, 0, 1, 1], [], []>} : vector<8x32xf32>, vector<32x128xf32>, vector<8x128xf32> -> vector<8x128xf32>
    %211 = arith.addf %204, %210 : vector<8x128xf32>
    %c2_194 = arith.constant 2 : index
    %c0_195 = arith.constant 0 : index
    %c0_196 = arith.constant 0 : index
    %212 = vector.load %arg10[%c2_194, %c0_195, %c0_196] : memref<3x8x8xf32, #tpu.memory_space<vmem>>, vector<1x8x8xf32>
    %213 = vector.shape_cast %212 : vector<1x8x8xf32> to vector<8x8xf32>
    %cst_197 = arith.constant dense<0.000000e+00> : vector<8x32xf32>
    %214 = tpu.matmul %213, %198, %cst_197 {dimension_numbers = #tpu.dot_dimension_numbers<[1], [0], [0], [1], [0, 0, 1, 1], [], []>} : vector<8x8xf32>, vector<8x32xf32>, vector<8x32xf32> -> vector<8x32xf32>
    %c2_198 = arith.constant 2 : index
    %c0_199 = arith.constant 0 : index
    %c0_200 = arith.constant 0 : index
    %215 = vector.load %arg11[%c2_198, %c0_199, %c0_200] : memref<3x32x128xf32, #tpu.memory_space<vmem>>, vector<1x32x128xf32>
    %216 = vector.shape_cast %215 : vector<1x32x128xf32> to vector<32x128xf32>
    %cst_201 = arith.constant dense<0.000000e+00> : vector<8x128xf32>
    %217 = tpu.matmul %214, %216, %cst_201 {dimension_numbers = #tpu.dot_dimension_numbers<[1], [0], [0], [1], [0, 0, 1, 1], [], []>} : vector<8x32xf32>, vector<32x128xf32>, vector<8x128xf32> -> vector<8x128xf32>
    %218 = arith.addf %211, %217 : vector<8x128xf32>
    %c0_202 = arith.constant 0 : index
    %c0_203 = arith.constant 0 : index
    %219 = vector.load %arg12[%c0_202, %c0_203] : memref<1x128xf32, #tpu.memory_space<vmem>>, vector<1x128xf32>
    %220 = vector.broadcast %219 : vector<1x128xf32> to vector<8x128xf32>
    %221 = arith.addf %218, %220 : vector<8x128xf32>
    %cst_204 = arith.constant 0.000000e+00 : f32
    %222 = vector.broadcast %cst_204 : f32 to vector<8x128xf32>
    %223 = arith.maximumf %221, %222 : vector<8x128xf32>
    %c0_205 = arith.constant 0 : index
    %c0_206 = arith.constant 0 : index
    %c0_207 = arith.constant 0 : index
    %224 = vector.load %arg13[%c0_205, %c0_206, %c0_207] : memref<3x16x8xf32, #tpu.memory_space<vmem>>, vector<1x16x8xf32>
    %225 = vector.shape_cast %224 : vector<1x16x8xf32> to vector<16x8xf32>
    %cst_208 = arith.constant dense<0.000000e+00> : vector<16x128xf32>
    %226 = tpu.matmul %225, %223, %cst_208 {dimension_numbers = #tpu.dot_dimension_numbers<[1], [0], [0], [1], [0, 0, 1, 1], [], []>} : vector<16x8xf32>, vector<8x128xf32>, vector<16x128xf32> -> vector<16x128xf32>
    %c0_209 = arith.constant 0 : index
    %c0_210 = arith.constant 0 : index
    %c0_211 = arith.constant 0 : index
    %227 = vector.load %arg14[%c0_209, %c0_210, %c0_211] : memref<3x128x256xf32, #tpu.memory_space<vmem>>, vector<1x128x256xf32>
    %228 = vector.shape_cast %227 : vector<1x128x256xf32> to vector<128x256xf32>
    %cst_212 = arith.constant dense<0.000000e+00> : vector<16x256xf32>
    %229 = tpu.matmul %226, %228, %cst_212 {dimension_numbers = #tpu.dot_dimension_numbers<[1], [0], [0], [1], [0, 0, 1, 1], [], []>} : vector<16x128xf32>, vector<128x256xf32>, vector<16x256xf32> -> vector<16x256xf32>
    %c1_213 = arith.constant 1 : index
    %c0_214 = arith.constant 0 : index
    %c0_215 = arith.constant 0 : index
    %230 = vector.load %arg13[%c1_213, %c0_214, %c0_215] : memref<3x16x8xf32, #tpu.memory_space<vmem>>, vector<1x16x8xf32>
    %231 = vector.shape_cast %230 : vector<1x16x8xf32> to vector<16x8xf32>
    %cst_216 = arith.constant dense<0.000000e+00> : vector<16x128xf32>
    %232 = tpu.matmul %231, %223, %cst_216 {dimension_numbers = #tpu.dot_dimension_numbers<[1], [0], [0], [1], [0, 0, 1, 1], [], []>} : vector<16x8xf32>, vector<8x128xf32>, vector<16x128xf32> -> vector<16x128xf32>
    %c1_217 = arith.constant 1 : index
    %c0_218 = arith.constant 0 : index
    %c0_219 = arith.constant 0 : index
    %233 = vector.load %arg14[%c1_217, %c0_218, %c0_219] : memref<3x128x256xf32, #tpu.memory_space<vmem>>, vector<1x128x256xf32>
    %234 = vector.shape_cast %233 : vector<1x128x256xf32> to vector<128x256xf32>
    %cst_220 = arith.constant dense<0.000000e+00> : vector<16x256xf32>
    %235 = tpu.matmul %232, %234, %cst_220 {dimension_numbers = #tpu.dot_dimension_numbers<[1], [0], [0], [1], [0, 0, 1, 1], [], []>} : vector<16x128xf32>, vector<128x256xf32>, vector<16x256xf32> -> vector<16x256xf32>
    %236 = arith.addf %229, %235 : vector<16x256xf32>
    %c2_221 = arith.constant 2 : index
    %c0_222 = arith.constant 0 : index
    %c0_223 = arith.constant 0 : index
    %237 = vector.load %arg13[%c2_221, %c0_222, %c0_223] : memref<3x16x8xf32, #tpu.memory_space<vmem>>, vector<1x16x8xf32>
    %238 = vector.shape_cast %237 : vector<1x16x8xf32> to vector<16x8xf32>
    %cst_224 = arith.constant dense<0.000000e+00> : vector<16x128xf32>
    %239 = tpu.matmul %238, %223, %cst_224 {dimension_numbers = #tpu.dot_dimension_numbers<[1], [0], [0], [1], [0, 0, 1, 1], [], []>} : vector<16x8xf32>, vector<8x128xf32>, vector<16x128xf32> -> vector<16x128xf32>
    %c2_225 = arith.constant 2 : index
    %c0_226 = arith.constant 0 : index
    %c0_227 = arith.constant 0 : index
    %240 = vector.load %arg14[%c2_225, %c0_226, %c0_227] : memref<3x128x256xf32, #tpu.memory_space<vmem>>, vector<1x128x256xf32>
    %241 = vector.shape_cast %240 : vector<1x128x256xf32> to vector<128x256xf32>
    %cst_228 = arith.constant dense<0.000000e+00> : vector<16x256xf32>
    %242 = tpu.matmul %239, %241, %cst_228 {dimension_numbers = #tpu.dot_dimension_numbers<[1], [0], [0], [1], [0, 0, 1, 1], [], []>} : vector<16x128xf32>, vector<128x256xf32>, vector<16x256xf32> -> vector<16x256xf32>
    %243 = arith.addf %236, %242 : vector<16x256xf32>
    %c0_229 = arith.constant 0 : index
    %c0_230 = arith.constant 0 : index
    %244 = vector.load %arg15[%c0_229, %c0_230] : memref<1x256xf32, #tpu.memory_space<vmem>>, vector<1x256xf32>
    %245 = vector.broadcast %244 : vector<1x256xf32> to vector<16x256xf32>
    %246 = arith.addf %243, %245 : vector<16x256xf32>
    %cst_231 = arith.constant 0.000000e+00 : f32
    %247 = vector.broadcast %cst_231 : f32 to vector<16x256xf32>
    %248 = arith.maximumf %246, %247 : vector<16x256xf32>
    %c0_232 = arith.constant 0 : index
    %c0_233 = arith.constant 0 : index
    %c0_234 = arith.constant 0 : index
    %249 = vector.load %arg16[%c0_232, %c0_233, %c0_234] : memref<3x32x16xf32, #tpu.memory_space<vmem>>, vector<1x32x16xf32>
    %250 = vector.shape_cast %249 : vector<1x32x16xf32> to vector<32x16xf32>
    %cst_235 = arith.constant dense<0.000000e+00> : vector<32x256xf32>
    %251 = tpu.matmul %250, %248, %cst_235 {dimension_numbers = #tpu.dot_dimension_numbers<[1], [0], [0], [1], [0, 0, 1, 1], [], []>} : vector<32x16xf32>, vector<16x256xf32>, vector<32x256xf32> -> vector<32x256xf32>
    %c0_236 = arith.constant 0 : index
    %c0_237 = arith.constant 0 : index
    %c0_238 = arith.constant 0 : index
    %252 = vector.load %arg17[%c0_236, %c0_237, %c0_238] : memref<3x256x64xf32, #tpu.memory_space<vmem>>, vector<1x256x64xf32>
    %253 = vector.shape_cast %252 : vector<1x256x64xf32> to vector<256x64xf32>
    %cst_239 = arith.constant dense<0.000000e+00> : vector<32x64xf32>
    %254 = tpu.matmul %251, %253, %cst_239 {dimension_numbers = #tpu.dot_dimension_numbers<[1], [0], [0], [1], [0, 0, 1, 1], [], []>} : vector<32x256xf32>, vector<256x64xf32>, vector<32x64xf32> -> vector<32x64xf32>
    %c1_240 = arith.constant 1 : index
    %c0_241 = arith.constant 0 : index
    %c0_242 = arith.constant 0 : index
    %255 = vector.load %arg16[%c1_240, %c0_241, %c0_242] : memref<3x32x16xf32, #tpu.memory_space<vmem>>, vector<1x32x16xf32>
    %256 = vector.shape_cast %255 : vector<1x32x16xf32> to vector<32x16xf32>
    %cst_243 = arith.constant dense<0.000000e+00> : vector<32x256xf32>
    %257 = tpu.matmul %256, %248, %cst_243 {dimension_numbers = #tpu.dot_dimension_numbers<[1], [0], [0], [1], [0, 0, 1, 1], [], []>} : vector<32x16xf32>, vector<16x256xf32>, vector<32x256xf32> -> vector<32x256xf32>
    %c1_244 = arith.constant 1 : index
    %c0_245 = arith.constant 0 : index
    %c0_246 = arith.constant 0 : index
    %258 = vector.load %arg17[%c1_244, %c0_245, %c0_246] : memref<3x256x64xf32, #tpu.memory_space<vmem>>, vector<1x256x64xf32>
    %259 = vector.shape_cast %258 : vector<1x256x64xf32> to vector<256x64xf32>
    %cst_247 = arith.constant dense<0.000000e+00> : vector<32x64xf32>
    %260 = tpu.matmul %257, %259, %cst_247 {dimension_numbers = #tpu.dot_dimension_numbers<[1], [0], [0], [1], [0, 0, 1, 1], [], []>} : vector<32x256xf32>, vector<256x64xf32>, vector<32x64xf32> -> vector<32x64xf32>
    %261 = arith.addf %254, %260 : vector<32x64xf32>
    %c2_248 = arith.constant 2 : index
    %c0_249 = arith.constant 0 : index
    %c0_250 = arith.constant 0 : index
    %262 = vector.load %arg16[%c2_248, %c0_249, %c0_250] : memref<3x32x16xf32, #tpu.memory_space<vmem>>, vector<1x32x16xf32>
    %263 = vector.shape_cast %262 : vector<1x32x16xf32> to vector<32x16xf32>
    %cst_251 = arith.constant dense<0.000000e+00> : vector<32x256xf32>
    %264 = tpu.matmul %263, %248, %cst_251 {dimension_numbers = #tpu.dot_dimension_numbers<[1], [0], [0], [1], [0, 0, 1, 1], [], []>} : vector<32x16xf32>, vector<16x256xf32>, vector<32x256xf32> -> vector<32x256xf32>
    %c2_252 = arith.constant 2 : index
    %c0_253 = arith.constant 0 : index
    %c0_254 = arith.constant 0 : index
    %265 = vector.load %arg17[%c2_252, %c0_253, %c0_254] : memref<3x256x64xf32, #tpu.memory_space<vmem>>, vector<1x256x64xf32>
    %266 = vector.shape_cast %265 : vector<1x256x64xf32> to vector<256x64xf32>
    %cst_255 = arith.constant dense<0.000000e+00> : vector<32x64xf32>
    %267 = tpu.matmul %264, %266, %cst_255 {dimension_numbers = #tpu.dot_dimension_numbers<[1], [0], [0], [1], [0, 0, 1, 1], [], []>} : vector<32x256xf32>, vector<256x64xf32>, vector<32x64xf32> -> vector<32x64xf32>
    %268 = arith.addf %261, %267 : vector<32x64xf32>
    %c0_256 = arith.constant 0 : index
    %c0_257 = arith.constant 0 : index
    %269 = vector.load %arg18[%c0_256, %c0_257] : memref<1x64xf32, #tpu.memory_space<vmem>>, vector<1x64xf32>
    %270 = vector.broadcast %269 : vector<1x64xf32> to vector<32x64xf32>
    %271 = arith.addf %268, %270 : vector<32x64xf32>
    %c0_258 = arith.constant 0 : index
    %c0_259 = arith.constant 0 : index
    %272 = vector.load %arg26[%c0_258, %c0_259] : memref<32x64xf32, #tpu.memory_space<vmem>>, vector<32x64xf32>
    tpu.vector_store %arg26[%c0_258, %c0_259], %271 {strides = array<i32>} : memref<32x64xf32, #tpu.memory_space<vmem>>, vector<32x64xf32>,
    %c0_260 = arith.constant 0 : index
    %c0_261 = arith.constant 0 : index
    %273 = vector.load %arg27[%c0_260, %c0_261] : memref<32x1xi32, #tpu.memory_space<vmem>>, vector<32x1xi32>
    tpu.vector_store %arg27[%c0_260, %c0_261], %135 {strides = array<i32>} : memref<32x1xi32, #tpu.memory_space<vmem>>, vector<32x1xi32>,
    %c0_262 = arith.constant 0 : index
    %c0_263 = arith.constant 0 : index
    %274 = vector.load %arg28[%c0_262, %c0_263] : memref<32x64xf32, #tpu.memory_space<vmem>>, vector<32x64xf32>
    tpu.vector_store %arg28[%c0_262, %c0_263], %149 {strides = array<i32>} : memref<32x64xf32, #tpu.memory_space<vmem>>, vector<32x64xf32>,
    %275 = vector.broadcast %157 : f32 to vector<1x1xf32>
    %c0_264 = arith.constant 0 : index
    %c0_265 = arith.constant 0 : index
    %276 = vector.load %arg29[%c0_264, %c0_265] : memref<1x1xf32, #tpu.memory_space<vmem>>, vector<1x1xf32>
    tpu.vector_store %arg29[%c0_264, %c0_265], %275 {strides = array<i32>} : memref<1x1xf32, #tpu.memory_space<vmem>>, vector<1x1xf32>,
    %277 = vector.broadcast %171 : f32 to vector<1x1xf32>
    %c0_266 = arith.constant 0 : index
    %c0_267 = arith.constant 0 : index
    %278 = vector.load %arg30[%c0_266, %c0_267] : memref<1x1xf32, #tpu.memory_space<vmem>>, vector<1x1xf32>
    tpu.vector_store %arg30[%c0_266, %c0_267], %277 {strides = array<i32>} : memref<1x1xf32, #tpu.memory_space<vmem>>, vector<1x1xf32>,
    return
  }
}

</mosaic_0001>

<bundles_post_ra>
// kernel: forward.1
= control target key start
LH: loop header
LB: loop body
LE: loop exit
PB: predicated region body
PF: predicated region fallthrough
CT: control target
= control target key end

     0   :  { %s8259_s6 = smov 1   ;;  %s8260_s10 = smov 2   ;;  %s9496_s0 = inlined_call_operand.smem [shape: u32[31], index: -1, kind: input, shape index: {}] }
   0x1   :  { %s8318_s5 = sld [smem:[%s9496_s0]]   ;;  %s8261_s14 = smov 3  }
   0x2   :  { %s8323_s9 = sld [smem:[%s9496_s0 + %s8259_s6]]   ;;  %s8262_s18 = smov 4  }
   0x3   :  { %s8328_s13 = sld [smem:[%s9496_s0 + %s8260_s10]]   ;;  %s8263_s22 = smov 5  }
   0x4   :  { %s8333_s17 = sld [smem:[%s9496_s0 + %s8261_s14]]   ;;  %s8264_s26 = smov 6  }
   0x5   :  { %s8338_s21 = sld [smem:[%s9496_s0 + %s8262_s18]]   ;;  %s8265_s30 = smov 7  }
   0x6   :  { %s8343_s25 = sld [smem:[%s9496_s0 + %s8263_s22]]   ;;  %s8266_s4 = smov 8  }
   0x7   :  { %s8348_s29 = sld [smem:[%s9496_s0 + %s8264_s26]]   ;;  %s8267_s10 = smov 9  }
   0x8   :  { %s8353_s3 = sld [smem:[%s9496_s0 + %s8265_s30]]   ;;  %s8268_s15 = smov 10  }
   0x9   :  { %9508 = sst [smem:[#allocation36_spill]] %s8328_s13  ;;  %s8269_s20 = smov 11  }
   0xa   :  { %s8358_s8 = sld [smem:[%s9496_s0 + %s8266_s4]]   ;;  %s8270_s26 = smov 12  }
   0xb   :  { %s8363_s14 = sld [smem:[%s9496_s0 + %s8267_s10]]   ;;  %s8271_s1 = smov 13  }
   0xc   :  { %9509 = sst [smem:[#allocation37_spill]] %s8343_s25  ;;  %s8272_s7 = smov 14  }
   0xd   :  { %s8368_s19 = sld [smem:[%s9496_s0 + %s8268_s15]]   ;;  %s8273_s15 = smov 15  }
   0xe   :  { %s8373_s24 = sld [smem:[%s9496_s0 + %s8269_s20]]   ;;  %s8274_s22 = smov 16  }
   0xf   :  { %s8378_s30 = sld [smem:[%s9496_s0 + %s8270_s26]]   ;;  %s8275_s28 = smov 17  }
  0x10   :  { %9510 = sst [smem:[#allocation38_spill]] %s8358_s8 }
  0x11   :  { %s8383_s6 = sld [smem:[%s9496_s0 + %s8271_s1]]  }
  0x12   :  { %s8388_s12 = sld [smem:[%s9496_s0 + %s8272_s7]]   ;;  %s8276_s7 = smov 18  }
  0x13   :  { %s8393_s20 = sld [smem:[%s9496_s0 + %s8273_s15]]   ;;  %s8277_s15 = smov 19  }
  0x14   :  { %s8398_s27 = sld [smem:[%s9496_s0 + %s8274_s22]]   ;;  %s8278_s22 = smov 20  }
  0x15   :  { %s8403_s4 = sld [smem:[%s9496_s0 + %s8275_s28]]   ;;  %s8279_s28 = smov 21  }
  0x17   :  { %9511 = sst [smem:[#allocation39_spill]] %s8383_s6 }
  0x18   :  { %9512 = sst [smem:[#allocation40_spill]] %s8388_s12 }
  0x19   :  { %s8408_s12 = sld [smem:[%s9496_s0 + %s8276_s7]]   ;;  %s8280_s7 = smov 22  }
  0x1a   :  { %9513 = sst [smem:[#allocation41_spill]] %s8398_s27 }
  0x1b   :  { %9514 = sst [smem:[#allocation42_spill]] %s8403_s4 }
  0x1c   :  { %s8413_s6 = sld [smem:[%s9496_s0 + %s8277_s15]]   ;;  %s8281_s15 = smov 23  }
  0x1d   :  { %s8418_s27 = sld [smem:[%s9496_s0 + %s8278_s22]]   ;;  %s8282_s22 = smov 24  }
  0x1e   :  { %s8423_s4 = sld [smem:[%s9496_s0 + %s8279_s28]]   ;;  %s8283_s28 = smov 25  }
  0x1f   :  { %s8428_s8 = sld [smem:[%s9496_s0 + %s8280_s7]]   ;;  %s8284_s7 = smov 26  }
  0x20   :  { %s8443_s25 = sld [smem:[%s9496_s0 + %s8283_s28]]   ;;  %s8287_s28 = smov 29  }
  0x21   :  { %s8448_s13 = sld [smem:[%s9496_s0 + %s8284_s7]]   ;;  %s8288_s7 = smov 30  }
  0x22   :  { %9515 = sst [smem:[#allocation43_spill]] %s8413_s6 }
  0x23   :  { %9516 = sst [smem:[#allocation44_spill]] %s8418_s27 }
  0x24   :  { %s8433_s6 = sld [smem:[%s9496_s0 + %s8281_s15]]   ;;  %s8285_s15 = smov 27  }
  0x25   :  { %s8438_s27 = sld [smem:[%s9496_s0 + %s8282_s22]]   ;;  %s8286_s22 = smov 28  }
  0x26   :  { %9519 = sst [smem:[#allocation47_spill]] %s8443_s25 }
  0x27   :  { %9520 = sst [smem:[#allocation48_spill]] %s8448_s13 }
  0x28   :  { %s8463_s25 = sld [smem:[%s9496_s0 + %s8287_s28]]  }
  0x29   :  { %s8468_s13 = sld [smem:[%s9496_s0 + %s8288_s7]]  }
  0x2a   :  { %9517 = sst [smem:[#allocation45_spill]] %s8433_s6 }
  0x2b   :  { %9518 = sst [smem:[#allocation46_spill]] %s8438_s27 }
  0x2c   :  { %s8453_s6 = sld [smem:[%s9496_s0 + %s8285_s15]]  }
  0x2d   :  { %s8458_s27 = sld [smem:[%s9496_s0 + %s8286_s22]]  }
  0x2e   :  { %67 = vsyncpa [#allocation3], 0 }
  0x2f   :  { %68 = vsyncpa [#allocation6], 0 }
  0x30   :  { %69 = vsyncpa [#allocation9], 0 }
  0x31   :  { %70 = vsyncpa [#allocation12], 0 }
  0x32   :  { %71 = vsyncpa [#allocation15], 0 }
  0x33   :  { %72 = vsyncpa [#allocation18], 0 }
  0x34   :  { %73 = vsyncpa [#allocation21], 0 }
  0x35   :  { %74 = vsyncpa [#allocation4], 0 }
  0x36   :  { %75 = vsyncpa [#allocation25], 0  ;;  %s8289_s15 = smov [#allocation5]   ;;  %s8290_s18 = smov [#allocation8]  }
  0x37   :  { %s98_s16 = sshll.u32 %s8289_s15, 4  ;;  %s122_s22 = sshll.u32 %s8290_s18, 4  ;;  %s99_s16 = int_to_ptr.vmem [resolvable:$true] %s98_s16  ;;  %s123_s22 = int_to_ptr.vmem [resolvable:$true] %s122_s22 }
  0x38   :  { %s7889_s0 = scalar_lea.hbm %s8333_s17, 32 }
  0x39   :  { %p7890_p0 = scmp.ne.s32.totalorder %s8333_s17, %s7889_s0  ;;  %p7893_p1 = scmp.lt.u32.totalorder %s7889_s0, %s8333_s17 }
  0x3b   :  { %p7895_p2 = pnand %p7893_p1, %p7890_p0 }
  0x3d   :  { %7898 = shalt.err (!%p7895_p2)
}
  0x3e   :  { %s7899_s23 = scalar_lea.vmem %s99_s16, 32  ;;  %p7904_p4 = scmp.lt.s32.totalorder %s99_s16, %s99_s16 }
  0x3f   :  { %p7900_p3 = scmp.ne.s32.totalorder %s99_s16, %s7899_s23  ;;  %p7905_p5 = scmp.lt.s32.totalorder %s7899_s23, %s7899_s23 }
  0x41   :  { %p7906_p6 = por %p7905_p5, %p7904_p4 }
  0x43   :  { %p7907_p7 = pnand %p7906_p6, %p7900_p3 }
  0x45   :  { %7910 = shalt.err (!%p7907_p7)
}
  0x46   :  { %101 = dma.hbm_to_vmem [thread:$0]  %s8333_s17, 32, %s99_s16, [#allocation6]  }
  0x47   :  { %s7911_s26 = scalar_lea.hbm %s8348_s29, 16 }
  0x48   :  { %p7912_p8 = scmp.ne.s32.totalorder %s8348_s29, %s7911_s26  ;;  %p7915_p9 = scmp.lt.u32.totalorder %s7911_s26, %s8348_s29 }
  0x4a   :  { %p7917_p10 = pnand %p7915_p9, %p7912_p8 }
  0x4c   :  { %7920 = shalt.err (!%p7917_p10)
}
  0x4d   :  { %s7921_s28 = scalar_lea.vmem %s123_s22, 16  ;;  %s7925_s1 = scalar_lea.vmem %s123_s22, 32 }
  0x4e   :  { %p7922_p11 = scmp.ne.s32.totalorder %s123_s22, %s7921_s28  ;;  %p7926_p12 = scmp.lt.s32.totalorder %s123_s22, %s123_s22 }
  0x4f   :  { %p7927_p13 = scmp.lt.s32.totalorder %s7925_s1, %s7921_s28 }
  0x51   :  { %p7928_p0 = por %p7927_p13, %p7926_p12 }
  0x53   :  { %p7929_p1 = pnand %p7928_p0, %p7922_p11 }
  0x55   :  { %7932 = shalt.err (!%p7929_p1)
}
  0x56   :  { %125 = dma.hbm_to_vmem [thread:$0]  %s8348_s29, 16, %s123_s22, [#allocation9]  }
  0x57   :  { %s8291_s2 = smov [#allocation11]   ;;  %s7933_s7 = scalar_lea.hbm %s8363_s14, 16 }
  0x58   :  { %s146_s17 = sshll.u32 %s8291_s2, 4  ;;  %p7934_p2 = scmp.ne.s32.totalorder %s8363_s14, %s7933_s7  ;;  %s147_s17 = int_to_ptr.vmem [resolvable:$true] %s146_s17 }
  0x59   :  { %p7937_p3 = scmp.lt.u32.totalorder %s7933_s7, %s8363_s14 }
  0x5b   :  { %p7939_p4 = pnand %p7937_p3, %p7934_p2 }
  0x5d   :  { %7942 = shalt.err (!%p7939_p4)
}
  0x5e   :  { %s7943_s10 = scalar_lea.vmem %s147_s17, 16  ;;  %s7947_s11 = scalar_lea.vmem %s147_s17, 32 }
  0x5f   :  { %p7944_p5 = scmp.ne.s32.totalorder %s147_s17, %s7943_s10  ;;  %p7948_p6 = scmp.lt.s32.totalorder %s147_s17, %s147_s17 }
  0x60   :  { %p7949_p7 = scmp.lt.s32.totalorder %s7947_s11, %s7943_s10 }
  0x62   :  { %p7950_p8 = por %p7949_p7, %p7948_p6 }
  0x64   :  { %p7951_p9 = pnand %p7950_p8, %p7944_p5 }
  0x66   :  { %7954 = shalt.err (!%p7951_p9)
}
  0x67   :  { %149 = dma.hbm_to_vmem [thread:$0]  %s8363_s14, 16, %s147_s17, [#allocation12]  }
  0x68   :  { %s8292_s29 = smov [#allocation14]   ;;  %s8293_s16 = smov [#allocation17]  }
  0x69   :  { %s167_s15 = sshll.u32 %s8292_s29, 4  ;;  %s194_s18 = sshll.u32 %s8293_s16, 4  ;;  %s168_s15 = int_to_ptr.vmem [resolvable:$true] %s167_s15  ;;  %s195_s18 = int_to_ptr.vmem [resolvable:$true] %s194_s18 }
  0x6a   :  { %s7955_s22 = scalar_lea.hbm %s8373_s24, 1536 }
  0x6b   :  { %p7956_p10 = scmp.ne.s32.totalorder %s8373_s24, %s7955_s22  ;;  %p7959_p11 = scmp.lt.u32.totalorder %s7955_s22, %s8373_s24 }
  0x6d   :  { %p7961_p12 = pnand %p7959_p11, %p7956_p10 }
  0x6f   :  { %7964 = shalt.err (!%p7961_p12)
}
  0x70   :  { %s7965_s0 = scalar_lea.vmem %s168_s15, 1536  ;;  %p7970_p0 = scmp.lt.s32.totalorder %s168_s15, %s168_s15 }
  0x71   :  { %p7966_p13 = scmp.ne.s32.totalorder %s168_s15, %s7965_s0  ;;  %p7971_p1 = scmp.lt.s32.totalorder %s7965_s0, %s7965_s0 }
  0x73   :  { %p7972_p2 = por %p7971_p1, %p7970_p0 }
  0x75   :  { %p7973_p3 = pnand %p7972_p2, %p7966_p13 }
  0x77   :  { %7976 = shalt.err (!%p7973_p3)
}
  0x78   :  { %s8294_s23 = smov 128   ;;  %s8295_s14 = smov 8  }
  0x79   :  { %173 = dma.hbm_to_vmem [thread:$0]  %s8373_s24, 1536, %s168_s15, [#allocation15], %s8294_s23, %s8294_s23, %s8295_s14  }
  0x7a   :  { %s7977_s26 = scalar_lea.hbm %s8393_s20, 32 }
  0x7b   :  { %p7978_p4 = scmp.ne.s32.totalorder %s8393_s20, %s7977_s26  ;;  %p7981_p5 = scmp.lt.u32.totalorder %s7977_s26, %s8393_s20 }
  0x7d   :  { %p7983_p6 = pnand %p7981_p5, %p7978_p4 }
  0x7f   :  { %7986 = shalt.err (!%p7983_p6)
}
  0x80   :  { %s7987_s28 = scalar_lea.vmem %s195_s18, 32  ;;  %p7992_p8 = scmp.lt.s32.totalorder %s195_s18, %s195_s18 }
  0x81   :  { %p7988_p7 = scmp.ne.s32.totalorder %s195_s18, %s7987_s28  ;;  %p7993_p9 = scmp.lt.s32.totalorder %s7987_s28, %s7987_s28 }
  0x83   :  { %p7994_p10 = por %p7993_p9, %p7992_p8 }
  0x85   :  { %p7995_p11 = pnand %p7994_p10, %p7988_p7 }
  0x87   :  { %7998 = shalt.err (!%p7995_p11)
}
  0x88   :  { %197 = dma.hbm_to_vmem [thread:$0]  %s8393_s20, 32, %s195_s18, [#allocation18]  }
  0x89   :  { %s8296_s1 = smov [#allocation20]   ;;  %s8297_s2 = smov [#allocation2]  }
  0x8a   :  { %s221_s24 = sshll.u32 %s8296_s1, 4  ;;  %s83_s17 = sshll.u32 %s8297_s2, 4  ;;  %s222_s24 = int_to_ptr.vmem [resolvable:$true] %s221_s24  ;;  %s84_s17 = int_to_ptr.vmem [resolvable:$true] %s83_s17 }
  0x8b   :  { %s7999_s7 = scalar_lea.hbm %s8423_s4, 512 }
  0x8c   :  { %p8000_p12 = scmp.ne.s32.totalorder %s8423_s4, %s7999_s7  ;;  %p8003_p13 = scmp.lt.u32.totalorder %s7999_s7, %s8423_s4 }
  0x8e   :  { %p8005_p0 = pnand %p8003_p13, %p8000_p12 }
  0x90   :  { %8008 = shalt.err (!%p8005_p0)
}
  0x91   :  { %s8009_s10 = scalar_lea.vmem %s222_s24, 512  ;;  %p8014_p2 = scmp.lt.s32.totalorder %s222_s24, %s222_s24 }
  0x92   :  { %p8010_p1 = scmp.ne.s32.totalorder %s222_s24, %s8009_s10  ;;  %p8015_p3 = scmp.lt.s32.totalorder %s8009_s10, %s8009_s10 }
  0x94   :  { %p8016_p4 = por %p8015_p3, %p8014_p2 }
  0x96   :  { %p8017_p5 = pnand %p8016_p4, %p8010_p1 }
  0x98   :  { %8020 = shalt.err (!%p8017_p5)
}
  0x99   :  { %227 = dma.hbm_to_vmem [thread:$0]  %s8423_s4, 512, %s222_s24, [#allocation21], %s8294_s23, %s8294_s23, %s8295_s14  }
  0x9a   :  { %s8021_s20 = scalar_lea.hbm %s8323_s9, 1024 }
  0x9b   :  { %p8022_p6 = scmp.ne.s32.totalorder %s8323_s9, %s8021_s20  ;;  %p8025_p7 = scmp.lt.u32.totalorder %s8021_s20, %s8323_s9 }
  0x9d   :  { %p8027_p8 = pnand %p8025_p7, %p8022_p6 }
  0x9f   :  { %8030 = shalt.err (!%p8027_p8)
}
  0xa0   :  { %s8031_s11 = scalar_lea.vmem %s84_s17, 1024  ;;  %p8036_p10 = scmp.lt.s32.totalorder %s84_s17, %s84_s17 }
  0xa1   :  { %p8032_p9 = scmp.ne.s32.totalorder %s84_s17, %s8031_s11  ;;  %p8037_p11 = scmp.lt.s32.totalorder %s8031_s11, %s8031_s11 }
  0xa3   :  { %p8038_p12 = por %p8037_p11, %p8036_p10 }
  0xa5   :  { %p8039_p13 = pnand %p8038_p12, %p8032_p9 }
  0xa7   :  { %8042 = shalt.err (!%p8039_p13)
}
  0xa8   :  { %89 = dma.hbm_to_vmem [thread:$0]  %s8323_s9, 1024, %s84_s17, [#allocation3], %s8294_s23, %s8294_s23, %s8295_s14  }
  0xa9   :  { %s8298_s4 = smov [#allocation7]   ;;  %s8299_s15 = smov [#allocation10]  }
  0xaa   :  { %s107_s29 = sshll.u32 %s8298_s4, 4  ;;  %s131_s16 = sshll.u32 %s8299_s15, 4  ;;  %s108_s29 = int_to_ptr.vmem [resolvable:$true] %s107_s29  ;;  %s132_s16 = int_to_ptr.vmem [resolvable:$true] %s131_s16 }
  0xab   :  { %s8043_s18 = scalar_lea.hbm %s8338_s21, 512 }
  0xac   :  { %p8044_p0 = scmp.ne.s32.totalorder %s8338_s21, %s8043_s18  ;;  %p8047_p1 = scmp.lt.u32.totalorder %s8043_s18, %s8338_s21 }
  0xae   :  { %p8049_p2 = pnand %p8047_p1, %p8044_p0 }
  0xb0   :  { %8052 = shalt.err (!%p8049_p2)
}
  0xb1   :  { %s8053_s22 = scalar_lea.vmem %s108_s29, 512  ;;  %p8058_p4 = scmp.lt.s32.totalorder %s108_s29, %s108_s29 }
  0xb2   :  { %p8054_p3 = scmp.ne.s32.totalorder %s108_s29, %s8053_s22  ;;  %p8059_p5 = scmp.lt.s32.totalorder %s8053_s22, %s8053_s22 }
  0xb4   :  { %p8060_p6 = por %p8059_p5, %p8058_p4 }
  0xb6   :  { %p8061_p7 = pnand %p8060_p6, %p8054_p3 }
  0xb8   :  { %8064 = shalt.err (!%p8061_p7)
}
  0xb9   :  { %113 = dma.hbm_to_vmem [thread:$0]  %s8338_s21, 512, %s108_s29, [#allocation6], %s8294_s23, %s8294_s23, %s8295_s14  }
  0xba   :  { %s8065_s9 = scalar_lea.hbm %s8353_s3, 384 }
  0xbb   :  { %p8066_p8 = scmp.ne.s32.totalorder %s8353_s3, %s8065_s9  ;;  %p8069_p9 = scmp.lt.u32.totalorder %s8065_s9, %s8353_s3 }
  0xbd   :  { %p8071_p10 = pnand %p8069_p9, %p8066_p8 }
  0xbf   :  { %8074 = shalt.err (!%p8071_p10)
}
  0xc0   :  { %s8075_s0 = scalar_lea.vmem %s132_s16, 384  ;;  %p8080_p12 = scmp.lt.s32.totalorder %s132_s16, %s132_s16 }
  0xc1   :  { %p8076_p11 = scmp.ne.s32.totalorder %s132_s16, %s8075_s0  ;;  %p8081_p13 = scmp.lt.s32.totalorder %s8075_s0, %s8075_s0 }
  0xc3   :  { %p8082_p0 = por %p8081_p13, %p8080_p12 }
  0xc5   :  { %p8083_p1 = pnand %p8082_p0, %p8076_p11 }
  0xc7   :  { %8086 = shalt.err (!%p8083_p1)
}
  0xc8   :  { %137 = dma.hbm_to_vmem [thread:$0]  %s8353_s3, 384, %s132_s16, [#allocation9], %s8294_s23, %s8294_s23, %s8295_s14  }
  0xc9   :  { %s8300_s21 = smov [#allocation13]   ;;  %s8301_s28 = smov [#allocation16]  }
  0xca   :  { %s155_s26 = sshll.u32 %s8300_s21, 4  ;;  %s180_s1 = sshll.u32 %s8301_s28, 4  ;;  %s156_s26 = int_to_ptr.vmem [resolvable:$true] %s155_s26  ;;  %s181_s1 = int_to_ptr.vmem [resolvable:$true] %s180_s1 }
  0xcb   :  { %s8087_s24 = scalar_lea.hbm %s8368_s19, 384 }
  0xcc   :  { %p8088_p2 = scmp.ne.s32.totalorder %s8368_s19, %s8087_s24  ;;  %p8091_p3 = scmp.lt.u32.totalorder %s8087_s24, %s8368_s19 }
  0xce   :  { %p8093_p4 = pnand %p8091_p3, %p8088_p2 }
  0xd0   :  { %8096 = shalt.err (!%p8093_p4)
}
  0xd1   :  { %s8097_s2 = scalar_lea.vmem %s156_s26, 384  ;;  %p8102_p6 = scmp.lt.s32.totalorder %s156_s26, %s156_s26 }
  0xd2   :  { %p8098_p5 = scmp.ne.s32.totalorder %s156_s26, %s8097_s2  ;;  %p8103_p7 = scmp.lt.s32.totalorder %s8097_s2, %s8097_s2 }
  0xd4   :  { %p8104_p8 = por %p8103_p7, %p8102_p6 }
  0xd6   :  { %p8105_p9 = pnand %p8104_p8, %p8098_p5 }
  0xd8   :  { %8108 = shalt.err (!%p8105_p9)
}
  0xd9   :  { %161 = dma.hbm_to_vmem [thread:$0]  %s8368_s19, 384, %s156_s26, [#allocation12], %s8294_s23, %s8294_s23, %s8295_s14  }
  0xda   :  { %s8109_s3 = scalar_lea.hbm %s8378_s30, 16 }
  0xdb   :  { %p8110_p10 = scmp.ne.s32.totalorder %s8378_s30, %s8109_s3  ;;  %p8113_p11 = scmp.lt.u32.totalorder %s8109_s3, %s8378_s30 }
  0xdd   :  { %p8115_p12 = pnand %p8113_p11, %p8110_p10 }
  0xdf   :  { %8118 = shalt.err (!%p8115_p12)
}
  0xe0   :  { %s8119_s17 = scalar_lea.vmem %s181_s1, 16  ;;  %s8123_s7 = scalar_lea.vmem %s181_s1, 32 }
  0xe1   :  { %p8120_p13 = scmp.ne.s32.totalorder %s181_s1, %s8119_s17  ;;  %p8124_p0 = scmp.lt.s32.totalorder %s181_s1, %s181_s1 }
  0xe2   :  { %p8125_p1 = scmp.lt.s32.totalorder %s8123_s7, %s8119_s17 }
  0xe4   :  { %p8126_p2 = por %p8125_p1, %p8124_p0 }
  0xe6   :  { %p8127_p3 = pnand %p8126_p2, %p8120_p13 }
  0xe8   :  { %8130 = shalt.err (!%p8127_p3)
}
  0xe9   :  { %183 = dma.hbm_to_vmem [thread:$0]  %s8378_s30, 16, %s181_s1, [#allocation15]  }
  0xea   :  { %s8302_s19 = smov [#allocation19]   ;;  %s8303_s20 = smov [#allocation22]  }
  0xeb   :  { %s208_s10 = sshll.u32 %s8302_s19, 4  ;;  %s233_s11 = sshll.u32 %s8303_s20, 4  ;;  %s209_s10 = int_to_ptr.vmem [resolvable:$true] %s208_s10  ;;  %s234_s11 = int_to_ptr.vmem [resolvable:$true] %s233_s11 }
  0xec   :  { %s8131_s4 = scalar_lea.hbm %s8408_s12, 16 }
  0xed   :  { %p8132_p4 = scmp.ne.s32.totalorder %s8408_s12, %s8131_s4  ;;  %p8135_p5 = scmp.lt.u32.totalorder %s8131_s4, %s8408_s12 }
  0xef   :  { %p8137_p6 = pnand %p8135_p5, %p8132_p4 }
  0xf1   :  { %8140 = shalt.err (!%p8137_p6)
}
  0xf2   :  { %s8141_s29 = scalar_lea.vmem %s209_s10, 16  ;;  %s8145_s15 = scalar_lea.vmem %s209_s10, 32 }
  0xf3   :  { %p8142_p7 = scmp.ne.s32.totalorder %s209_s10, %s8141_s29  ;;  %p8146_p8 = scmp.lt.s32.totalorder %s209_s10, %s209_s10 }
  0xf4   :  { %p8147_p9 = scmp.lt.s32.totalorder %s8145_s15, %s8141_s29 }
  0xf6   :  { %p8148_p10 = por %p8147_p9, %p8146_p8 }
  0xf8   :  { %p8149_p11 = pnand %p8148_p10, %p8142_p7 }
  0xfa   :  { %8152 = shalt.err (!%p8149_p11)
}
  0xfb   :  { %211 = dma.hbm_to_vmem [thread:$0]  %s8408_s12, 16, %s209_s10, [#allocation18]  }
  0xfc   :  { %s8153_s30 = scalar_lea.hbm %s8428_s8, 512 }
  0xfd   :  { %p8154_p12 = scmp.ne.s32.totalorder %s8428_s8, %s8153_s30  ;;  %p8157_p13 = scmp.lt.u32.totalorder %s8153_s30, %s8428_s8 }
  0xff   :  { %p8159_p0 = pnand %p8157_p13, %p8154_p12 }
 0x101   :  { %8162 = shalt.err (!%p8159_p0)
}
 0x102   :  { %s8163_s16 = scalar_lea.vmem %s234_s11, 512  ;;  %p8168_p2 = scmp.lt.s32.totalorder %s234_s11, %s234_s11 }
 0x103   :  { %p8164_p1 = scmp.ne.s32.totalorder %s234_s11, %s8163_s16  ;;  %p8169_p3 = scmp.lt.s32.totalorder %s8163_s16, %s8163_s16 }
 0x105   :  { %p8170_p4 = por %p8169_p3, %p8168_p2 }
 0x107   :  { %p8171_p5 = pnand %p8170_p4, %p8164_p1 }
 0x109   :  { %8174 = shalt.err (!%p8171_p5)
}
 0x10a   :  { %239 = dma.hbm_to_vmem [thread:$0]  %s8428_s8, 512, %s234_s11, [#allocation21], %s8294_s23, %s8294_s23, %s8295_s14  }
 0x10b   :  { %8241 = dma.done.wait [#allocation3], 1024  }
 0x10c   :  { %8242 = vsyncadd [#allocation3], 4294966272 }
 0x10d   :  { %8243 = dma.done.wait [#allocation6], 544  }
 0x10e   :  { %8244 = vsyncadd [#allocation6], 4294966752 }
 0x10f   :  { %8245 = dma.done.wait [#allocation9], 400  }
 0x110   :  { %8246 = vsyncadd [#allocation9], 4294966896 }
 0x111   :  { %8247 = dma.done.wait [#allocation12], 400  }
 0x112   :  { %8248 = vsyncadd [#allocation12], 4294966896 }
 0x113   :  { %8249 = dma.done.wait [#allocation15], 1552  }
 0x114   :  { %8250 = vsyncadd [#allocation15], 4294965744 }
 0x115   :  { %8251 = dma.done.wait [#allocation18], 48  }
 0x116   :  { %8252 = vsyncadd [#allocation18], 4294967248 }
 0x117   :  { %8253 = dma.done.wait [#allocation21], 1024  }
 0x118   :  { %8254 = vsyncadd [#allocation21], 4294966272  ;;  %s9521_s12 = sld [smem:[#allocation36_spill]]  ;;  %vm291_vm0 = vcmask 261120   ;;  %v285_v0 = vld [vmem:[%s8318_s5] sm:$0xff]  ;;  %v286_v1 = vld [vmem:[%s8318_s5 + $0x8] sm:$0xff] }
 0x119   :  { %v287_v2 = vld [vmem:[%s8318_s5 + $0x10] sm:$0xff]  ;;  %v7176_v3 = vpack.c.bf16 %v286_v1, %v285_v0  ;;  %v288_v4 = vld [vmem:[%s8318_s5 + $0x18] sm:$0xff]  ;;  %v289_v5 = vld [vmem:[#allocation2] sm:$0xff]  ;;  %v8304_v41 = vmov 0.0   ;;  %vm490_vm1 = vcmask 523264   ;;  %s9522_s5 = sld [smem:[#allocation37_spill]] }
 0x11a   :  { %v7180_v6 = vpack.c.bf16 %v288_v4, %v287_v2  ;;  %6787 = vmatprep.mubr.msk.f32.mxu1 %vm291_vm0, %v289_v5  ;;  %v290_v18 = vld [vmem:[#allocation2 + $0x8] sm:$0xff]  ;;  %v390_v19 = vld [vmem:[#allocation2 + $0x10] sm:$0xff]  ;;  %v391_v21 = vld [vmem:[#allocation2 + $0x18] sm:$0xff]  ;;  %561 = vmatprep.mubr.f32.mxu0 %v8304_v41  ;;  %vm1054_vm2 = vcmask 130048   ;;  %s9523_s8 = sld [smem:[#allocation38_spill]]  ;;  %vm8305_vm3 = vmmov 0  }
 0x11b   :  { %7177 = vmatprep.subr.bf16.mxu1 %v7176_v3  ;;  %v658_v22 = vld [vmem:[#allocation2 + $0x20] sm:$0xff]  ;;  %v659_v23 = vld [vmem:[#allocation2 + $0x28] sm:$0xff]  ;;  %v846_v24 = vld [vmem:[#allocation2 + $0x30] sm:$0xff]  ;;  %vm1780_vm4 = vcmask 64512   ;;  %s9524_s18 = sld [smem:[#allocation44_spill]]  ;;  %s9525_s22 = sld [smem:[#allocation43_spill]] }
 0x11c   :  { %7179 = vmatpush3.bf16.msra.mxu1 %v7176_v3  ;;  %v847_v25 = vld [vmem:[#allocation2 + $0x38] sm:$0xff]  ;;  %s9526_s9 = sld [smem:[#allocation46_spill]]  ;;  %s9527_s0 = sld [smem:[#allocation47_spill]]  ;;  %vm5777_vm13 = vcmask 7168  }
 0x11d   :  { %7181 = vmatprep.subr.bf16.mxu1 %v7180_v6  ;;  %s9528_s21 = sld [smem:[#allocation45_spill]]  ;;  %s9529_s3 = sld [smem:[#allocation39_spill]] }
 0x11e   :  { %v5884_v7 = vld [vmem:[%s9521_s12 + $0x88] sm:$0xff]  ;;  %v5886_v8 = vld [vmem:[%s9521_s12 + $0x98] sm:$0xff]  ;;  %v5883_v9 = vld [vmem:[%s9521_s12 + $0x80] sm:$0xff]  ;;  %s9530_s17 = sld [smem:[#allocation40_spill]]  ;;  %s9531_s7 = sld [smem:[#allocation42_spill]] }
 0x11f   :  { %v7192_v10 = vpack.c.bf16 %v5886_v8, %v5884_v7  ;;  %v5885_v11 = vld [vmem:[%s9521_s12 + $0x90] sm:$0xff]  ;;  %v5888_v12 = vld [vmem:[%s9521_s12 + $0xa8] sm:$0xff]  ;;  %v5890_v13 = vld [vmem:[%s9521_s12 + $0xb8] sm:$0xff]  ;;  %s9532_s19 = sld [smem:[#allocation41_spill]]  ;;  %s8307_s10 = smov [#allocation24]  }
 0x120   :  { %v7194_v14 = vpack.c.bf16 %v5885_v11, %v5883_v9  ;;  %v7196_v15 = vpack.c.bf16 %v5890_v13, %v5888_v12  ;;  %v5887_v16 = vld [vmem:[%s9521_s12 + $0xa0] sm:$0xff]  ;;  %v5889_v17 = vld [vmem:[%s9521_s12 + $0xb0] sm:$0xff]  ;;  %7183 = vmatpush3.bf16.msra.mxu1 %v7180_v6  ;;  %v5892_v26 = vld [vmem:[%s9521_s12 + $0xc8] sm:$0xff]  ;;  %s5813_s20 = sshll.u32 %s8307_s10, 4  ;;  %s8308_s11 = smov [#allocation23]   ;;  %s5814_s20 = int_to_ptr.vmem [resolvable:$true] %s5813_s20 }
 0x121   :  { %7193 = vmatprep.subr.bf16.mxu0 %v7192_v10  ;;  %7185 = vmatprep.subr.bf16.mxu1 %v7176_v3  ;;  %v7198_v20 = vpack.c.bf16 %v5889_v17, %v5887_v16  ;;  %v5894_v27 = vld [vmem:[%s9521_s12 + $0xd8] sm:$0xff]  ;;  %v5891_v29 = vld [vmem:[%s9521_s12 + $0xc0] sm:$0xff]  ;;  %v5893_v30 = vld [vmem:[%s9521_s12 + $0xd0] sm:$0xff]  ;;  %s5800_s4 = sshll.u32 %s8308_s11, 4  ;;  %s8175_s29 = scalar_lea.vmem %s5814_s20, 16  ;;  %s5801_s4 = int_to_ptr.vmem [resolvable:$true] %s5800_s4 }
 0x122   :  { %7195 = vmatpush1.bf16.msra.mxu0 %v7194_v14  ;;  %v7200_v28 = vpack.c.bf16 %v5894_v27, %v5892_v26  ;;  %v7202_v31 = vpack.c.bf16 %v5893_v30, %v5891_v29  ;;  %v5896_v32 = vld [vmem:[%s9521_s12 + $0xe8] sm:$0xff]  ;;  %v5898_v33 = vld [vmem:[%s9521_s12 + $0xf8] sm:$0xff]  ;;  %v5895_v34 = vld [vmem:[%s9521_s12 + $0xe0] sm:$0xff]  ;;  %p8176_p6 = scmp.ne.s32.totalorder %s5814_s20, %s8175_s29  ;;  %s8179_s15 = scalar_lea.vmem %s5814_s20, 32 }
 0x123   :  { %7197 = vmatprep.subr.bf16.mxu0 %v7196_v15  ;;  %6788 = vmatmul.mubr.msk.f32.vlgmr.msra.gmra.mrb[0].mxu1 %vm291_vm0, %v290_v18  ;;  %v7204_v35 = vpack.c.bf16 %v5898_v33, %v5896_v32  ;;  %v5897_v36 = vld [vmem:[%s9521_s12 + $0xf0] sm:$0xff]  ;;  %v374_v38 = vld [vmem:[%s9521_s12 + $0x8] sm:$0xff]  ;;  %v376_v39 = vld [vmem:[%s9521_s12 + $0x18] sm:$0xff]  ;;  %p8180_p7 = scmp.lt.s32.totalorder %s5814_s20, %s5814_s20  ;;  %p8181_p8 = scmp.lt.s32.totalorder %s8179_s15, %s8175_s29 }
 0x124   :  { %7187 = vmatpush3.bf16.msra.mxu1 %v7176_v3  ;;  %6798 = vmatprep.mubr.msk.f32.mxu1 %vm291_vm0, %v390_v19  ;;  %v7206_v37 = vpack.c.bf16 %v5897_v36, %v5895_v34  ;;  %v7208_v40 = vpack.c.bf16 %v376_v39, %v374_v38  ;;  %v373_v44 = vld [vmem:[%s9521_s12] sm:$0xff]  ;;  %v375_v45 = vld [vmem:[%s9521_s12 + $0x10] sm:$0xff]  ;;  %v378_v46 = vld [vmem:[%s9521_s12 + $0x28] sm:$0xff] }
 0x125   :  { %7189 = vmatprep.subr.bf16.mxu1 %v7180_v6  ;;  %v380_v47 = vld [vmem:[%s9521_s12 + $0x38] sm:$0xff]  ;;  %v7210_v48 = vpack.c.bf16 %v375_v45, %v373_v44  ;;  %v377_v51 = vld [vmem:[%s9521_s12 + $0x20] sm:$0xff]  ;;  %v379_v52 = vld [vmem:[%s9521_s12 + $0x30] sm:$0xff]  ;;  %p8182_p9 = por %p8181_p8, %p8180_p7 }
 0x126   :  { %7199 = vmatpush1.bf16.msra.mxu0 %v7198_v20  ;;  %v7212_v50 = vpack.c.bf16 %v380_v47, %v378_v46  ;;  %v382_v54 = vld [vmem:[%s9521_s12 + $0x48] sm:$0xff]  ;;  %v384_v55 = vld [vmem:[%s9521_s12 + $0x58] sm:$0xff]  ;;  %v7214_v56 = vpack.c.bf16 %v379_v52, %v377_v51  ;;  %v381_v58 = vld [vmem:[%s9521_s12 + $0x40] sm:$0xff] }
 0x127   :  { %7201 = vmatprep.subr.bf16.mxu0 %v7200_v28  ;;  %v7216_v57 = vpack.c.bf16 %v384_v55, %v382_v54  ;;  %v383_v59 = vld [vmem:[%s9521_s12 + $0x50] sm:$0xff]  ;;  %v386_v60 = vld [vmem:[%s9521_s12 + $0x68] sm:$0xff]  ;;  %v388_v61 = vld [vmem:[%s9521_s12 + $0x78] sm:$0xff]  ;;  %p8183_p10 = pnand %p8182_p9, %p8176_p6 }
 0x128   :  { %7191 = vmatpush3.bf16.msra.mxu1 %v7180_v6  ;;  %v7218_v62 = vpack.c.bf16 %v383_v59, %v381_v58  ;;  %v7220_v63 = vpack.c.bf16 %v388_v61, %v386_v60  ;;  %v385_v0 = vld [vmem:[%s9521_s12 + $0x60] sm:$0xff]  ;;  %v387_v1 = vld [vmem:[%s9521_s12 + $0x70] sm:$0xff]  ;;  %v5908_v4 = vld [vmem:[%s9521_s12 + $0x118] sm:$0xff] }
 0x129   :  { %7225 = vmatprep.subr.bf16.mxu1 %v7176_v3  ;;  %v5905_v8 = vld [vmem:[%s9521_s12 + $0x100] sm:$0xff]  ;;  %v5907_v9 = vld [vmem:[%s9521_s12 + $0x110] sm:$0xff]  ;;  %v5910_v10 = vld [vmem:[%s9521_s12 + $0x128] sm:$0xff] }
 0x12a   :  { %7203 = vmatpush1.bf16.msra.mxu0 %v7202_v31  ;;  %v5912_v11 = vld [vmem:[%s9521_s12 + $0x138] sm:$0xff]  ;;  %v7234_v12 = vpack.c.bf16 %v5907_v9, %v5905_v8  ;;  %v5909_v14 = vld [vmem:[%s9521_s12 + $0x120] sm:$0xff]  ;;  %v5911_v15 = vld [vmem:[%s9521_s12 + $0x130] sm:$0xff] }
 0x12b   :  { %6799 = vmatmul.mubr.msk.f32.vlgmr.msra.gmra.mrb[2].mxu1 %vm291_vm0, %v391_v21  ;;  %7205 = vmatprep.subr.bf16.mxu0 %v7204_v35  ;;  %v7236_v13 = vpack.c.bf16 %v5912_v11, %v5910_v10  ;;  %v5914_v17 = vld [vmem:[%s9521_s12 + $0x148] sm:$0xff]  ;;  %v5916_v18 = vld [vmem:[%s9521_s12 + $0x158] sm:$0xff]  ;;  %v7238_v20 = vpack.c.bf16 %v5911_v15, %v5909_v14  ;;  %v5917_v28 = vld [vmem:[%s9521_s12 + $0x160] sm:$0xff] }
 0x12c   :  { %7227 = vmatpush3.bf16.msra.mxu1 %v7176_v3  ;;  %6809 = vmatprep.mubr.msk.f32.mxu1 %vm291_vm0, %v658_v22  ;;  %v7240_v21 = vpack.c.bf16 %v5916_v18, %v5914_v17  ;;  %v5913_v22 = vld [vmem:[%s9521_s12 + $0x140] sm:$0xff]  ;;  %v5919_v29 = vld [vmem:[%s9521_s12 + $0x170] sm:$0xff]  ;;  %v5926_v30 = vld [vmem:[%s9521_s12 + $0x188] sm:$0xff] }
 0x12d   :  { %7229 = vmatprep.subr.bf16.mxu1 %v7180_v6  ;;  %v5928_v31 = vld [vmem:[%s9521_s12 + $0x198] sm:$0xff]  ;;  %v7246_v32 = vpack.c.bf16 %v5919_v29, %v5917_v28  ;;  %v5925_v34 = vld [vmem:[%s9521_s12 + $0x180] sm:$0xff]  ;;  %v5927_v35 = vld [vmem:[%s9521_s12 + $0x190] sm:$0xff] }
 0x12e   :  { %7207 = vmatpush1.bf16.msra.mxu0 %v7206_v37  ;;  %v7256_v33 = vpack.c.bf16 %v5928_v31, %v5926_v30  ;;  %v5930_v36 = vld [vmem:[%s9521_s12 + $0x1a8] sm:$0xff]  ;;  %v5932_v37 = vld [vmem:[%s9521_s12 + $0x1b8] sm:$0xff]  ;;  %v7258_v38 = vpack.c.bf16 %v5927_v35, %v5925_v34  ;;  %v5933_v47 = vld [vmem:[%s9521_s12 + $0x1c0] sm:$0xff] }
 0x12f   :  { %7209 = vmatprep.subr.bf16.mxu0 %v7208_v40  ;;  %v7260_v39 = vpack.c.bf16 %v5932_v37, %v5930_v36  ;;  %v5929_v40 = vld [vmem:[%s9521_s12 + $0x1a0] sm:$0xff]  ;;  %v5936_v44 = vld [vmem:[%s9521_s12 + $0x1d8] sm:$0xff]  ;;  %v5939_v54 = vld [vmem:[%s9521_s12 + $0x1f0] sm:$0xff] }
 0x130   :  { %7231 = vmatpush3.bf16.msra.mxu1 %v7180_v6  ;;  %v1033_v59 = vld [vmem:[#allocation5] sm:$0x3]  ;;  %v5962_v14 = vld [vmem:[%s9522_s5 + $0x188] sm:$0xff]  ;;  %v5968_v34 = vld [vmem:[%s9522_s5 + $0x1b8] sm:$0xff] }
 0x131   :  { %7249 = vmatprep.subr.bf16.mxu1 %v7176_v3  ;;  %v1053_v15 = vld [vmem:[#allocation7] sm:$0xff]  ;;  %v5951_v37 = vld [vmem:[%s9522_s5 + $0x130] sm:$0xff] }
 0x132   :  { %v5945_v18 = vld [vmem:[%s9522_s5 + $0x100] sm:$0xff]  ;;  %v5966_v28 = vld [vmem:[%s9522_s5 + $0x1a8] sm:$0xff] }
 0x133   :  { %6810 = vmatmul.mubr.msk.f32.vlgmr.msra.gmra.mrb[4].mxu1 %vm291_vm0, %v659_v23  ;;  %v5915_v23 = vld [vmem:[%s9521_s12 + $0x150] sm:$0xff]  ;;  %v5949_v31 = vld [vmem:[%s9522_s5 + $0x120] sm:$0xff] }
 0x134   :  { %7251 = vmatpush3.bf16.msra.mxu1 %v7176_v3  ;;  %6820 = vmatprep.mubr.msk.f32.mxu1 %vm291_vm0, %v846_v24  ;;  %v5906_v3 = vld [vmem:[%s9521_s12 + $0x108] sm:$0xff]  ;;  %v7242_v26 = vpack.c.bf16 %v5915_v23, %v5913_v22 }
 0x135   :  { %7253 = vmatprep.subr.bf16.mxu1 %v7180_v6  ;;  %v7232_v7 = vpack.c.bf16 %v5908_v4, %v5906_v3  ;;  %v5918_v24 = vld [vmem:[%s9521_s12 + $0x168] sm:$0xff] }
 0x136   :  { %v1162_v22 = vld [vmem:[#allocation7 + $0x8] sm:$0xff] }
 0x138   :  { %7255 = vmatpush3.bf16.msra.mxu1 %v7180_v6  ;;  %v7222_v6 = vpack.c.bf16 %v387_v1, %v385_v0 }
 0x13b   :  { %6821 = vmatmul.mubr.msk.f32.vlgmr.msra.gmra.mrb[6].mxu1 %vm291_vm0, %v847_v25  ;;  %v5920_v25 = vld [vmem:[%s9521_s12 + $0x178] sm:$0xff] }
 0x13c   :  { %1122 = vmatprep.mubr.f32.mxu1 %v8304_v41  ;;  %v7244_v27 = vpack.c.bf16 %v5920_v25, %v5918_v24  ;;  %v5947_v25 = vld [vmem:[%s9522_s5 + $0x110] sm:$0xff] }
 0x1f6   :  { %v8575_v42 = vpop.f32.mrb[0].mxu1 }
 0x1f7   :  { %v364_v43 = vpop.f32.mrb[1].mxu1 }
 0x1fe   :  { %v6800_v49 = vpop.f32.mrb[2].mxu1 }
 0x1ff   :  { %v464_v53 = vpop.f32.mrb[3].mxu1 }
 0x200   :  { %5899 = vmatmul.mubr.msk.f32.vlgmr.msra.gmra.mrb[0].mxu0 %vm490_vm1, %v464_v53  ;;  %v5937_v53 = vld [vmem:[%s9521_s12 + $0x1e0] sm:$0xff] }
 0x201   :  { %7211 = vmatpush1.bf16.msra.mxu0 %v7210_v48  ;;  %567 = vmatprep.mubr.f32.mxu0 %v8304_v41  ;;  %v5935_v48 = vld [vmem:[%s9521_s12 + $0x1d0] sm:$0xff]  ;;  %v7270_v55 = vpack.c.bf16 %v5939_v54, %v5937_v53  ;;  %v5974_v53 = vld [vmem:[%s9522_s5 + $0x1e8] sm:$0xff] }
 0x202   :  { %7213 = vmatprep.subr.bf16.mxu0 %v7212_v50  ;;  %v5940_v50 = vld [vmem:[%s9521_s12 + $0x1f8] sm:$0xff]  ;;  %v7266_v51 = vpack.c.bf16 %v5935_v48, %v5933_v47 }
 0x203   :  { %v5972_v47 = vld [vmem:[%s9522_s5 + $0x1d8] sm:$0xff] }
 0x204   :  { %5900 = vmatmul.mubr.msk.f32.gmra.mrb[2].mxu0 %vm490_vm1, %v6800_v49  ;;  %v5938_v49 = vld [vmem:[%s9521_s12 + $0x1e8] sm:$0xff] }
 0x205   :  { %7215 = vmatpush1.bf16.msra.mxu0 %v7214_v56  ;;  %644 = vmatprep.mubr.f32.mxu0 %v8304_v41  ;;  %v7268_v52 = vpack.c.bf16 %v5940_v50, %v5938_v49  ;;  %v1035_v56 = vlaneseq  ;;  %v5955_v50 = vld [vmem:[%s9522_s5 + $0x150] sm:$0xff] }
 0x206   :  { %7217 = vmatprep.subr.bf16.mxu0 %v7216_v57  ;;  %v8595_v2 = vpop.f32.mrb[4].mxu1 }
 0x207   :  { %v732_v5 = vpop.f32.mrb[5].mxu1  ;;  %v8647_v57 = vshrl.u32 %v1035_v56, 7 }
 0x209   :  { %7219 = vmatpush1.bf16.msra.mxu0 %v7218_v62  ;;  %v1037_v58 = vsub.s32 0, %v8647_v57  ;;  %v1041_v60 = vsub.s32 1, %v8647_v57  ;;  %v6254_v57 = vld [vmem:[%s9531_s7 + $0x180] sm:$0xff] }
 0x20a   :  { %7221 = vmatprep.subr.bf16.mxu0 %v7220_v63 }
 0x20b   :  { %v1038_v61 = vrot.slane %v1033_v59, %v1037_v58  ;;  %v1042_v63 = vrot.slane %v1033_v59, %v1041_v60  ;;  %v5957_v59 = vld [vmem:[%s9522_s5 + $0x160] sm:$0xff] }
 0x20d   :  { %7223 = vmatpush1.bf16.msra.mxu0 %v7222_v6 }
 0x20e   :  { %7233 = vmatprep.subr.bf16.mxu0 %v7232_v7  ;;  %v8605_v16 = vpop.f32.mrb[6].mxu1 }
 0x20f   :  { %v920_v19 = vpop.f32.mrb[7].mxu1 }
 0x210   :  { %5901 = vmatmul.mubr.msk.f32.vlgmr.msra.gmra.mrb[0].mxu0 %vm490_vm1, %v364_v43  ;;  %v5934_v43 = vld [vmem:[%s9521_s12 + $0x1c8] sm:$0xff] }
 0x211   :  { %7235 = vmatpush1.bf16.msra.mxu0 %v7234_v12  ;;  %650 = vmatprep.mubr.f32.mxu0 %v8304_v41  ;;  %v7264_v46 = vpack.c.bf16 %v5936_v44, %v5934_v43  ;;  %v5953_v44 = vld [vmem:[%s9522_s5 + $0x140] sm:$0xff] }
 0x212   :  { %7237 = vmatprep.subr.bf16.mxu0 %v7236_v13  ;;  %v5961_v13 = vld [vmem:[%s9522_s5 + $0x180] sm:$0xff] }
 0x213   :  { %v7280_v17 = vpack.c.bf16 %v5962_v14, %v5961_v13  ;;  %v5978_v13 = vld [vmem:[%s9522_s5 + $0x200] sm:$0xff]  ;;  %v5979_v14 = vld [vmem:[%s9522_s5 + $0x208] sm:$0xff] }
 0x214   :  { %5902 = vmatmul.mubr.msk.f32.gmra.mrb[2].mxu0 %vm490_vm1, %v8575_v42  ;;  %v5931_v42 = vld [vmem:[%s9521_s12 + $0x1b0] sm:$0xff] }
 0x215   :  { %7239 = vmatpush1.bf16.msra.mxu0 %v7238_v20  ;;  %828 = vmatprep.mubr.f32.mxu0 %v8304_v41  ;;  %v7262_v45 = vpack.c.bf16 %v5931_v42, %v5929_v40  ;;  %v5963_v20 = vld [vmem:[%s9522_s5 + $0x190] sm:$0xff]  ;;  %v5970_v40 = vld [vmem:[%s9522_s5 + $0x1c8] sm:$0xff] }
 0x216   :  { %7241 = vmatprep.subr.bf16.mxu0 %v7240_v21  ;;  %v5964_v21 = vld [vmem:[%s9522_s5 + $0x198] sm:$0xff] }
 0x217   :  { %v7284_v24 = vpack.c.bf16 %v5964_v21, %v5963_v20  ;;  %v5981_v20 = vld [vmem:[%s9522_s5 + $0x218] sm:$0xff] }
 0x219   :  { %7243 = vmatpush1.bf16.msra.mxu0 %v7242_v26  ;;  %v5948_v26 = vld [vmem:[%s9522_s5 + $0x118] sm:$0xff] }
 0x21a   :  { %7245 = vmatprep.subr.bf16.mxu0 %v7244_v27  ;;  %v5965_v27 = vld [vmem:[%s9522_s5 + $0x1a0] sm:$0xff]  ;;  %v7286_v29 = vpack.c.bf16 %v5948_v26, %v5947_v25  ;;  %v5983_v26 = vld [vmem:[%s9522_s5 + $0x228] sm:$0xff] }
 0x21b   :  { %v7288_v30 = vpack.c.bf16 %v5966_v28, %v5965_v27  ;;  %v5982_v25 = vld [vmem:[%s9522_s5 + $0x220] sm:$0xff]  ;;  %v6000_v28 = vld [vmem:[%s9522_s5 + $0x2b0] sm:$0xff] }
 0x21c   :  { %v7358_v27 = vpack.c.bf16 %v5983_v26, %v5982_v25  ;;  %v1135_v25 = vld [vmem:[%s9522_s5 + $0x30] sm:$0xff]  ;;  %v1136_v26 = vld [vmem:[%s9522_s5 + $0x38] sm:$0xff] }
 0x21d   :  { %7247 = vmatpush1.bf16.msra.mxu0 %v7246_v32  ;;  %v5950_v32 = vld [vmem:[%s9522_s5 + $0x128] sm:$0xff] }
 0x21e   :  { %7257 = vmatprep.subr.bf16.mxu0 %v7256_v33  ;;  %v5967_v33 = vld [vmem:[%s9522_s5 + $0x1b0] sm:$0xff]  ;;  %v7290_v35 = vpack.c.bf16 %v5950_v32, %v5949_v31  ;;  %v5985_v32 = vld [vmem:[%s9522_s5 + $0x238] sm:$0xff] }
 0x21f   :  { %v7292_v36 = vpack.c.bf16 %v5968_v34, %v5967_v33  ;;  %v5984_v31 = vld [vmem:[%s9522_s5 + $0x230] sm:$0xff]  ;;  %v6002_v34 = vld [vmem:[%s9522_s5 + $0x2c0] sm:$0xff] }
 0x220   :  { %5921 = vmatmul.mubr.msk.f32.vlgmr.msra.gmra.mrb[0].mxu0 %vm490_vm1, %v732_v5  ;;  %v7362_v33 = vpack.c.bf16 %v5985_v32, %v5984_v31  ;;  %v1137_v31 = vld [vmem:[%s9522_s5 + $0x40] sm:$0xff]  ;;  %v1138_v32 = vld [vmem:[%s9522_s5 + $0x48] sm:$0xff] }
 0x221   :  { %7259 = vmatpush1.bf16.msra.mxu0 %v7258_v38  ;;  %834 = vmatprep.mubr.f32.mxu0 %v8304_v41  ;;  %v5952_v38 = vld [vmem:[%s9522_s5 + $0x138] sm:$0xff] }
 0x222   :  { %7261 = vmatprep.subr.bf16.mxu0 %v7260_v39  ;;  %v5969_v39 = vld [vmem:[%s9522_s5 + $0x1c0] sm:$0xff]  ;;  %v7294_v42 = vpack.c.bf16 %v5952_v38, %v5951_v37  ;;  %v5987_v38 = vld [vmem:[%s9522_s5 + $0x248] sm:$0xff] }
 0x223   :  { %v7296_v43 = vpack.c.bf16 %v5970_v40, %v5969_v39  ;;  %v5986_v37 = vld [vmem:[%s9522_s5 + $0x240] sm:$0xff]  ;;  %v6004_v40 = vld [vmem:[%s9522_s5 + $0x2d0] sm:$0xff] }
 0x224   :  { %5922 = vmatmul.mubr.msk.f32.gmra.mrb[2].mxu0 %vm490_vm1, %v8595_v2  ;;  %v7366_v39 = vpack.c.bf16 %v5987_v38, %v5986_v37  ;;  %v1139_v37 = vld [vmem:[%s9522_s5 + $0x50] sm:$0xff]  ;;  %v1140_v38 = vld [vmem:[%s9522_s5 + $0x58] sm:$0xff] }
 0x225   :  { %7263 = vmatpush1.bf16.msra.mxu0 %v7262_v45  ;;  %1016 = vmatprep.mubr.f32.mxu0 %v8304_v41  ;;  %v5954_v45 = vld [vmem:[%s9522_s5 + $0x148] sm:$0xff] }
 0x226   :  { %7265 = vmatprep.subr.bf16.mxu0 %v7264_v46  ;;  %v5971_v46 = vld [vmem:[%s9522_s5 + $0x1d0] sm:$0xff]  ;;  %v7298_v48 = vpack.c.bf16 %v5954_v45, %v5953_v44  ;;  %v5989_v45 = vld [vmem:[%s9522_s5 + $0x258] sm:$0xff] }
 0x227   :  { %v7300_v49 = vpack.c.bf16 %v5972_v47, %v5971_v46  ;;  %v5988_v44 = vld [vmem:[%s9522_s5 + $0x250] sm:$0xff]  ;;  %v6006_v47 = vld [vmem:[%s9522_s5 + $0x2e0] sm:$0xff] }
 0x228   :  { %v7370_v46 = vpack.c.bf16 %v5989_v45, %v5988_v44  ;;  %v1141_v44 = vld [vmem:[%s9522_s5 + $0x60] sm:$0xff]  ;;  %v1142_v45 = vld [vmem:[%s9522_s5 + $0x68] sm:$0xff] }
 0x229   :  { %7267 = vmatpush1.bf16.msra.mxu0 %v7266_v51  ;;  %v5956_v51 = vld [vmem:[%s9522_s5 + $0x158] sm:$0xff] }
 0x22a   :  { %7269 = vmatprep.subr.bf16.mxu0 %v7268_v52  ;;  %v5973_v52 = vld [vmem:[%s9522_s5 + $0x1e0] sm:$0xff]  ;;  %v7302_v54 = vpack.c.bf16 %v5956_v51, %v5955_v50  ;;  %v5991_v51 = vld [vmem:[%s9522_s5 + $0x268] sm:$0xff] }
 0x22b   :  { %v5990_v50 = vld [vmem:[%s9522_s5 + $0x260] sm:$0xff] }
 0x22d   :  { %7271 = vmatpush1.bf16.msra.mxu0 %v7270_v55  ;;  %v7304_v55 = vpack.c.bf16 %v5974_v53, %v5973_v52  ;;  %v7374_v52 = vpack.c.bf16 %v5991_v51, %v5990_v50  ;;  %v6008_v53 = vld [vmem:[%s9522_s5 + $0x2f0] sm:$0xff]  ;;  %v1144_v51 = vld [vmem:[%s9522_s5 + $0x78] sm:$0xff] }
 0x22e   :  { %v1143_v50 = vld [vmem:[%s9522_s5 + $0x70] sm:$0xff] }
 0x230   :  { %5941 = vmatmul.mubr.msk.f32.vlgmr.msra.gmra.mrb[0].mxu0 %vm490_vm1, %v920_v19  ;;  %v5946_v19 = vld [vmem:[%s9522_s5 + $0x108] sm:$0xff] }
 0x231   :  { %1022 = vmatprep.mubr.f32.mxu0 %v8304_v41  ;;  %v7282_v23 = vpack.c.bf16 %v5946_v19, %v5945_v18  ;;  %v5980_v19 = vld [vmem:[%s9522_s5 + $0x210] sm:$0xff] }
 0x232   :  { %v7354_v21 = vpack.c.bf16 %v5981_v20, %v5980_v19  ;;  %v1133_v19 = vld [vmem:[%s9522_s5 + $0x20] sm:$0xff]  ;;  %v1134_v20 = vld [vmem:[%s9522_s5 + $0x28] sm:$0xff] }
 0x234   :  { %5942 = vmatmul.mubr.msk.f32.gmra.mrb[2].mxu0 %vm490_vm1, %v8605_v16  ;;  %v1411_v16 = vld [vmem:[#allocation7 + $0x10] sm:$0xff] }
 0x235   :  { %1479 = vmatprep.mubr.f32.mxu0 %v8304_v41 }
 0x303   :  { %v1018_v62 = vpop.f32.mrb[0].mxu0 }
 0x304   :  { %v1020_v0 = vpop.f32.mrb[1].mxu0  ;;  %v1045_v1 = vadd.f32 %v1038_v61, %v1018_v62 }
 0x305   :  { %v1046_v2 = vadd.f32 %v1042_v63, %v1020_v0  ;;  %v5976_v0 = vld [vmem:[%s9522_s5 + $0x1f8] sm:$0xff] }
 0x306   :  { %v1049_v7 = vmax.f32 %v1045_v1, 0.0 }
 0x307   :  { %v1024_v3 = vpop.f32.mrb[2].mxu0  ;;  %v1050_v9 = vmax.f32 %v1046_v2, 0.0  ;;  %v5959_v2 = vld [vmem:[%s9522_s5 + $0x170] sm:$0xff] }
 0x308   :  { %v1047_v4 = vadd.f32 %v1038_v61, %v1024_v3  ;;  %v1026_v5 = vpop.f32.mrb[3].mxu0  ;;  %v5958_v61 = vld [vmem:[%s9522_s5 + $0x168] sm:$0xff]  ;;  %v5960_v3 = vld [vmem:[%s9522_s5 + $0x178] sm:$0xff] }
 0x309   :  { %v1048_v6 = vadd.f32 %v1042_v63, %v1026_v5  ;;  %v7306_v62 = vpack.c.bf16 %v5958_v61, %v5957_v59  ;;  %v5975_v63 = vld [vmem:[%s9522_s5 + $0x1f0] sm:$0xff]  ;;  %v1145_v5 = vld [vmem:[%s9522_s5 + $0x80] sm:$0xff]  ;;  %v5993_v61 = vld [vmem:[%s9522_s5 + $0x278] sm:$0xff] }
 0x30a   :  { %v1051_v8 = vmax.f32 %v1047_v4, 0.0  ;;  %v7308_v1 = vpack.c.bf16 %v5976_v0, %v5975_v63  ;;  %v7310_v4 = vpack.c.bf16 %v5960_v3, %v5959_v2  ;;  %v5992_v59 = vld [vmem:[%s9522_s5 + $0x270] sm:$0xff]  ;;  %v1129_v2 = vld [vmem:[%s9522_s5] sm:$0xff]  ;;  %v1130_v3 = vld [vmem:[%s9522_s5 + $0x8] sm:$0xff] }
 0x30b   :  { %v1052_v10 = vmax.f32 %v1048_v6, 0.0  ;;  %v1146_v6 = vld [vmem:[%s9522_s5 + $0x88] sm:$0xff] }
 0x30c   :  { %v8655_v11 = vpack.c.bf16 %v1051_v8, %v1049_v7  ;;  %v7312_v7 = vpack.c.bf16 %v1146_v6, %v1145_v5  ;;  %v5994_v8 = vld [vmem:[%s9522_s5 + $0x280] sm:$0xff]  ;;  %v1147_v5 = vld [vmem:[%s9522_s5 + $0x90] sm:$0xff]  ;;  %v1148_v6 = vld [vmem:[%s9522_s5 + $0x98] sm:$0xff] }
 0x30d   :  { %v8657_v12 = vpack.c.bf16 %v1052_v10, %v1050_v9  ;;  %v5995_v9 = vld [vmem:[%s9522_s5 + $0x288] sm:$0xff] }
 0x30e   :  { %v7348_v10 = vpack.c.bf16 %v5995_v9, %v5994_v8  ;;  %v7314_v8 = vpack.c.bf16 %v1130_v3, %v1129_v2  ;;  %v6014_v2 = vld [vmem:[%s9522_s5 + $0x318] sm:$0xff]  ;;  %v6031_v3 = vld [vmem:[%s9522_s5 + $0x3a0] sm:$0xff] }
 0x30f   :  { %7273 = vmatprep.subr.bf16.mxu1 %v8657_v12  ;;  %7345 = vmatprep.subr.bf16.mxu0 %v8657_v12 }
 0x310   :  { %7275 = vmatpush1.bf16.msra.mxu1 %v8655_v11  ;;  %7347 = vmatpush1.bf16.msra.mxu0 %v8655_v11 }
 0x311   :  { %7277 = vmatprep.subr.bf16.mxu1 %v8657_v12  ;;  %7349 = vmatprep.subr.bf16.mxu0 %v7348_v10  ;;  %v7316_v10 = vpack.c.bf16 %v1148_v6, %v1147_v5 }
 0x313   :  { %5943 = vmatmul.mubr.msk.f32.vlgmr.msra.gmra.mrb[8].mxu1 %vm1054_vm2, %v1053_v15  ;;  %5977 = vmatmul.mubr.msk.f32.vlgmr.msra.gmra.mrb[4].mxu0 %vm1054_vm2, %v1411_v16  ;;  %v7350_v15 = vpack.c.bf16 %v5979_v14, %v5978_v13  ;;  %v5996_v16 = vld [vmem:[%s9522_s5 + $0x290] sm:$0xff]  ;;  %v1132_v14 = vld [vmem:[%s9522_s5 + $0x18] sm:$0xff] }
 0x314   :  { %7279 = vmatpush1.bf16.msra.mxu1 %v8655_v11  ;;  %1230 = vmatprep.mubr.f32.mxu1 %v8304_v41  ;;  %v1131_v13 = vld [vmem:[%s9522_s5 + $0x10] sm:$0xff] }
 0x315   :  { %7281 = vmatprep.subr.bf16.mxu1 %v7280_v17  ;;  %7351 = vmatpush3.bf16.msra.mxu0 %v7350_v15  ;;  %v5997_v17 = vld [vmem:[%s9522_s5 + $0x298] sm:$0xff]  ;;  %v1149_v15 = vld [vmem:[%s9522_s5 + $0xa0] sm:$0xff] }
 0x316   :  { %v7352_v18 = vpack.c.bf16 %v5997_v17, %v5996_v16  ;;  %v1150_v16 = vld [vmem:[%s9522_s5 + $0xa8] sm:$0xff]  ;;  %v7318_v17 = vpack.c.bf16 %v1132_v14, %v1131_v13 }
 0x317   :  { %5944 = vmatmul.mubr.msk.f32.vlgmr.msra.gmra.mrb[10].mxu1 %vm1054_vm2, %v1162_v22  ;;  %v5998_v22 = vld [vmem:[%s9522_s5 + $0x2a0] sm:$0xff] }
 0x318   :  { %7283 = vmatpush3.bf16.msra.mxu1 %v7282_v23  ;;  %7353 = vmatprep.subr.bf16.mxu0 %v7352_v18  ;;  %v5999_v23 = vld [vmem:[%s9522_s5 + $0x2a8] sm:$0xff]  ;;  %v7320_v18 = vpack.c.bf16 %v1150_v16, %v1149_v15  ;;  %v6017_v15 = vld [vmem:[%s9522_s5 + $0x330] sm:$0xff]  ;;  %v6018_v16 = vld [vmem:[%s9522_s5 + $0x338] sm:$0xff] }
 0x319   :  { %7285 = vmatprep.subr.bf16.mxu1 %v7284_v24  ;;  %7355 = vmatpush3.bf16.msra.mxu0 %v7354_v21  ;;  %v7356_v24 = vpack.c.bf16 %v5999_v23, %v5998_v22  ;;  %v1151_v21 = vld [vmem:[%s9522_s5 + $0xb0] sm:$0xff]  ;;  %v1152_v22 = vld [vmem:[%s9522_s5 + $0xb8] sm:$0xff]  ;;  %v7322_v23 = vpack.c.bf16 %v1134_v20, %v1133_v19  ;;  %v7398_v19 = vpack.c.bf16 %v6018_v16, %v6017_v15  ;;  %v1866_v15 = vld [vmem:[%s9523_s8 + $0x60] sm:$0xff] }
 0x31a   :  { %v1867_v16 = vld [vmem:[%s9523_s8 + $0x68] sm:$0xff] }
 0x31b   :  { %7357 = vmatprep.subr.bf16.mxu0 %v7356_v24  ;;  %v7324_v24 = vpack.c.bf16 %v1152_v22, %v1151_v21  ;;  %v6019_v21 = vld [vmem:[%s9522_s5 + $0x340] sm:$0xff]  ;;  %v6020_v22 = vld [vmem:[%s9522_s5 + $0x348] sm:$0xff] }
 0x31c   :  { %7287 = vmatpush3.bf16.msra.mxu1 %v7286_v29  ;;  %v6001_v29 = vld [vmem:[%s9522_s5 + $0x2b8] sm:$0xff] }
 0x31d   :  { %7289 = vmatprep.subr.bf16.mxu1 %v7288_v30  ;;  %7359 = vmatpush3.bf16.msra.mxu0 %v7358_v27  ;;  %v7360_v30 = vpack.c.bf16 %v6001_v29, %v6000_v28  ;;  %v1153_v27 = vld [vmem:[%s9522_s5 + $0xc0] sm:$0xff]  ;;  %v1154_v28 = vld [vmem:[%s9522_s5 + $0xc8] sm:$0xff]  ;;  %v7326_v29 = vpack.c.bf16 %v1136_v26, %v1135_v25  ;;  %v7402_v25 = vpack.c.bf16 %v6020_v22, %v6019_v21 }
 0x31f   :  { %7361 = vmatprep.subr.bf16.mxu0 %v7360_v30  ;;  %v7328_v30 = vpack.c.bf16 %v1154_v28, %v1153_v27  ;;  %v6021_v27 = vld [vmem:[%s9522_s5 + $0x350] sm:$0xff]  ;;  %v6022_v28 = vld [vmem:[%s9522_s5 + $0x358] sm:$0xff] }
 0x320   :  { %7291 = vmatpush3.bf16.msra.mxu1 %v7290_v35  ;;  %v6003_v35 = vld [vmem:[%s9522_s5 + $0x2c8] sm:$0xff] }
 0x321   :  { %7293 = vmatprep.subr.bf16.mxu1 %v7292_v36  ;;  %7363 = vmatpush3.bf16.msra.mxu0 %v7362_v33  ;;  %v7364_v36 = vpack.c.bf16 %v6003_v35, %v6002_v34  ;;  %v1155_v33 = vld [vmem:[%s9522_s5 + $0xd0] sm:$0xff]  ;;  %v1156_v34 = vld [vmem:[%s9522_s5 + $0xd8] sm:$0xff]  ;;  %v7330_v35 = vpack.c.bf16 %v1138_v32, %v1137_v31  ;;  %v7406_v31 = vpack.c.bf16 %v6022_v28, %v6021_v27  ;;  %v1779_v28 = vld [vmem:[#allocation10] sm:$0xff] }
 0x323   :  { %7365 = vmatprep.subr.bf16.mxu0 %v7364_v36  ;;  %v7332_v36 = vpack.c.bf16 %v1156_v34, %v1155_v33  ;;  %v6023_v33 = vld [vmem:[%s9522_s5 + $0x360] sm:$0xff]  ;;  %v6024_v34 = vld [vmem:[%s9522_s5 + $0x368] sm:$0xff] }
 0x324   :  { %7295 = vmatpush3.bf16.msra.mxu1 %v7294_v42  ;;  %v6005_v42 = vld [vmem:[%s9522_s5 + $0x2d8] sm:$0xff] }
 0x325   :  { %7297 = vmatprep.subr.bf16.mxu1 %v7296_v43  ;;  %7367 = vmatpush3.bf16.msra.mxu0 %v7366_v39  ;;  %v7368_v43 = vpack.c.bf16 %v6005_v42, %v6004_v40  ;;  %v1157_v39 = vld [vmem:[%s9522_s5 + $0xe0] sm:$0xff]  ;;  %v1158_v40 = vld [vmem:[%s9522_s5 + $0xe8] sm:$0xff]  ;;  %v7334_v42 = vpack.c.bf16 %v1140_v38, %v1139_v37  ;;  %v6042_v37 = vld [vmem:[%s9522_s5 + $0x3f8] sm:$0xff] }
 0x327   :  { %7369 = vmatprep.subr.bf16.mxu0 %v7368_v43  ;;  %v7336_v43 = vpack.c.bf16 %v1158_v40, %v1157_v39  ;;  %v6025_v39 = vld [vmem:[%s9522_s5 + $0x370] sm:$0xff]  ;;  %v6026_v40 = vld [vmem:[%s9522_s5 + $0x378] sm:$0xff] }
 0x328   :  { %7299 = vmatpush3.bf16.msra.mxu1 %v7298_v48  ;;  %v6007_v48 = vld [vmem:[%s9522_s5 + $0x2e8] sm:$0xff] }
 0x329   :  { %7301 = vmatprep.subr.bf16.mxu1 %v7300_v49  ;;  %7371 = vmatpush3.bf16.msra.mxu0 %v7370_v46  ;;  %v7372_v49 = vpack.c.bf16 %v6007_v48, %v6006_v47  ;;  %v1159_v46 = vld [vmem:[%s9522_s5 + $0xf0] sm:$0xff]  ;;  %v1160_v47 = vld [vmem:[%s9522_s5 + $0xf8] sm:$0xff]  ;;  %v7338_v48 = vpack.c.bf16 %v1142_v45, %v1141_v44 }
 0x32b   :  { %7373 = vmatprep.subr.bf16.mxu0 %v7372_v49  ;;  %v7340_v49 = vpack.c.bf16 %v1160_v47, %v1159_v46 }
 0x32c   :  { %7303 = vmatpush3.bf16.msra.mxu1 %v7302_v54  ;;  %v6009_v54 = vld [vmem:[%s9522_s5 + $0x2f8] sm:$0xff] }
 0x32d   :  { %7305 = vmatprep.subr.bf16.mxu1 %v7304_v55  ;;  %7375 = vmatpush3.bf16.msra.mxu0 %v7374_v52  ;;  %v7376_v55 = vpack.c.bf16 %v6009_v54, %v6008_v53  ;;  %v7342_v52 = vpack.c.bf16 %v1144_v51, %v1143_v50  ;;  %v1591_v53 = vld [vmem:[#allocation7 + $0x18] sm:$0xff] }
 0x32e   :  { %v6027_v54 = vld [vmem:[%s9522_s5 + $0x380] sm:$0xff] }
 0x32f   :  { %7377 = vmatprep.subr.bf16.mxu0 %v7376_v55  ;;  %v6028_v55 = vld [vmem:[%s9522_s5 + $0x388] sm:$0xff] }
 0x330   :  { %7307 = vmatpush3.bf16.msra.mxu1 %v7306_v62  ;;  %v7378_v62 = vpack.c.bf16 %v5993_v61, %v5992_v59  ;;  %v6011_v59 = vld [vmem:[%s9522_s5 + $0x300] sm:$0xff]  ;;  %v7384_v61 = vpack.c.bf16 %v6028_v55, %v6027_v54 }
 0x331   :  { %7309 = vmatprep.subr.bf16.mxu1 %v7308_v1 }
 0x332   :  { %7379 = vmatpush3.bf16.msra.mxu0 %v7378_v62  ;;  %v6012_v62 = vld [vmem:[%s9522_s5 + $0x308] sm:$0xff] }
 0x333   :  { %6823 = vmatprep.subr.mxu0 %v8304_v41 }
 0x334   :  { %7311 = vmatpush3.bf16.msra.mxu1 %v7310_v4 }
 0x335   :  { %7313 = vmatprep.subr.bf16.mxu1 %v7312_v7 }
 0x3e6   :  { %v8736_v63 = vpop.f32.mrb[8].mxu1  ;;  %v1481_v0 = vpop.f32.mrb[4].mxu0 }
 0x3e7   :  { %v1126_v1 = vpop.f32.mrb[9].mxu1  ;;  %v1483_v4 = vpop.f32.mrb[5].mxu0 }
 0x3e8   :  { %1583 = vmatprep.mubr.f32.mxu0 %v1483_v4  ;;  %v6032_v4 = vld [vmem:[%s9522_s5 + $0x3a8] sm:$0xff] }
 0x3e9   :  { %1584 = vmatmul.mubr.f32.vlgmr.msra.gmra.mrb[6].mxu0 %v1481_v0  ;;  %v7386_v0 = vpack.c.bf16 %v6012_v62, %v6011_v59  ;;  %v7392_v6 = vpack.c.bf16 %v6032_v4, %v6031_v3  ;;  %v1854_v59 = vld [vmem:[%s9523_s8] sm:$0xff]  ;;  %v8306_v62 = vmov 0.0|0.0   ;;  %v1860_v4 = vld [vmem:[%s9523_s8 + $0x30] sm:$0xff] }
 0x3ea   :  { %v1232_v7 = vpop.f32.mrb[10].mxu1  ;;  %6825 = vmatprep.mubr.msk.f32.mxu0 %vm8305_vm3, %v8304_v41 }
 0x3eb   :  { %v1234_v9 = vpop.f32.mrb[11].mxu1 }
 0x3ec   :  { %1334 = vmatprep.mubr.f32.mxu1 %v1234_v9  ;;  %v6033_v9 = vld [vmem:[%s9522_s5 + $0x3b0] sm:$0xff] }
 0x3ed   :  { %1335 = vmatmul.mubr.f32.vlgmr.msra.gmra.mrb[12].mxu1 %v1232_v7  ;;  %v6015_v7 = vld [vmem:[%s9522_s5 + $0x320] sm:$0xff] }
 0x3ee   :  { %7315 = vmatpush3.bf16.msra.mxu1 %v7314_v8  ;;  %1404 = vmatprep.mubr.f32.mxu1 %v1126_v1  ;;  %v6016_v8 = vld [vmem:[%s9522_s5 + $0x328] sm:$0xff] }
 0x3ef   :  { %7317 = vmatprep.subr.bf16.mxu1 %v7316_v10  ;;  %v6034_v10 = vld [vmem:[%s9522_s5 + $0x3b8] sm:$0xff]  ;;  %v7394_v13 = vpack.c.bf16 %v6016_v8, %v6015_v7  ;;  %v1862_v7 = vld [vmem:[%s9523_s8 + $0x40] sm:$0xff]  ;;  %v1863_v8 = vld [vmem:[%s9523_s8 + $0x48] sm:$0xff] }
 0x3f0   :  { %v7396_v14 = vpack.c.bf16 %v6034_v10, %v6033_v9  ;;  %v7453_v9 = vpack.c.bf16 %v1863_v8, %v1862_v7  ;;  %v1864_v10 = vld [vmem:[%s9523_s8 + $0x50] sm:$0xff] }
 0x3f1   :  { %v6069_v8 = vld [vmem:[%s9523_s8 + $0x130] sm:$0xff] }
 0x3f2   :  { %7319 = vmatpush3.bf16.msra.mxu1 %v7318_v17  ;;  %v6035_v17 = vld [vmem:[%s9522_s5 + $0x3c0] sm:$0xff] }
 0x3f3   :  { %7321 = vmatprep.subr.bf16.mxu1 %v7320_v18  ;;  %v6036_v18 = vld [vmem:[%s9522_s5 + $0x3c8] sm:$0xff] }
 0x3f4   :  { %v7400_v20 = vpack.c.bf16 %v6036_v18, %v6035_v17  ;;  %v7459_v17 = vpack.c.bf16 %v1867_v16, %v1866_v15  ;;  %v1868_v18 = vld [vmem:[%s9523_s8 + $0x70] sm:$0xff] }
 0x3f5   :  { %v6073_v16 = vld [vmem:[%s9523_s8 + $0x150] sm:$0xff] }
 0x3f6   :  { %7323 = vmatpush3.bf16.msra.mxu1 %v7322_v23  ;;  %v6037_v23 = vld [vmem:[%s9522_s5 + $0x3d0] sm:$0xff] }
 0x3f7   :  { %7325 = vmatprep.subr.bf16.mxu1 %v7324_v24  ;;  %v6038_v24 = vld [vmem:[%s9522_s5 + $0x3d8] sm:$0xff] }
 0x3f8   :  { %v7404_v26 = vpack.c.bf16 %v6038_v24, %v6037_v23  ;;  %v6043_v24 = vld [vmem:[#allocation8] ss:$0 sm:$0xff] }
 0x3fa   :  { %7327 = vmatpush3.bf16.msra.mxu1 %v7326_v29  ;;  %v6039_v29 = vld [vmem:[%s9522_s5 + $0x3e0] sm:$0xff] }
 0x3fb   :  { %7329 = vmatprep.subr.bf16.mxu1 %v7328_v30  ;;  %v6040_v30 = vld [vmem:[%s9522_s5 + $0x3e8] sm:$0xff] }
 0x3fc   :  { %v7408_v32 = vpack.c.bf16 %v6040_v30, %v6039_v29  ;;  %v6046_v29 = vld [vmem:[%s9523_s8 + $0x80] sm:$0xff]  ;;  %v6047_v30 = vld [vmem:[%s9523_s8 + $0x88] sm:$0xff] }
 0x3fe   :  { %7331 = vmatpush3.bf16.msra.mxu1 %v7330_v35  ;;  %v7410_v35 = vpack.c.bf16 %v6024_v34, %v6023_v33  ;;  %v6048_v33 = vld [vmem:[%s9523_s8 + $0x90] sm:$0xff]  ;;  %v6049_v34 = vld [vmem:[%s9523_s8 + $0x98] sm:$0xff] }
 0x3ff   :  { %7333 = vmatprep.subr.bf16.mxu1 %v7332_v36  ;;  %v6041_v36 = vld [vmem:[%s9522_s5 + $0x3f0] sm:$0xff] }
 0x400   :  { %v7412_v38 = vpack.c.bf16 %v6042_v37, %v6041_v36  ;;  %v6050_v36 = vld [vmem:[%s9523_s8 + $0xa0] sm:$0xff]  ;;  %v6051_v37 = vld [vmem:[%s9523_s8 + $0xa8] sm:$0xff] }
 0x402   :  { %7335 = vmatpush3.bf16.msra.mxu1 %v7334_v42  ;;  %v7414_v42 = vpack.c.bf16 %v6026_v40, %v6025_v39  ;;  %v6052_v39 = vld [vmem:[%s9523_s8 + $0xb0] sm:$0xff]  ;;  %v6053_v40 = vld [vmem:[%s9523_s8 + $0xb8] sm:$0xff] }
 0x403   :  { %7337 = vmatprep.subr.bf16.mxu1 %v7336_v43 }
 0x406   :  { %7339 = vmatpush3.bf16.msra.mxu1 %v7338_v48 }
 0x407   :  { %7341 = vmatprep.subr.bf16.mxu1 %v7340_v49 }
 0x40a   :  { %7343 = vmatpush3.bf16.msra.mxu1 %v7342_v52 }
 0x40b   :  { %7381 = vmatprep.subr.bf16.mxu1 %v8657_v12  ;;  %v6029_v12 = vld [vmem:[%s9522_s5 + $0x390] sm:$0xff] }
 0x40d   :  { %1405 = vmatmul.mubr.f32.vlgmr.msra.gmra.mrb[14].mxu1 %v8736_v63  ;;  %v6030_v63 = vld [vmem:[%s9522_s5 + $0x398] sm:$0xff] }
 0x40e   :  { %7383 = vmatpush1.bf16.msra.mxu1 %v8655_v11  ;;  %1659 = vmatprep.mubr.f32.mxu1 %v8304_v41  ;;  %v7388_v1 = vpack.c.bf16 %v6030_v63, %v6029_v12  ;;  %v6013_v11 = vld [vmem:[%s9522_s5 + $0x310] sm:$0xff] }
 0x40f   :  { %7385 = vmatprep.subr.bf16.mxu1 %v7384_v61  ;;  %v7390_v5 = vpack.c.bf16 %v6014_v2, %v6013_v11  ;;  %v1855_v61 = vld [vmem:[%s9523_s8 + $0x8] sm:$0xff]  ;;  %v1856_v63 = vld [vmem:[%s9523_s8 + $0x10] sm:$0xff]  ;;  %v1858_v11 = vld [vmem:[%s9523_s8 + $0x20] sm:$0xff] }
 0x410   :  { %v7441_v12 = vpack.c.bf16 %v1855_v61, %v1854_v59  ;;  %v1859_v2 = vld [vmem:[%s9523_s8 + $0x28] sm:$0xff]  ;;  %v6063_v61 = vld [vmem:[%s9523_s8 + $0x100] sm:$0xff] }
 0x411   :  { %6010 = vmatmul.mubr.msk.f32.vlgmr.msra.gmra.mrb[16].mxu1 %vm1054_vm2, %v1591_v53  ;;  %v7447_v3 = vpack.c.bf16 %v1859_v2, %v1858_v11  ;;  %v6065_v2 = vld [vmem:[%s9523_s8 + $0x110] sm:$0xff] }
 0x412   :  { %7387 = vmatpush3.bf16.msra.mxu1 %v7386_v0  ;;  %v1857_v0 = vld [vmem:[%s9523_s8 + $0x18] sm:$0xff] }
 0x413   :  { %7389 = vmatprep.subr.bf16.mxu1 %v7388_v1  ;;  %v7444_v1 = vpack.c.bf16 %v1857_v0, %v1856_v63 }
 0x416   :  { %7391 = vmatpush3.bf16.msra.mxu1 %v7390_v5  ;;  %v1861_v5 = vld [vmem:[%s9523_s8 + $0x38] sm:$0xff] }
 0x417   :  { %7393 = vmatprep.subr.bf16.mxu1 %v7392_v6  ;;  %v7450_v6 = vpack.c.bf16 %v1861_v5, %v1860_v4  ;;  %v6067_v5 = vld [vmem:[%s9523_s8 + $0x120] sm:$0xff] }
 0x41a   :  { %7395 = vmatpush3.bf16.msra.mxu1 %v7394_v13  ;;  %v1865_v13 = vld [vmem:[%s9523_s8 + $0x58] sm:$0xff] }
 0x41b   :  { %7397 = vmatprep.subr.bf16.mxu1 %v7396_v14  ;;  %v7456_v14 = vpack.c.bf16 %v1865_v13, %v1864_v10  ;;  %v6071_v13 = vld [vmem:[%s9523_s8 + $0x140] sm:$0xff] }
 0x41e   :  { %7399 = vmatpush3.bf16.msra.mxu1 %v7398_v19  ;;  %v1869_v19 = vld [vmem:[%s9523_s8 + $0x78] sm:$0xff] }
 0x41f   :  { %7401 = vmatprep.subr.bf16.mxu1 %v7400_v20  ;;  %v7462_v20 = vpack.c.bf16 %v1869_v19, %v1868_v18  ;;  %v6075_v19 = vld [vmem:[%s9523_s8 + $0x160] sm:$0xff] }
 0x422   :  { %7403 = vmatpush3.bf16.msra.mxu1 %v7402_v25 }
 0x423   :  { %7405 = vmatprep.subr.bf16.mxu1 %v7404_v26 }
 0x426   :  { %7407 = vmatpush3.bf16.msra.mxu1 %v7406_v31  ;;  %v1871_v31 = vld [vmem:[#allocation10 + $0x8] sm:$0xff] }
 0x427   :  { %7409 = vmatprep.subr.bf16.mxu1 %v7408_v32  ;;  %v7417_v32 = vpack.c.bf16 %v6047_v30, %v6046_v29  ;;  %v6098_v30 = vld [vmem:[%s9524_s18 + $0x40] sm:$0xff] }
 0x42a   :  { %7411 = vmatpush3.bf16.msra.mxu1 %v7410_v35  ;;  %v7420_v35 = vpack.c.bf16 %v6049_v34, %v6048_v33 }
 0x42b   :  { %7413 = vmatprep.subr.bf16.mxu1 %v7412_v38  ;;  %v7423_v38 = vpack.c.bf16 %v6051_v37, %v6050_v36 }
 0x42e   :  { %7415 = vmatpush3.bf16.msra.mxu1 %v7414_v42  ;;  %v7426_v42 = vpack.c.bf16 %v6053_v40, %v6052_v39  ;;  %v2276_v39 = vld [vmem:[%s9524_s18 + $0x18] sm:$0xff]  ;;  %v6100_v40 = vld [vmem:[%s9524_s18 + $0x50] sm:$0xff] }
 0x42f   :  { %7440 = vmatprep.subr.bf16.mxu1 %v8306_v62 }
 0x4bc   :  { %v6437_v43 = vpop.f32.mrb[6].mxu0 }
 0x4bd   :  { %v6438_v44 = vpop.f32.mrb[7].mxu0 }
 0x4be   :  { %v6439_v45 = vadd.f32 %v6438_v44, %v6437_v43  ;;  %v6054_v43 = vld [vmem:[%s9523_s8 + $0xc0] sm:$0xff]  ;;  %v6055_v44 = vld [vmem:[%s9523_s8 + $0xc8] sm:$0xff] }
 0x4c0   :  { %v6367_v46 = vpop.f32.mrb[12].mxu1 }
 0x4c1   :  { %v6368_v47 = vpop.f32.mrb[13].mxu1 }
 0x4c2   :  { %v6369_v48 = vadd.f32 %v6368_v47, %v6367_v46  ;;  %v6056_v46 = vld [vmem:[%s9523_s8 + $0xd0] sm:$0xff]  ;;  %v6057_v47 = vld [vmem:[%s9523_s8 + $0xd8] sm:$0xff] }
 0x4e0   :  { %v6402_v49 = vpop.f32.mrb[14].mxu1 }
 0x4e1   :  { %v6403_v50 = vpop.f32.mrb[15].mxu1 }
 0x4e2   :  { %v6404_v51 = vadd.f32 %v6403_v50, %v6402_v49  ;;  %v6058_v49 = vld [vmem:[%s9523_s8 + $0xe0] sm:$0xff]  ;;  %v6059_v50 = vld [vmem:[%s9523_s8 + $0xe8] sm:$0xff] }
 0x4e4   :  { %v1407_v52 = vadd.f32 %v6404_v51, %v6369_v48  ;;  %v1661_v53 = vpop.f32.mrb[16].mxu1  ;;  %v7432_v48 = vpack.c.bf16 %v6057_v47, %v6056_v46  ;;  %v7435_v51 = vpack.c.bf16 %v6059_v50, %v6058_v49  ;;  %v6082_v46 = vld [vmem:[%s9524_s18 + $0x28] sm:$0xff]  ;;  %v6111_v47 = vld [vmem:[%s9524_s18 + $0x60] sm:$0xff]  ;;  %v6079_v50 = vld [vmem:[#allocation11] ss:$0 sm:$0xff] }
 0x4e5   :  { %v1663_v54 = vpop.f32.mrb[17].mxu1 }
 0x4e6   :  { %v1589_v55 = vadd.f32 %v6439_v45, %v1407_v52  ;;  %1763 = vmatprep.mubr.f32.mxu1 %v1663_v54  ;;  %v7429_v45 = vpack.c.bf16 %v6055_v44, %v6054_v43  ;;  %v6060_v52 = vld [vmem:[%s9523_s8 + $0xf0] sm:$0xff]  ;;  %v6101_v43 = vld [vmem:[%s9524_s18 + $0x58] sm:$0xff] }
 0x4e7   :  { %1764 = vmatmul.mubr.f32.vlgmr.msra.gmra.mrb[18].mxu1 %v1661_v53  ;;  %v6061_v53 = vld [vmem:[%s9523_s8 + $0xf8] sm:$0xff]  ;;  %v7504_v44 = vpack.c.bf16 %v6101_v43, %v6100_v40 }
 0x4e8   :  { %6900 = vmatprep.mubr.msk.f32.mxu1 %vm8305_vm3, %v8304_v41  ;;  %7442 = vmatpush3.bf16.msra.mxu1 %v7441_v12  ;;  %v7438_v54 = vpack.c.bf16 %v6061_v53, %v6060_v52  ;;  %v6064_v12 = vld [vmem:[%s9523_s8 + $0x108] sm:$0xff] }
 0x4e9   :  { %7443 = vmatprep.subr.bf16.mxu1 %v8306_v62  ;;  %v7465_v11 = vpack.c.bf16 %v6064_v12, %v6063_v61  ;;  %v6084_v61 = vld [vmem:[%s9524_s18 + $0x38] sm:$0xff]  ;;  %v6113_v12 = vld [vmem:[%s9524_s18 + $0x70] sm:$0xff] }
 0x4ec   :  { %7445 = vmatpush3.bf16.msra.mxu1 %v7444_v1  ;;  %v2103_v1 = vld [vmem:[#allocation10 + $0x10] sm:$0xff] }
 0x4ed   :  { %7446 = vmatprep.subr.bf16.mxu1 %v8306_v62 }
 0x4f0   :  { %7448 = vmatpush3.bf16.msra.mxu1 %v7447_v3  ;;  %v6066_v3 = vld [vmem:[%s9523_s8 + $0x118] sm:$0xff] }
 0x4f1   :  { %7449 = vmatprep.subr.bf16.mxu1 %v8306_v62  ;;  %v7468_v4 = vpack.c.bf16 %v6066_v3, %v6065_v2 }
 0x4f4   :  { %7451 = vmatpush3.bf16.msra.mxu1 %v7450_v6  ;;  %v6068_v6 = vld [vmem:[%s9523_s8 + $0x128] sm:$0xff] }
 0x4f5   :  { %7452 = vmatprep.subr.bf16.mxu1 %v8306_v62  ;;  %v7471_v7 = vpack.c.bf16 %v6068_v6, %v6067_v5 }
 0x4f8   :  { %7454 = vmatpush3.bf16.msra.mxu1 %v7453_v9  ;;  %v6070_v9 = vld [vmem:[%s9523_s8 + $0x138] sm:$0xff] }
 0x4f9   :  { %7455 = vmatprep.subr.bf16.mxu1 %v8306_v62  ;;  %v7474_v10 = vpack.c.bf16 %v6070_v9, %v6069_v8  ;;  %v6087_v8 = vld [vmem:[%s9525_s22 + $0x28] sm:$0xff] }
 0x4fc   :  { %7457 = vmatpush3.bf16.msra.mxu1 %v7456_v14  ;;  %v6072_v14 = vld [vmem:[%s9523_s8 + $0x148] sm:$0xff] }
 0x4fd   :  { %7458 = vmatprep.subr.bf16.mxu1 %v8306_v62  ;;  %v7477_v15 = vpack.c.bf16 %v6072_v14, %v6071_v13  ;;  %v6088_v13 = vld [vmem:[%s9525_s22 + $0x30] sm:$0xff]  ;;  %v6089_v14 = vld [vmem:[%s9525_s22 + $0x38] sm:$0xff] }
 0x500   :  { %7460 = vmatpush3.bf16.msra.mxu1 %v7459_v17  ;;  %v6074_v17 = vld [vmem:[%s9523_s8 + $0x158] sm:$0xff] }
 0x501   :  { %7461 = vmatprep.subr.bf16.mxu1 %v8306_v62  ;;  %v7480_v18 = vpack.c.bf16 %v6074_v17, %v6073_v16  ;;  %v2351_v16 = vld [vmem:[%s9525_s22 + $0x8] sm:$0xff]  ;;  %v2352_v17 = vld [vmem:[%s9525_s22 + $0x10] sm:$0xff] }
 0x504   :  { %7463 = vmatpush3.bf16.msra.mxu1 %v7462_v20  ;;  %v6076_v20 = vld [vmem:[%s9523_s8 + $0x168] sm:$0xff] }
 0x505   :  { %7488 = vmatprep.subr.bf16.mxu1 %v8306_v62 }
 0x5ba   :  { %v6472_v21 = vpop.f32.mrb[18].mxu1 }
 0x5bb   :  { %v6473_v22 = vpop.f32.mrb[19].mxu1 }
 0x5bc   :  { %v6474_v23 = vadd.f32 %v6473_v22, %v6472_v21  ;;  %v7483_v21 = vpack.c.bf16 %v6076_v20, %v6075_v19  ;;  %v6077_v22 = vld [vmem:[%s9523_s8 + $0x170] sm:$0xff]  ;;  %v6103_v19 = vld [vmem:[%s9525_s22 + $0x40] sm:$0xff]  ;;  %v6104_v20 = vld [vmem:[%s9525_s22 + $0x48] sm:$0xff] }
 0x5be   :  { %v1769_v25 = vadd.f32 %v6474_v23, %v1589_v55  ;;  %v6078_v23 = vld [vmem:[%s9523_s8 + $0x178] sm:$0xff] }
 0x5c0   :  { %v1777_v26 = vadd.f32 %v6043_v24, %v1769_v25  ;;  %v7486_v24 = vpack.c.bf16 %v6078_v23, %v6077_v22  ;;  %v2273_v25 = vld [vmem:[%s9524_s18] sm:$0xff]  ;;  %v6106_v22 = vld [vmem:[%s9525_s22 + $0x58] sm:$0xff] }
 0x5c1   :  { %v6116_v23 = vld [vmem:[%s9525_s22 + $0x60] sm:$0xff] }
 0x5c2   :  { %v1778_v27 = vmax.f32 %v1777_v26, 0.0  ;;  %v2274_v26 = vld [vmem:[%s9524_s18 + $0x8] sm:$0xff] }
 0x5c4   :  { %6824 = vmatpush3.msra.mxu0 %v1778_v27 }
 0x5c5   :  { %6826 = vmatmul.mubr.msk.f32.vlgmr.msra.gmra.mrb[8].mxu0 %vm1780_vm4, %v1779_v28  ;;  %6828 = vmatprep.subr.mxu0 %v8304_v41 }
 0x5c6   :  { %6829 = vmatpush3.msra.mxu0 %v1778_v27  ;;  %6830 = vmatprep.mubr.msk.f32.mxu0 %vm8305_vm3, %v8304_v41 }
 0x5c7   :  { %7416 = vmatprep.subr.bf16.mxu0 %v8306_v62 }
 0x5c9   :  { %6831 = vmatmul.mubr.msk.f32.vlgmr.msra.gmra.mrb[10].mxu0 %vm1780_vm4, %v1871_v31  ;;  %v6099_v31 = vld [vmem:[%s9524_s18 + $0x48] sm:$0xff] }
 0x5ca   :  { %7418 = vmatpush3.bf16.msra.mxu0 %v7417_v32  ;;  %6865 = vmatprep.mubr.msk.f32.mxu0 %vm8305_vm3, %v8304_v41 }
 0x5cb   :  { %7419 = vmatprep.subr.bf16.mxu0 %v8306_v62 }
 0x5ce   :  { %7421 = vmatpush3.bf16.msra.mxu0 %v7420_v35  ;;  %v7501_v35 = vpack.c.bf16 %v6099_v31, %v6098_v30 }
 0x5cf   :  { %7422 = vmatprep.subr.bf16.mxu0 %v8306_v62 }
 0x5d2   :  { %7424 = vmatpush3.bf16.msra.mxu0 %v7423_v38  ;;  %v2275_v38 = vld [vmem:[%s9524_s18 + $0x10] sm:$0xff] }
 0x5d3   :  { %7425 = vmatprep.subr.bf16.mxu0 %v8306_v62 }
 0x5d6   :  { %7427 = vmatpush3.bf16.msra.mxu0 %v7426_v42  ;;  %v7492_v42 = vpack.c.bf16 %v2276_v39, %v2275_v38 }
 0x5d7   :  { %7428 = vmatprep.subr.bf16.mxu0 %v8306_v62 }
 0x5da   :  { %7430 = vmatpush3.bf16.msra.mxu0 %v7429_v45  ;;  %v6081_v45 = vld [vmem:[%s9524_s18 + $0x20] sm:$0xff] }
 0x5db   :  { %7431 = vmatprep.subr.bf16.mxu0 %v8306_v62  ;;  %v7495_v53 = vpack.c.bf16 %v6082_v46, %v6081_v45 }
 0x5de   :  { %7433 = vmatpush3.bf16.msra.mxu0 %v7432_v48  ;;  %v6112_v48 = vld [vmem:[%s9524_s18 + $0x68] sm:$0xff] }
 0x5df   :  { %7434 = vmatprep.subr.bf16.mxu0 %v8306_v62 }
 0x5e2   :  { %7436 = vmatpush3.bf16.msra.mxu0 %v7435_v51 }
 0x5e3   :  { %7437 = vmatprep.subr.bf16.mxu0 %v8306_v62 }
 0x5e6   :  { %7439 = vmatpush3.bf16.msra.mxu0 %v7438_v54  ;;  %v7507_v54 = vpack.c.bf16 %v6112_v48, %v6111_v47 }
 0x5e7   :  { %6903 = vmatprep.subr.mxu0 %v8304_v41 }
 0x698   :  { %v1850_v55 = vpop.f32.mrb[8].mxu0 }
 0x699   :  { %v6827_v59 = vpop.f32.mrb[9].mxu0  ;;  %6901 = vmatmul.mubr.f32.vlgmr.msra.gmra.mrb[20].mxu1 %v1850_v55  ;;  %v6083_v55 = vld [vmem:[%s9524_s18 + $0x30] sm:$0xff] }
 0x69a   :  { %6951 = vmatprep.mubr.msk.f32.mxu1 %vm8305_vm3, %v8304_v41 }
 0x69c   :  { %v1941_v63 = vpop.f32.mrb[10].mxu0 }
 0x69d   :  { %v6832_v0 = vpop.f32.mrb[11].mxu0  ;;  %6866 = vmatmul.mubr.f32.vlgmr.msra.gmra.mrb[12].mxu0 %v1941_v63  ;;  %v6114_v63 = vld [vmem:[%s9524_s18 + $0x78] sm:$0xff] }
 0x69e   :  { %6904 = vmatpush3.msra.mxu0 %v1778_v27  ;;  %6905 = vmatprep.mubr.msk.f32.mxu0 %vm8305_vm3, %v8304_v41  ;;  %v7489_v27 = vpack.c.bf16 %v2274_v26, %v2273_v25  ;;  %v7498_v0 = vpack.c.bf16 %v6084_v61, %v6083_v55  ;;  %v6118_v25 = vld [vmem:[%s9525_s22 + $0x70] sm:$0xff]  ;;  %v6119_v26 = vld [vmem:[%s9525_s22 + $0x78] sm:$0xff] }
 0x69f   :  { %7464 = vmatprep.subr.bf16.mxu0 %v8306_v62 }
 0x6a0   :  { %7490 = vmatpush3.bf16.msra.mxu1 %v7489_v27  ;;  %v2990_v27 = vld [vmem:[%s9526_s9] sm:$0xff] }
 0x6a1   :  { %6906 = vmatmul.mubr.msk.f32.vlgmr.msra.gmra.mrb[14].mxu0 %vm1780_vm4, %v2103_v1  ;;  %7491 = vmatprep.subr.bf16.mxu1 %v8306_v62  ;;  %v7510_v1 = vpack.c.bf16 %v6114_v63, %v6113_v12 }
 0x6a2   :  { %7466 = vmatpush3.bf16.msra.mxu0 %v7465_v11  ;;  %6940 = vmatprep.mubr.msk.f32.mxu0 %vm8305_vm3, %v8304_v41  ;;  %v6086_v11 = vld [vmem:[%s9525_s22 + $0x20] sm:$0xff] }
 0x6a3   :  { %7467 = vmatprep.subr.bf16.mxu0 %v8306_v62 }
 0x6a4   :  { %7493 = vmatpush3.bf16.msra.mxu1 %v7492_v42 }
 0x6a5   :  { %7494 = vmatprep.subr.bf16.mxu1 %v8306_v62 }
 0x6a6   :  { %7469 = vmatpush3.bf16.msra.mxu0 %v7468_v4 }
 0x6a7   :  { %7470 = vmatprep.subr.bf16.mxu0 %v8306_v62 }
 0x6aa   :  { %7472 = vmatpush3.bf16.msra.mxu0 %v7471_v7 }
 0x6ab   :  { %7473 = vmatprep.subr.bf16.mxu0 %v8306_v62 }
 0x6ae   :  { %7475 = vmatpush3.bf16.msra.mxu0 %v7474_v10 }
 0x6af   :  { %7476 = vmatprep.subr.bf16.mxu0 %v8306_v62 }
 0x6b2   :  { %7478 = vmatpush3.bf16.msra.mxu0 %v7477_v15  ;;  %v2350_v15 = vld [vmem:[%s9525_s22] sm:$0xff] }
 0x6b3   :  { %7479 = vmatprep.subr.bf16.mxu0 %v8306_v62 }
 0x6b6   :  { %7481 = vmatpush3.bf16.msra.mxu0 %v7480_v18  ;;  %v2353_v18 = vld [vmem:[%s9525_s22 + $0x18] sm:$0xff] }
 0x6b7   :  { %7482 = vmatprep.subr.bf16.mxu0 %v8306_v62 }
 0x6ba   :  { %7484 = vmatpush3.bf16.msra.mxu0 %v7483_v21  ;;  %v6105_v21 = vld [vmem:[%s9525_s22 + $0x50] sm:$0xff] }
 0x6bb   :  { %7485 = vmatprep.subr.bf16.mxu0 %v8306_v62 }
 0x6be   :  { %7487 = vmatpush3.bf16.msra.mxu0 %v7486_v24  ;;  %v6117_v24 = vld [vmem:[%s9525_s22 + $0x68] sm:$0xff] }
 0x6bf   :  { %7500 = vmatprep.subr.bf16.mxu0 %v8306_v62 }
 0x76c   :  { %v2098_v28 = vpop.f32.mrb[20].mxu1 }
 0x76d   :  { %v6902_v29 = vpop.f32.mrb[21].mxu1 }
 0x770   :  { %v2028_v32 = vpop.f32.mrb[12].mxu0 }
 0x771   :  { %v2099_v33 = vadd.f32 %v2098_v28, %v2028_v32  ;;  %v6867_v34 = vpop.f32.mrb[13].mxu0 }
 0x774   :  { %v2173_v36 = vpop.f32.mrb[14].mxu0 }
 0x775   :  { %v6907_v37 = vpop.f32.mrb[15].mxu0  ;;  %6941 = vmatmul.mubr.f32.vlgmr.msra.gmra.mrb[16].mxu0 %v2173_v36 }
 0x776   :  { %7502 = vmatpush3.bf16.msra.mxu0 %v7501_v35  ;;  %6989 = vmatprep.mubr.msk.f32.mxu0 %vm8305_vm3, %v8304_v41 }
 0x777   :  { %7503 = vmatprep.subr.bf16.mxu0 %v8306_v62 }
 0x77a   :  { %7505 = vmatpush3.bf16.msra.mxu0 %v7504_v44  ;;  %v6128_v44 = vld [vmem:[%s9527_s0] ss:$0 sm:$0xff] }
 0x77b   :  { %7506 = vmatprep.subr.bf16.mxu0 %v8306_v62 }
 0x848   :  { %v2260_v49 = vpop.f32.mrb[16].mxu0 }
 0x849   :  { %v2264_v51 = vadd.f32 %v2260_v49, %v2099_v33  ;;  %v6942_v52 = vpop.f32.mrb[17].mxu0 }
 0x84b   :  { %v2272_v59 = vadd.f32 %v6079_v50, %v2264_v51 }
 0x84d   :  { %6952 = vmatmul.mubr.msk.f32.vlgmr.msra.gmra.mrb[22].mxu1 %vm291_vm0, %v2272_v59  ;;  %6990 = vmatmul.mubr.msk.f32.vlgmr.msra.gmra.mrb[18].mxu0 %vm291_vm0, %v2272_v59 }
 0x84e   :  { %7496 = vmatpush3.bf16.msra.mxu1 %v7495_v53  ;;  %7508 = vmatpush3.bf16.msra.mxu0 %v7507_v54 }
 0x84f   :  { %7497 = vmatprep.subr.bf16.mxu1 %v8306_v62  ;;  %7509 = vmatprep.subr.bf16.mxu0 %v8306_v62 }
 0x850   :  { %6962 = vmatprep.mubr.msk.f32.mxu1 %vm8305_vm3, %v8304_v41  ;;  %7008 = vmatprep.mubr.msk.f32.mxu0 %vm8305_vm3, %v8304_v41 }
 0x852   :  { %7499 = vmatpush3.bf16.msra.mxu1 %v7498_v0  ;;  %7511 = vmatpush3.bf16.msra.mxu0 %v7510_v1 }
 0x853   :  { %7019 = vmatprep.subr.mxu0 %v2990_v27 }
 0x855   :  { %6963 = vmatmul.mubr.msk.f32.vlgmr.msra.gmra.mrb[24].mxu1 %vm291_vm0, %v2272_v59  ;;  %7009 = vmatmul.mubr.msk.f32.vlgmr.msra.gmra.mrb[20].mxu0 %vm291_vm0, %v2272_v59 }
 0x856   :  { %6967 = vmatprep.mubr.msk.f32.mxu1 %vm1780_vm4, %v6086_v11  ;;  %7020 = vmatpush3.msra.mxu0 %v2990_v27  ;;  %v3217_v27 = vld [vmem:[%s9528_s21] sm:$0xff] }
 0x920   :  { %v2346_v2 = vpop.f32.mrb[22].mxu1  ;;  %v2699_v3 = vpop.f32.mrb[18].mxu0 }
 0x921   :  { %v6953_v4 = vpop.f32.mrb[23].mxu1  ;;  %v6991_v5 = vpop.f32.mrb[19].mxu0 }
 0x922   :  { %v9012_v5 = vand.u32 127, %v1035_v56 }
 0x928   :  { %v2425_v6 = vpop.f32.mrb[24].mxu1  ;;  %v2880_v7 = vpop.f32.mrb[20].mxu0 }
 0x929   :  { %v6964_v9 = vpop.f32.mrb[25].mxu1  ;;  %6965 = vmatprep.subr.mxu1 %v2425_v6  ;;  %v7010_v10 = vpop.f32.mrb[21].mxu0 }
 0x92a   :  { %6966 = vmatpush3.msra.mxu1 %v2425_v6 }
 0x92b   :  { %6968 = vmatmul.mubr.msk.f32.vlgmr.msra.gmra.mrb[26].mxu1 %vm1780_vm4, %v6087_v8  ;;  %6973 = vmatprep.subr.mxu1 %v2346_v2 }
 0x92c   :  { %6974 = vmatpush3.msra.mxu1 %v2346_v2  ;;  %6970 = vmatprep.mubr.msk.f32.mxu1 %vm1780_vm4, %v6088_v13 }
 0x92d   :  { %6992 = vmatprep.subr.mxu1 %v2699_v3 }
 0x92f   :  { %6971 = vmatmul.mubr.msk.f32.gmra.mrb[28].mxu1 %vm1780_vm4, %v6089_v14 }
 0x930   :  { %6975 = vmatprep.mubr.msk.f32.mxu1 %vm1780_vm4, %v2350_v15 }
 0x933   :  { %6976 = vmatmul.mubr.msk.f32.vlgmr.msra.gmra.mrb[26].mxu1 %vm1780_vm4, %v2351_v16 }
 0x934   :  { %6993 = vmatpush3.msra.mxu1 %v2699_v3  ;;  %6978 = vmatprep.mubr.msk.f32.mxu1 %vm1780_vm4, %v2352_v17 }
 0x935   :  { %7011 = vmatprep.subr.mxu1 %v2880_v7 }
 0x937   :  { %6979 = vmatmul.mubr.msk.f32.gmra.mrb[28].mxu1 %vm1780_vm4, %v2353_v18 }
 0x938   :  { %6994 = vmatprep.mubr.msk.f32.mxu1 %vm1780_vm4, %v6103_v19 }
 0x93b   :  { %6995 = vmatmul.mubr.msk.f32.vlgmr.msra.gmra.mrb[26].mxu1 %vm1780_vm4, %v6104_v20 }
 0x93c   :  { %7012 = vmatpush3.msra.mxu1 %v2880_v7  ;;  %6997 = vmatprep.mubr.msk.f32.mxu1 %vm1780_vm4, %v6105_v21 }
 0x93d   :  { %7528 = vmatprep.subr.bf16.mxu1 %v8306_v62 }
 0x93f   :  { %6998 = vmatmul.mubr.msk.f32.gmra.mrb[28].mxu1 %vm1780_vm4, %v6106_v22 }
 0x940   :  { %7013 = vmatprep.mubr.msk.f32.mxu1 %vm1780_vm4, %v6116_v23 }
 0x943   :  { %7014 = vmatmul.mubr.msk.f32.vlgmr.msra.gmra.mrb[26].mxu1 %vm1780_vm4, %v6117_v24 }
 0x944   :  { %7016 = vmatprep.mubr.msk.f32.mxu1 %vm1780_vm4, %v6118_v25 }
 0x947   :  { %7017 = vmatmul.mubr.msk.f32.gmra.mrb[28].mxu1 %vm1780_vm4, %v6119_v26 }
 0x948   :  { %7057 = vmatprep.mubr.msk.f32.mxu1 %vm8305_vm3, %v8304_v41 }
 0xa16   :  { %v8966_v28 = vpop.f32.mrb[26].mxu1 }
 0xa17   :  { %v8968_v29 = vpop.f32.mrb[27].mxu1  ;;  %v2992_v33 = vmul.f32 %v8966_v28, %v8966_v28 }
 0xa18   :  { %7021 = vmatprep.mubr.msk.f32.mxu0 %vm1780_vm4, %v8968_v29  ;;  %v2991_v30 = vmul.f32 %v8968_v29, %v8968_v29 }
 0xa19   :  { %7022 = vmatmul.mubr.msk.f32.vlgmr.msra.gmra.mrb[22].mxu0 %vm1780_vm4, %v8966_v28  ;;  %v2998_v36 = vsel %vm1780_vm4, %v2992_v33, 0.0 }
 0xa1a   :  { %v8976_v31 = vpop.f32.mrb[28].mxu1  ;;  %v2995_v32 = vsel %vm1780_vm4, %v2991_v30, 0.0  ;;  %v3218_v30 = vld [vmem:[%s9528_s21 + $0x8] sm:$0xff] }
 0xa1b   :  { %2996 = vadd.xlane.f32.xlu0 %v2995_v32  ;;  %v8981_v34 = vpop.f32.mrb[29].mxu1  ;;  %v2994_v38 = vmul.f32 %v8976_v31, %v8976_v31  ;;  %v3219_v32 = vld [vmem:[%s9528_s21 + $0x10] sm:$0xff]  ;;  %v7512_v33 = vpack.c.bf16 %v3218_v30, %v3217_v27 }
 0xa1c   :  { %7024 = vmatprep.mubr.msk.f32.mxu0 %vm1780_vm4, %v8981_v34  ;;  %v2993_v35 = vmul.f32 %v8981_v34, %v8981_v34 }
 0xa1d   :  { %7025 = vmatmul.mubr.msk.f32.gmra.mrb[24].mxu0 %vm1780_vm4, %v8976_v31  ;;  %v3004_v39 = vsel %vm1780_vm4, %v2994_v38, 0.0  ;;  %7513 = vmatprep.subr.bf16.mxu0 %v7512_v33 }
 0xa1e   :  { %v3001_v37 = vsel %vm1780_vm4, %v2993_v35, 0.0  ;;  %v3220_v35 = vld [vmem:[%s9528_s21 + $0x18] sm:$0xff]  ;;  %7515 = vmatpush3.bf16.msra.mxu0 %v7512_v33 }
 0xa1f   :  { %2999 = vadd.xlane.f32.xlu0 %v2998_v36  ;;  %3002 = vadd.xlane.f32.xlu1 %v3001_v37  ;;  %v7516_v36 = vpack.c.bf16 %v3220_v35, %v3219_v32 }
 0xa21   :  { %7517 = vmatprep.subr.bf16.mxu0 %v7516_v36 }
 0xa22   :  { %7519 = vmatpush3.bf16.msra.mxu0 %v7516_v36 }
 0xa23   :  { %3005 = vadd.xlane.f32.xlu1 %v3004_v39 }
 0xaa8   :  { %v2997_v40 = vpop.xlane.xlu0 %2996 }
 0xaa9   :  { %v3111_v49 = vadd.f32 %v6128_v44, %v2997_v40 }
 0xaac   :  { %v3003_v42 = vpop.xlane.xlu1 %3002  ;;  %v3000_v43 = vpop.xlane.xlu0 %2999 }
 0xaad   :  { %v3112_v46 = vadd.f32 %v6128_v44, %v3000_v43  ;;  %v3113_v63 = vadd.f32 %v6128_v44, %v3003_v42 }
 0xab0   :  { %v3006_v50 = vpop.xlane.xlu1 %3005 }
 0xab1   :  { %v3114_v55 = vadd.f32 %v6128_v44, %v3006_v50 }
 0xaec   :  { %v7023_v45 = vpop.f32.mrb[22].mxu0 }
 0xaed   :  { %v3116_v47 = vmul.f32 2.0, %v7023_v45  ;;  %v3085_v48 = vpop.f32.mrb[23].mxu0 }
 0xaee   :  { %v3115_v51 = vmul.f32 2.0, %v3085_v48 }
 0xaef   :  { %v8995_v52 = vsub.f32 %v3112_v46, %v3116_v47 }
 0xaf0   :  { %v8997_v53 = vsub.f32 %v3111_v49, %v3115_v51  ;;  %v7026_v54 = vpop.f32.mrb[24].mxu0 }
 0xaf1   :  { %v3118_v59 = vmul.f32 2.0, %v7026_v54  ;;  %v3095_v61 = vpop.f32.mrb[25].mxu0  ;;  %v3128_v12 = vsel %vm490_vm1, %v8995_v52, inf }
 0xaf2   :  { %v3117_v0 = vmul.f32 2.0, %v3095_v61  ;;  %3129 = vmin.xlane.f32.xlu1 %v3128_v12  ;;  %v3125_v1 = vsel %vm490_vm1, %v8997_v53, inf  ;;  %v3222_v61 = vld [vmem:[%s9528_s21 + $0x28] sm:$0xff] }
 0xaf3   :  { %v9003_v11 = vsub.f32 %v3114_v55, %v3118_v59  ;;  %3126 = vmin.xlane.f32.xlu0 %v3125_v1  ;;  %v3221_v59 = vld [vmem:[%s9528_s21 + $0x20] sm:$0xff] }
 0xaf4   :  { %v9005_v2 = vsub.f32 %v3113_v63, %v3117_v0  ;;  %v7520_v12 = vpack.c.bf16 %v3222_v61, %v3221_v59  ;;  %v3223_v63 = vld [vmem:[%s9528_s21 + $0x30] sm:$0xff]  ;;  %v3224_v0 = vld [vmem:[%s9528_s21 + $0x38] sm:$0xff] }
 0xaf5   :  { %v3134_v3 = vsel %vm490_vm1, %v9003_v11, inf  ;;  %v7524_v1 = vpack.c.bf16 %v3224_v0, %v3223_v63 }
 0xaf6   :  { %3135 = vmin.xlane.f32.xlu1 %v3134_v3  ;;  %v3131_v4 = vsel %vm490_vm1, %v9005_v2, inf  ;;  %7521 = vmatprep.subr.bf16.mxu0 %v7520_v12 }
 0xaf7   :  { %3132 = vmin.xlane.f32.xlu0 %v3131_v4  ;;  %7523 = vmatpush3.bf16.msra.mxu0 %v7520_v12 }
 0xaf8   :  { %7525 = vmatprep.subr.bf16.mxu0 %v7524_v1 }
 0xafb   :  { %7527 = vmatpush3.bf16.msra.mxu0 %v7524_v1 }
 0xafc   :  { %7540 = vmatprep.subr.bf16.mxu0 %v8306_v62 }
 0xb7f   :  { %v9014_v6 = vpop.xlane.xlu1 %3129 }
 0xb80   :  { %vm3138_vm5 = vcmp.le.f32.partialorder %v8995_v52, %v9014_v6  ;;  %v9018_v7 = vpop.xlane.xlu0 %3126 }
 0xb81   :  { %v3142_v8 = vsel %vm3138_vm5, %v9012_v5, 64  ;;  %vm3137_vm6 = vcmp.le.f32.partialorder %v8997_v53, %v9018_v7 }
 0xb82   :  { %v3141_v9 = vsel %vm3137_vm6, %v9012_v5, 64  ;;  %v3160_v10 = vsel %vm490_vm1, %v3142_v8, 2147483647 }
 0xb83   :  { %v9025_v13 = vpop.xlane.xlu1 %3135  ;;  %v3162_v56 = vshra.s32 %v3160_v10, 16  ;;  %v3145_v14 = vsel %vm490_vm1, %v3141_v9, 2147483647  ;;  %v3161_v37 = vand.u32 65535, %v3160_v10 }
 0xb84   :  { %vm3140_vm7 = vcmp.le.f32.partialorder %v9003_v11, %v9025_v13  ;;  %v9030_v15 = vpop.xlane.xlu0 %3132  ;;  %v3147_v16 = vshra.s32 %v3145_v14, 16  ;;  %v3146_v38 = vand.u32 65535, %v3145_v14  ;;  %v3325_v59 = vsub.f32 %v9025_v13, %v9003_v11 }
 0xb85   :  { %v3144_v17 = vsel %vm3140_vm7, %v9012_v5, 64  ;;  %vm3139_vm8 = vcmp.le.f32.partialorder %v9005_v2, %v9030_v15  ;;  %v3164_v19 = vcvt.s32.f32 %v3162_v56  ;;  %v3163_v42 = vcvt.s32.f32 %v3161_v37 }
 0xb86   :  { %v3143_v18 = vsel %vm3139_vm8, %v9012_v5, 64  ;;  %v3149_v20 = vcvt.s32.f32 %v3147_v16  ;;  %v3190_v21 = vsel %vm490_vm1, %v3144_v17, 2147483647  ;;  %v3148_v43 = vcvt.s32.f32 %v3146_v38 }
 0xb87   :  { %v3175_v22 = vsel %vm490_vm1, %v3143_v18, 2147483647  ;;  %3165 = vmin.xlane.f32.xlu1 %v3164_v19  ;;  %v3192_v23 = vshra.s32 %v3190_v21, 16  ;;  %v3191_v44 = vand.u32 65535, %v3190_v21  ;;  %v3332_v61 = vmul.f32 1.442695, %v3325_v59 }
 0xb88   :  { %3150 = vmin.xlane.f32.xlu0 %v3149_v20  ;;  %v3177_v24 = vshra.s32 %v3175_v22, 16  ;;  %v3176_v45 = vand.u32 65535, %v3175_v22  ;;  %vm3401_vm7 = vcmask 516096   ;;  %vm5787_vm8 = vcmask 0  }
 0xb89   :  { %v3194_v25 = vcvt.s32.f32 %v3192_v23  ;;  %v3193_v50 = vcvt.s32.f32 %v3191_v44 }
 0xb8a   :  { %v3179_v26 = vcvt.s32.f32 %v3177_v24  ;;  %v3178_v51 = vcvt.s32.f32 %v3176_v45 }
 0xb8b   :  { %3195 = vmin.xlane.f32.xlu1 %v3194_v25 }
 0xb8c   :  { %3180 = vmin.xlane.f32.xlu0 %v3179_v26 }
 0xc14   :  { %v3166_v39 = vpop.xlane.xlu1 %3165 }
 0xc15   :  { %v3151_v40 = vpop.xlane.xlu0 %3150  ;;  %vm3167_vm9 = vcmp.eq.f32.partialorder %v3164_v19, %v3166_v39  ;;  %v3172_v3 = vcvt.f32.s32 %v3166_v39 }
 0xc16   :  { %vm3152_vm10 = vcmp.eq.f32.partialorder %v3149_v20, %v3151_v40  ;;  %v3168_v46 = vsel %vm3167_vm9, %v3163_v42, inf  ;;  %v3157_v4 = vcvt.f32.s32 %v3151_v40 }
 0xc17   :  { %v3153_v47 = vsel %vm3152_vm10, %v3148_v43, inf  ;;  %3169 = vmin.xlane.f32.xlu1 %v3168_v46  ;;  %v3173_v14 = vshll.u32 %v3172_v3, 16 }
 0xc18   :  { %3154 = vmin.xlane.f32.xlu0 %v3153_v47  ;;  %v3196_v48 = vpop.xlane.xlu1 %3195  ;;  %v3158_v16 = vshll.u32 %v3157_v4, 16 }
 0xc19   :  { %v3181_v49 = vpop.xlane.xlu0 %3180  ;;  %vm3197_vm11 = vcmp.eq.f32.partialorder %v3194_v25, %v3196_v48  ;;  %v3202_v8 = vcvt.f32.s32 %v3196_v48 }
 0xc1a   :  { %vm3182_vm12 = vcmp.eq.f32.partialorder %v3179_v26, %v3181_v49  ;;  %v3198_v54 = vsel %vm3197_vm11, %v3193_v50, inf  ;;  %v3187_v9 = vcvt.f32.s32 %v3181_v49 }
 0xc1b   :  { %v3183_v55 = vsel %vm3182_vm12, %v3178_v51, inf  ;;  %3199 = vmin.xlane.f32.xlu1 %v3198_v54  ;;  %v3203_v21 = vshll.u32 %v3202_v8, 16  ;;  %v3323_v51 = vsub.f32 %v9014_v6, %v8995_v52 }
 0xc1c   :  { %3184 = vmin.xlane.f32.xlu0 %v3183_v55  ;;  %v3188_v22 = vshll.u32 %v3187_v9, 16 }
 0xc1d   :  { %v3328_v55 = vmul.f32 1.442695, %v3323_v51 }
 0xca4   :  { %v3170_v10 = vpop.xlane.xlu1 %3169 }
 0xca5   :  { %v3155_v56 = vpop.xlane.xlu0 %3154  ;;  %v3171_v17 = vcvt.f32.s32 %v3170_v10 }
 0xca6   :  { %v3156_v18 = vcvt.f32.s32 %v3155_v56 }
 0xca7   :  { %v3174_v19 = vadd.s32 %v3173_v14, %v3171_v17 }
 0xca8   :  { %v3159_v20 = vadd.s32 %v3158_v16, %v3156_v18  ;;  %v3200_v23 = vpop.xlane.xlu1 %3199  ;;  %v3322_v16 = vsub.f32 %v9018_v7, %v8997_v53 }
 0xca9   :  { %v3185_v24 = vpop.xlane.xlu0 %3184  ;;  %vm3206_vm14 = vcmp.eq.s32.totalorder %v9012_v5, %v3174_v19  ;;  %5779 = vst.msk [vmem:[%s8453_s6 + $0x8] sm:$0xff] %vm5777_vm13, %v3174_v19  ;;  %v3201_v25 = vcvt.f32.s32 %v3200_v23  ;;  %v3324_v19 = vsub.f32 %v9030_v15, %v9005_v2 }
 0xcaa   :  { %5778 = vst.msk [vmem:[%s8453_s6] sm:$0xff] %vm5777_vm13, %v3159_v20  ;;  %v3186_v26 = vcvt.f32.s32 %v3185_v24  ;;  %vm3205_vm15 = vcmp.eq.s32.totalorder %v9012_v5, %v3159_v20  ;;  %v6130_v27 = vsel %vm3206_vm14, 1.0, %v8304_v41  ;;  %v3326_v18 = vmul.f32 1.442695, %v3322_v16 }
 0xcab   :  { %v6129_v30 = vsel %vm3205_vm15, 1.0, %v8304_v41  ;;  %v3204_v32 = vadd.s32 %v3203_v21, %v3201_v25  ;;  %v3383_v36 = vsel %vm490_vm1, %v6130_v27, 0.0 }
 0xcac   :  { %v3189_v33 = vadd.s32 %v3188_v22, %v3186_v26  ;;  %7043 = vmatprep.mubr.msk.f32.mxu0 %vm490_vm1, %v6129_v30  ;;  %v3382_v35 = vsel %vm490_vm1, %v6129_v30, 0.0 }
 0xcad   :  { %v3384_v37 = vadd.f32 %v3383_v36, %v3382_v35  ;;  %7044 = vmatmul.mubr.msk.f32.vlgmr.msra.gmra.mrb[26].mxu0 %vm490_vm1, %v6130_v27  ;;  %5781 = vst.msk [vmem:[%s8453_s6 + $0x18] sm:$0xff] %vm5777_vm13, %v3204_v32  ;;  %vm3208_vm6 = vcmp.eq.s32.totalorder %v9012_v5, %v3204_v32  ;;  %v3330_v27 = vmul.f32 1.442695, %v3324_v19  ;;  %v3417_v35 = vld [vmem:[#allocation20] sm:$0xff]  ;;  %v3716_v36 = vld [vmem:[#allocation20 + $0x10] sm:$0xff] }
 0xcae   :  { %5780 = vst.msk [vmem:[%s8453_s6 + $0x10] sm:$0xff] %vm5777_vm13, %v3189_v33  ;;  %vm3207_vm5 = vcmp.eq.s32.totalorder %v9012_v5, %v3189_v33  ;;  %v6132_v39 = vsel %vm3208_vm6, 1.0, %v8304_v41 }
 0xcaf   :  { %v6131_v38 = vsel %vm3207_vm5, 1.0, %v8304_v41  ;;  %v3387_v43 = vsel %vm490_vm1, %v6132_v39, 0.0 }
 0xcb0   :  { %7046 = vmatprep.mubr.msk.f32.mxu0 %vm490_vm1, %v6131_v38  ;;  %v3385_v40 = vsel %vm490_vm1, %v6131_v38, 0.0 }
 0xcb1   :  { %v3386_v42 = vadd.f32 %v3385_v40, %v3384_v37  ;;  %7047 = vmatmul.mubr.msk.f32.gmra.mrb[28].mxu0 %vm490_vm1, %v6132_v39  ;;  %v3493_v40 = vld [vmem:[#allocation20 + $0x8] sm:$0xff] }
 0xcb2   :  { %7089 = vmatprep.mubr.msk.f32.mxu0 %vm8305_vm3, %v8304_v41 }
 0xcb3   :  { %v3388_v44 = vadd.f32 %v3387_v43, %v3386_v42  ;;  %v3867_v42 = vld [vmem:[#allocation20 + $0x18] sm:$0xff] }
 0xcb5   :  { %v3389_v45 = vrot.slane %v3388_v44, 4 }
 0xcb7   :  { %v3390_v46 = vadd.f32 %v3389_v45, %v3388_v44 }
 0xcb9   :  { %v3391_v5 = vrot.slane %v3390_v46, 2 }
 0xcbb   :  { %v3392_v47 = vadd.f32 %v3391_v5, %v3390_v46  ;;  %v3568_v46 = vld [vmem:[#allocation22 + $0x8] sm:$0xff] }
 0xcbd   :  { %v3393_v48 = vrot.slane %v3392_v47, 1 }
 0xcbf   :  { %v3394_v49 = vadd.f32 %v3393_v48, %v3392_v47 }
 0xcc1   :  { %v3396_v50 = vmul.f32 0.03125, %v3394_v49 }
 0xcc3   :  { %v3397_v54 = vadd.f32 1e-10, %v3396_v50 }
 0xcc5   :  { %7869 = vlog2.f32 %v3397_v54 }
 0xcc6   :  { %7871 = vpow2.f32 %v3328_v55 }
 0xcc7   :  { %7873 = vpow2.f32 %v3332_v61 }
 0xccf   :  { %v7870_v12 = vpop.eup %7869 }
 0xcd0   :  { %v3399_v63 = vmul.f32 0.6931472, %v7870_v12  ;;  %v7872_v3 = vpop.eup %7871 }
 0xcd1   :  { %v3337_v4 = vsel %vm490_vm1, %v7872_v3, 0.0  ;;  %v7874_v8 = vpop.eup %7873 }
 0xcd2   :  { %v3400_v0 = vmul.f32 %v3399_v63, %v3396_v50  ;;  %v3343_v52 = vsel %vm490_vm1, %v7874_v8, 0.0 }
 0xcd4   :  { %v3402_v1 = vsel %vm3401_vm7, %v3400_v0, 0.0 }
 0xcd5   :  { %3403 = vadd.xlane.f32.xlu1 %v3402_v1 }
 0xcd9   :  { %3338 = vadd.xlane.f32.xlu1 %v3337_v4 }
 0xcdd   :  { %3344 = vadd.xlane.f32.xlu1 %v3343_v52 }
 0xd62   :  { %v9079_v6 = vpop.xlane.xlu1 %3403 }
 0xd63   :  { %v3405_v5 = vrot.slane %v9079_v6, 4 }
 0xd65   :  { %v3406_v47 = vadd.f32 %v3405_v5, %v9079_v6  ;;  %v4399_v5 = vld [vmem:[#allocation14 + $0x50] sm:$0xff] }
 0xd66   :  { %v3339_v11 = vpop.xlane.xlu1 %3338 }
 0xd67   :  { %7875 = vrcp.f32 %v3339_v11  ;;  %v3407_v48 = vrot.slane %v3406_v47, 2 }
 0xd69   :  { %v3408_v55 = vadd.f32 %v3407_v48, %v3406_v47  ;;  %v4400_v47 = vld [vmem:[#allocation14 + $0x58] sm:$0xff] }
 0xd6a   :  { %v3345_v13 = vpop.xlane.xlu1 %3344  ;;  %v7568_v48 = vpack.c.bf16 %v4400_v47, %v4399_v5  ;;  %v6154_v5 = vld [vmem:[%s9529_s3 + $0x10] sm:$0xff]  ;;  %v6155_v47 = vld [vmem:[%s9529_s3 + $0x18] sm:$0xff] }
 0xd6b   :  { %7877 = vrcp.f32 %v3345_v13  ;;  %v3409_v63 = vrot.slane %v3408_v55, 1 }
 0xd6c   :  { %7879 = vpow2.f32 %v3326_v18 }
 0xd6d   :  { %7881 = vpow2.f32 %v3330_v27  ;;  %v4172_v27 = vld [vmem:[#allocation14 + $0x28] sm:$0xff] }
 0xd71   :  { %v7876_v9 = vpop.eup %7875 }
 0xd72   :  { %v3351_v10 = vmul.f32 %v7876_v9, %v7872_v3  ;;  %v3410_v3 = vadd.f32 %v3409_v63, %v3408_v55  ;;  %v6161_v63 = vld [vmem:[%s9530_s17 + $0x118] sm:$0xff] }
 0xd74   :  { %5783 = vst.msk [vmem:[#allocation23 + $0x8] sm:$0xff] %vm490_vm1, %v3351_v10 }
 0xd75   :  { %v7878_v56 = vpop.eup %7877 }
 0xd76   :  { %v3353_v14 = vmul.f32 %v7878_v56, %v7874_v8  ;;  %v7880_v39 = vpop.eup %7879 }
 0xd77   :  { %v3334_v43 = vsel %vm490_vm1, %v7880_v39, 0.0  ;;  %v7882_v44 = vpop.eup %7881 }
 0xd78   :  { %5785 = vst.msk [vmem:[#allocation23 + $0x18] sm:$0xff] %vm490_vm1, %v3353_v14  ;;  %v3340_v45 = vsel %vm490_vm1, %v7882_v44, 0.0 }
 0xd80   :  { %v7045_v17 = vpop.f32.mrb[26].mxu0 }
 0xd81   :  { %v3355_v20 = vsub.f32 %v7045_v17, %v8966_v28  ;;  %v3303_v21 = vpop.f32.mrb[27].mxu0 }
 0xd82   :  { %v3354_v22 = vsub.f32 %v3303_v21, %v8968_v29  ;;  %v7529_v23 = vpack.c.bf16 %v7045_v17, %v3303_v21  ;;  %v3491_v17 = vld [vmem:[#allocation22] sm:$0xff] }
 0xd83   :  { %v3359_v24 = vmul.f32 %v3355_v20, %v3355_v20 }
 0xd84   :  { %v3358_v25 = vmul.f32 %v3354_v22, %v3354_v22  ;;  %v7048_v26 = vpop.f32.mrb[28].mxu0  ;;  %7530 = vmatpush3.bf16.msra.mxu1 %v7529_v23  ;;  %7542 = vmatpush3.bf16.msra.mxu0 %v7529_v23 }
 0xd85   :  { %v3363_v53 = vsel %vm1780_vm4, %v3359_v24, 0.0  ;;  %v3357_v7 = vsub.f32 %v7048_v26, %v8976_v31  ;;  %v3313_v30 = vpop.f32.mrb[29].mxu0  ;;  %7531 = vmatprep.subr.bf16.mxu1 %v8306_v62  ;;  %7543 = vmatprep.subr.bf16.mxu0 %v8306_v62  ;;  %v3942_v24 = vld [vmem:[#allocation22 + $0x18] sm:$0xff] }
 0xd86   :  { %v3362_v28 = vsel %vm1780_vm4, %v3358_v25, 0.0  ;;  %v3356_v29 = vsub.f32 %v3313_v30, %v8981_v34  ;;  %v7532_v2 = vpack.c.bf16 %v7048_v26, %v3313_v30  ;;  %v4171_v26 = vld [vmem:[#allocation14 + $0x20] sm:$0xff]  ;;  %v4017_v30 = vld [vmem:[#allocation13] sm:$0xff] }
 0xd87   :  { %v3364_v15 = vadd.f32 %v3363_v53, %v3362_v28  ;;  %v3361_v32 = vmul.f32 %v3357_v7, %v3357_v7  ;;  %v4091_v53 = vld [vmem:[#allocation14] sm:$0xff]  ;;  %v4092_v7 = vld [vmem:[#allocation14 + $0x8] sm:$0xff]  ;;  %v4096_v28 = vld [vmem:[#allocation13 + $0x8] sm:$0xff] }
 0xd88   :  { %v3360_v33 = vmul.f32 %v3356_v29, %v3356_v29  ;;  %7533 = vmatpush3.bf16.msra.mxu1 %v7532_v2  ;;  %7545 = vmatpush3.bf16.msra.mxu0 %v7532_v2 }
 0xd89   :  { %7534 = vmatprep.subr.bf16.mxu1 %v8306_v62  ;;  %7546 = vmatprep.subr.bf16.mxu0 %v8306_v62  ;;  %v3367_v37 = vsel %vm1780_vm4, %v3361_v32, 0.0  ;;  %v4173_v32 = vld [vmem:[#allocation14 + $0x30] sm:$0xff] }
 0xd8a   :  { %v3365_v31 = vsel %vm1780_vm4, %v3360_v33, 0.0 }
 0xd8b   :  { %7058 = vmatmul.mubr.msk.f32.vlgmr.msra.gmra.mrb[30].mxu1 %vm291_vm0, %v3417_v35  ;;  %7090 = vmatmul.mubr.msk.f32.vlgmr.msra.gmra.mrb[30].mxu0 %vm291_vm0, %v3716_v36  ;;  %v3366_v34 = vadd.f32 %v3365_v31, %v3364_v15  ;;  %v7559_v15 = vpack.c.bf16 %v4092_v7, %v4091_v53  ;;  %v4174_v35 = vld [vmem:[#allocation14 + $0x38] sm:$0xff]  ;;  %v4093_v36 = vld [vmem:[#allocation14 + $0x10] sm:$0xff] }
 0xd8c   :  { %7536 = vmatpush3.bf16.msra.mxu1 %v7529_v23  ;;  %7548 = vmatpush3.bf16.msra.mxu0 %v7529_v23  ;;  %v3791_v23 = vld [vmem:[#allocation22 + $0x10] sm:$0xff]  ;;  %v6174_v53 = vld [vmem:[%s9530_s17 + $0x180] sm:$0xff] }
 0xd8d   :  { %7537 = vmatprep.subr.bf16.mxu1 %v8306_v62  ;;  %7549 = vmatprep.subr.bf16.mxu0 %v8306_v62  ;;  %v3368_v38 = vadd.f32 %v3367_v37, %v3366_v34  ;;  %v4094_v31 = vld [vmem:[#allocation14 + $0x18] sm:$0xff]  ;;  %v7556_v34 = vpack.c.bf16 %v4174_v35, %v4173_v32  ;;  %v6185_v35 = vld [vmem:[%s9530_s17 + $0x1d8] sm:$0xff] }
 0xd8e   :  { %7068 = vmatprep.mubr.msk.f32.mxu1 %vm8305_vm3, %v8304_v41  ;;  %7105 = vmatprep.mubr.msk.f32.mxu0 %vm8305_vm3, %v8304_v41  ;;  %v7562_v37 = vpack.c.bf16 %v4094_v31, %v4093_v36  ;;  %v6176_v7 = vld [vmem:[%s9530_s17 + $0x190] sm:$0xff] }
 0xd8f   :  { %3369 = vadd.xlane.f32.xlu0 %v3368_v38  ;;  %v4397_v38 = vld [vmem:[#allocation14 + $0x40] sm:$0xff] }
 0xd90   :  { %7539 = vmatpush3.bf16.msra.mxu1 %v7532_v2  ;;  %7551 = vmatpush3.bf16.msra.mxu0 %v7532_v2  ;;  %v7553_v2 = vpack.c.bf16 %v4172_v27, %v4171_v26  ;;  %v6180_v32 = vld [vmem:[%s9530_s17 + $0x1b0] sm:$0xff] }
 0xd91   :  { %7071 = vmatprep.subr.mxu1 %v8304_v41  ;;  %7113 = vmatprep.subr.mxu0 %v8304_v41 }
 0xd93   :  { %7069 = vmatmul.mubr.msk.f32.vlgmr.msra.gmra.mrb[32].mxu1 %vm291_vm0, %v3493_v40  ;;  %3335 = vadd.xlane.f32.xlu0 %v3334_v43 }
 0xd94   :  { %7106 = vmatmul.mubr.msk.f32.vlgmr.msra.gmra.mrb[32].mxu0 %vm291_vm0, %v3867_v42  ;;  %7073 = vmatprep.mubr.msk.f32.mxu1 %vm8305_vm3, %v8304_v41 }
 0xd95   :  { %7115 = vmatprep.mubr.msk.f32.mxu0 %vm8305_vm3, %v8304_v41  ;;  %7072 = vmatpush3.msra.mxu1 %v3568_v46  ;;  %v4322_v46 = vld [vmem:[#allocation13 + $0x10] sm:$0xff] }
 0xd96   :  { %7076 = vmatprep.subr.mxu1 %v8304_v41 }
 0xd97   :  { %3341 = vadd.xlane.f32.xlu0 %v3340_v45 }
 0xe1c   :  { %v3370_v49 = vpop.xlane.xlu0 %3369 }
 0xe1d   :  { %v3371_v50 = vrot.slane %v3370_v49, 4 }
 0xe1f   :  { %v3372_v51 = vadd.f32 %v3371_v50, %v3370_v49 }
 0xe20   :  { %v3336_v54 = vpop.xlane.xlu0 %3335 }
 0xe21   :  { %v3373_v59 = vrot.slane %v3372_v51, 2  ;;  %7883 = vrcp.f32 %v3336_v54 }
 0xe23   :  { %v3374_v61 = vadd.f32 %v3373_v59, %v3372_v51 }
 0xe24   :  { %v3342_v12 = vpop.xlane.xlu0 %3341 }
 0xe25   :  { %7885 = vrcp.f32 %v3342_v12  ;;  %v3375_v0 = vrot.slane %v3374_v61, 1  ;;  %v6159_v12 = vld [vmem:[%s9530_s17 + $0x108] sm:$0xff] }
 0xe27   :  { %v3376_v1 = vadd.f32 %v3375_v0, %v3374_v61  ;;  %v4484_v61 = vld [vmem:[%s9529_s3] sm:$0xff] }
 0xe28   :  { %v6158_v0 = vld [vmem:[%s9530_s17 + $0x100] sm:$0xff] }
 0xe29   :  { %7812 = vpush %v3376_v1  ;;  %v7570_v1 = vpack.c.bf16 %v6161_v63, %v6159_v12  ;;  %v4570_v12 = vld [vmem:[%s9530_s17 + $0x18] sm:$0xff] }
 0xe2a   :  { %7814 = vpush %v3410_v3  ;;  %v6160_v3 = vld [vmem:[%s9530_s17 + $0x110] sm:$0xff] }
 0xe2b   :  { %v7884_v4 = vpop.eup %7883 }
 0xe2c   :  { %v3350_v8 = vmul.f32 %v7884_v4, %v7880_v39  ;;  %v4398_v39 = vld [vmem:[#allocation14 + $0x48] sm:$0xff]  ;;  %v6163_v4 = vld [vmem:[%s9530_s17 + $0x128] sm:$0xff] }
 0xe2d   :  { %v7565_v40 = vpack.c.bf16 %v4398_v39, %v4397_v38 }
 0xe2e   :  { %5782 = vst.msk [vmem:[#allocation23] sm:$0xff] %vm490_vm1, %v3350_v8  ;;  %v6165_v8 = vld [vmem:[%s9530_s17 + $0x138] sm:$0xff] }
 0xe2f   :  { %v7886_v52 = vpop.eup %7885 }
 0xe30   :  { %v3352_v6 = vmul.f32 %v7886_v52, %v7882_v44  ;;  %v7572_v52 = vpack.c.bf16 %v6160_v3, %v6158_v0  ;;  %v4569_v3 = vld [vmem:[%s9530_s17 + $0x10] sm:$0xff] }
 0xe32   :  { %5784 = vst.msk [vmem:[#allocation23 + $0x10] sm:$0xff] %vm490_vm1, %v3352_v6  ;;  %v7574_v6 = vpack.c.bf16 %v6165_v8, %v6163_v4  ;;  %v4572_v8 = vld [vmem:[%s9530_s17 + $0x28] sm:$0xff] }
 0xe5a   :  { %s7813_s6 = spop %7812 }
 0xe5b   :  { %s3380_s26 = smul.f32 0.00390625, %s7813_s6  ;;  %s7815_s28 = spop %7814 }
 0xe5c   :  { %s3412_s1 = ssub.f32 0.0, %s7815_s28 }
 0xe5d   :  { %s3381_s24 = smul.f32 1.25, %s3380_s26 }
 0xe5e   :  { %v3413_v11 = vstv %s3412_s1  ;;  %v3487_v13 = vpop.f32.mrb[30].mxu1  ;;  %v3786_v9 = vpop.f32.mrb[30].mxu0 }
 0xe5f   :  { %v5786_v10 = vstv %s3381_s24  ;;  %v3414_v56 = vmul.f32 1.442695, %v3413_v11  ;;  %v7059_v14 = vpop.f32.mrb[31].mxu1  ;;  %v7091_v16 = vpop.f32.mrb[31].mxu0  ;;  %v6162_v11 = vld [vmem:[%s9530_s17 + $0x120] sm:$0xff] }
 0xe60   :  { %5788 = vst.msk [vmem:[#allocation24] sm:$0x1] %vm5787_vm8, %v5786_v10  ;;  %v6169_v10 = vld [vmem:[%s9530_s17 + $0x158] sm:$0xff]  ;;  %v6166_v16 = vld [vmem:[%s9530_s17 + $0x140] sm:$0xff] }
 0xe61   :  { %7887 = vpow2.f32 %v3414_v56 }
 0xe66   :  { %v3563_v18 = vpop.f32.mrb[32].mxu1 }
 0xe67   :  { %v7070_v19 = vpop.f32.mrb[33].mxu1  ;;  %7074 = vmatmul.mubr.msk.f32.vlgmr.msra.gmra.mrb[34].mxu1 %vm1780_vm4, %v3563_v18  ;;  %v3937_v20 = vpop.f32.mrb[32].mxu0  ;;  %v6171_v18 = vld [vmem:[%s9530_s17 + $0x168] sm:$0xff] }
 0xe68   :  { %7077 = vmatpush3.msra.mxu1 %v3491_v17  ;;  %7078 = vmatprep.mubr.msk.f32.mxu1 %vm8305_vm3, %v8304_v41  ;;  %v7107_v21 = vpop.f32.mrb[33].mxu0  ;;  %v6168_v17 = vld [vmem:[%s9530_s17 + $0x150] sm:$0xff]  ;;  %v6173_v19 = vld [vmem:[%s9530_s17 + $0x178] sm:$0xff] }
 0xe69   :  { %7092 = vmatprep.subr.mxu1 %v8304_v41  ;;  %v7582_v21 = vpack.c.bf16 %v6173_v19, %v6171_v18  ;;  %v4575_v19 = vld [vmem:[%s9530_s17 + $0x40] sm:$0xff] }
 0xe6b   :  { %v7888_v22 = vpop.eup %7887 }
 0xe6c   :  { %7816 = vpush %v7888_v22  ;;  %v6170_v22 = vld [vmem:[%s9530_s17 + $0x160] sm:$0xff] }
 0xe6f   :  { %7079 = vmatmul.mubr.msk.f32.vlgmr.msra.gmra.mrb[34].mxu1 %vm1780_vm4, %v3487_v13  ;;  %v6164_v13 = vld [vmem:[%s9530_s17 + $0x130] sm:$0xff] }
 0xe70   :  { %7093 = vmatpush3.msra.mxu1 %v3791_v23  ;;  %7094 = vmatprep.mubr.msk.f32.mxu1 %vm8305_vm3, %v8304_v41  ;;  %v7576_v56 = vpack.c.bf16 %v6164_v13, %v6162_v11  ;;  %v6172_v23 = vld [vmem:[%s9530_s17 + $0x170] sm:$0xff] }
 0xe71   :  { %7108 = vmatprep.subr.mxu1 %v8304_v41  ;;  %v7584_v26 = vpack.c.bf16 %v6172_v23, %v6170_v22  ;;  %v4580_v22 = vld [vmem:[%s9530_s17 + $0x68] sm:$0xff]  ;;  %v4582_v23 = vld [vmem:[%s9530_s17 + $0x78] sm:$0xff] }
 0xe77   :  { %7095 = vmatmul.mubr.msk.f32.vlgmr.msra.gmra.mrb[34].mxu1 %vm1780_vm4, %v3786_v9  ;;  %v6167_v9 = vld [vmem:[%s9530_s17 + $0x148] sm:$0xff] }
 0xe78   :  { %7109 = vmatpush3.msra.mxu1 %v3942_v24  ;;  %7110 = vmatprep.mubr.msk.f32.mxu1 %vm8305_vm3, %v8304_v41  ;;  %v7578_v14 = vpack.c.bf16 %v6169_v10, %v6167_v9  ;;  %v6175_v24 = vld [vmem:[%s9530_s17 + $0x188] sm:$0xff]  ;;  %v4571_v9 = vld [vmem:[%s9530_s17 + $0x20] sm:$0xff]  ;;  %v4573_v10 = vld [vmem:[%s9530_s17 + $0x30] sm:$0xff] }
 0xe79   :  { %7118 = vmatprep.subr.mxu1 %v8304_v41 }
 0xe7f   :  { %7111 = vmatmul.mubr.msk.f32.vlgmr.msra.gmra.mrb[34].mxu1 %vm1780_vm4, %v3937_v20  ;;  %v7580_v20 = vpack.c.bf16 %v6168_v17, %v6166_v16  ;;  %v4578_v16 = vld [vmem:[%s9530_s17 + $0x58] sm:$0xff]  ;;  %v7608_v17 = vpack.c.bf16 %v4573_v10, %v4571_v9  ;;  %v6204_v9 = vld [vmem:[%s9530_s17 + $0x250] sm:$0xff]  ;;  %v6207_v10 = vld [vmem:[%s9530_s17 + $0x268] sm:$0xff] }
 0xe80   :  { %7120 = vmatprep.mubr.msk.f32.mxu1 %vm8305_vm3, %v8304_v41 }
 0xe9d   :  { %s7817_s2 = spop %7816 }
 0xe9e   :  { %v5789_v25 = vstv %s7817_s2 }
 0xe9f   :  { %5790 = vst.msk [vmem:[#allocation26] sm:$0x1] %vm5787_vm8, %v5789_v25  ;;  %v6177_v25 = vld [vmem:[%s9530_s17 + $0x198] sm:$0xff] }
 0xea0   :  { %v7586_v27 = vpack.c.bf16 %v6177_v25, %v6175_v24 }
 0xf52   :  { %v4012_v29 = vpop.f32.mrb[34].mxu1 }
 0xf53   :  { %v7112_v33 = vpop.f32.mrb[35].mxu1  ;;  %7114 = vmatpush3.msra.mxu0 %v4012_v29  ;;  %7119 = vmatpush3.msra.mxu1 %v4012_v29 }
 0xf54   :  { %7116 = vmatmul.mubr.msk.f32.vlgmr.msra.gmra.mrb[34].mxu0 %vm1780_vm4, %v4017_v30  ;;  %7121 = vmatmul.mubr.msk.f32.vlgmr.msra.gmra.mrb[36].mxu1 %vm1780_vm4, %v4096_v28  ;;  %v6179_v30 = vld [vmem:[%s9530_s17 + $0x1a8] sm:$0xff]  ;;  %v6181_v28 = vld [vmem:[%s9530_s17 + $0x1b8] sm:$0xff] }
 0xf55   :  { %7552 = vmatprep.subr.bf16.mxu0 %v8306_v62  ;;  %7558 = vmatprep.subr.bf16.mxu1 %v8306_v62  ;;  %v6183_v33 = vld [vmem:[%s9530_s17 + $0x1c8] sm:$0xff] }
 0xf56   :  { %7554 = vmatpush3.bf16.msra.mxu0 %v7553_v2  ;;  %7560 = vmatpush3.bf16.msra.mxu1 %v7559_v15  ;;  %v7590_v2 = vpack.c.bf16 %v6181_v28, %v6179_v30  ;;  %v6178_v15 = vld [vmem:[%s9530_s17 + $0x1a0] sm:$0xff]  ;;  %v7594_v31 = vpack.c.bf16 %v6185_v35, %v6183_v33  ;;  %v4586_v30 = vld [vmem:[%s9530_s17 + $0x98] sm:$0xff] }
 0xf57   :  { %7555 = vmatprep.subr.bf16.mxu0 %v8306_v62  ;;  %7561 = vmatprep.subr.bf16.mxu1 %v8306_v62  ;;  %v7592_v36 = vpack.c.bf16 %v6180_v32, %v6178_v15  ;;  %v4585_v15 = vld [vmem:[%s9530_s17 + $0x90] sm:$0xff]  ;;  %v4588_v32 = vld [vmem:[%s9530_s17 + $0xa8] sm:$0xff]  ;;  %v4590_v33 = vld [vmem:[%s9530_s17 + $0xb8] sm:$0xff] }
 0xf58   :  { %7131 = vmatprep.mubr.msk.f32.mxu0 %vm8305_vm3, %v8304_v41  ;;  %7142 = vmatprep.mubr.msk.f32.mxu1 %vm8305_vm3, %v8304_v41 }
 0xf5a   :  { %7557 = vmatpush3.bf16.msra.mxu0 %v7556_v34  ;;  %7563 = vmatpush3.bf16.msra.mxu1 %v7562_v37  ;;  %v6182_v34 = vld [vmem:[%s9530_s17 + $0x1c0] sm:$0xff]  ;;  %v6184_v37 = vld [vmem:[%s9530_s17 + $0x1d0] sm:$0xff] }
 0xf5b   :  { %7145 = vmatprep.subr.mxu0 %v8304_v41  ;;  %7564 = vmatprep.subr.bf16.mxu1 %v8306_v62  ;;  %v7596_v38 = vpack.c.bf16 %v6184_v37, %v6182_v34  ;;  %v4589_v34 = vld [vmem:[%s9530_s17 + $0xb0] sm:$0xff]  ;;  %v4592_v37 = vld [vmem:[%s9530_s17 + $0xc8] sm:$0xff] }
0x1027   :  { %v4087_v42 = vpop.f32.mrb[34].mxu0  ;;  %v4166_v43 = vpop.f32.mrb[36].mxu1 }
0x1028   :  { %v7122_v44 = vpop.f32.mrb[37].mxu1  ;;  %7132 = vmatmul.mubr.msk.f32.vlgmr.msra.gmra.mrb[36].mxu0 %vm291_vm0, %v4166_v43  ;;  %7143 = vmatmul.mubr.msk.f32.vlgmr.msra.gmra.mrb[38].mxu1 %vm291_vm0, %v4087_v42  ;;  %v7117_v45 = vpop.f32.mrb[35].mxu0 }
0x1029   :  { %7146 = vmatpush3.msra.mxu0 %v4012_v29  ;;  %7147 = vmatprep.mubr.msk.f32.mxu0 %vm8305_vm3, %v8304_v41  ;;  %v7588_v29 = vpack.c.bf16 %v6176_v7, %v6174_v53  ;;  %v4581_v53 = vld [vmem:[%s9530_s17 + $0x70] sm:$0xff]  ;;  %v4584_v7 = vld [vmem:[%s9530_s17 + $0x88] sm:$0xff] }
0x102a   :  { %7566 = vmatpush3.bf16.msra.mxu1 %v7565_v40  ;;  %7158 = vmatprep.mubr.msk.f32.mxu1 %vm8305_vm3, %v8304_v41  ;;  %v6151_v40 = vld [vmem:[#allocation16] ss:$0 sm:$0xff] }
0x102b   :  { %7567 = vmatprep.subr.bf16.mxu1 %v8306_v62 }
0x102c   :  { %7148 = vmatmul.mubr.msk.f32.vlgmr.msra.gmra.mrb[38].mxu0 %vm1780_vm4, %v4322_v46  ;;  %v4485_v46 = vld [vmem:[%s9529_s3 + $0x8] sm:$0xff] }
0x102d   :  { %7163 = vmatprep.mubr.msk.f32.mxu0 %vm1780_vm4, %v4484_v61  ;;  %v4568_v61 = vld [vmem:[%s9530_s17 + $0x8] sm:$0xff] }
0x102e   :  { %7569 = vmatpush3.bf16.msra.mxu1 %v7568_v48  ;;  %v6190_v48 = vld [vmem:[%s9529_s3 + $0x20] sm:$0xff]  ;;  %v7602_v63 = vpack.c.bf16 %v4570_v12, %v4568_v61  ;;  %v6201_v61 = vld [vmem:[%s9530_s17 + $0x238] sm:$0xff] }
0x102f   :  { %7571 = vmatprep.subr.bf16.mxu1 %v7570_v1  ;;  %v4567_v1 = vld [vmem:[%s9530_s17] sm:$0xff] }
0x10fb   :  { %v4244_v49 = vpop.f32.mrb[36].mxu0  ;;  %v4317_v50 = vpop.f32.mrb[38].mxu1 }
0x10fc   :  { %v9159_v51 = vadd.f32 %v4317_v50, %v4244_v49  ;;  %v7133_v54 = vpop.f32.mrb[37].mxu0  ;;  %v7144_v55 = vpop.f32.mrb[39].mxu1  ;;  %v6191_v49 = vld [vmem:[%s9529_s3 + $0x28] sm:$0xff] }
0x10fd   :  { %v6187_v50 = vld [vmem:[%s9530_s17 + $0x1e8] sm:$0xff]  ;;  %v6186_v55 = vld [vmem:[%s9530_s17 + $0x1e0] sm:$0xff] }
0x10ff   :  { %v4392_v62 = vpop.f32.mrb[38].mxu0 }
0x1100   :  { %v7149_v59 = vpop.f32.mrb[39].mxu0  ;;  %7159 = vmatmul.mubr.msk.f32.vlgmr.msra.gmra.mrb[40].mxu1 %vm291_vm0, %v4392_v62  ;;  %v6188_v62 = vld [vmem:[%s9530_s17 + $0x1f0] sm:$0xff] }
0x1101   :  { %4780 = vmatprep.mubr.f32.mxu1 %v8304_v41  ;;  %7573 = vmatpush1.bf16.msra.mxu1 %v7572_v52  ;;  %v7600_v59 = vpack.c.bf16 %v6188_v62, %v6186_v55  ;;  %v4574_v52 = vld [vmem:[%s9530_s17 + $0x38] sm:$0xff]  ;;  %v6194_v55 = vld [vmem:[%s9530_s17 + $0x200] sm:$0xff]  ;;  %v6196_v62 = vld [vmem:[%s9530_s17 + $0x210] sm:$0xff] }
0x1102   :  { %7575 = vmatprep.subr.bf16.mxu1 %v7574_v6  ;;  %v7604_v6 = vpack.c.bf16 %v4569_v3, %v4567_v1  ;;  %v7606_v13 = vpack.c.bf16 %v4574_v52, %v4572_v8  ;;  %v7636_v12 = vpack.c.bf16 %v6196_v62, %v6194_v55  ;;  %v6198_v1 = vld [vmem:[%s9530_s17 + $0x220] sm:$0xff]  ;;  %v6200_v3 = vld [vmem:[%s9530_s17 + $0x230] sm:$0xff]  ;;  %v6203_v8 = vld [vmem:[%s9530_s17 + $0x248] sm:$0xff] }
0x1103   :  { %v6205_v52 = vld [vmem:[%s9530_s17 + $0x258] sm:$0xff]  ;;  %v6255_v62 = vld [vmem:[%s9531_s7 + $0x188] sm:$0xff] }
0x1105   :  { %7577 = vmatpush1.bf16.msra.mxu1 %v7576_v56 }
0x1106   :  { %7579 = vmatprep.subr.bf16.mxu1 %v7578_v14  ;;  %v4576_v14 = vld [vmem:[%s9530_s17 + $0x48] sm:$0xff] }
0x1107   :  { %v7610_v18 = vpack.c.bf16 %v4578_v16, %v4576_v14  ;;  %v6206_v16 = vld [vmem:[%s9530_s17 + $0x260] sm:$0xff] }
0x1109   :  { %7581 = vmatpush1.bf16.msra.mxu1 %v7580_v20  ;;  %v4577_v20 = vld [vmem:[%s9530_s17 + $0x50] sm:$0xff] }
0x110a   :  { %7583 = vmatprep.subr.bf16.mxu1 %v7582_v21  ;;  %v7612_v25 = vpack.c.bf16 %v4577_v20, %v4575_v19  ;;  %v6213_v19 = vld [vmem:[%s9530_s17 + $0x298] sm:$0xff] }
0x110d   :  { %7585 = vmatpush1.bf16.msra.mxu1 %v7584_v26  ;;  %v7614_v26 = vpack.c.bf16 %v4582_v23, %v4580_v22  ;;  %v6210_v22 = vld [vmem:[%s9530_s17 + $0x280] sm:$0xff]  ;;  %v6212_v23 = vld [vmem:[%s9530_s17 + $0x290] sm:$0xff] }
0x110e   :  { %7587 = vmatprep.subr.bf16.mxu1 %v7586_v27  ;;  %v4579_v27 = vld [vmem:[%s9530_s17 + $0x60] sm:$0xff] }
0x110f   :  { %v7616_v28 = vpack.c.bf16 %v4581_v53, %v4579_v27  ;;  %v7652_v27 = vpack.c.bf16 %v6212_v23, %v6210_v22  ;;  %v6242_v22 = vld [vmem:[%s9531_s7 + $0x120] sm:$0xff]  ;;  %v6243_v23 = vld [vmem:[%s9531_s7 + $0x128] sm:$0xff] }
0x1111   :  { %7589 = vmatpush1.bf16.msra.mxu1 %v7588_v29  ;;  %v7618_v29 = vpack.c.bf16 %v4586_v30, %v4584_v7  ;;  %v6214_v7 = vld [vmem:[%s9530_s17 + $0x2a0] sm:$0xff]  ;;  %v6216_v30 = vld [vmem:[%s9530_s17 + $0x2b0] sm:$0xff] }
0x1112   :  { %7591 = vmatprep.subr.bf16.mxu1 %v7590_v2  ;;  %v4583_v2 = vld [vmem:[%s9530_s17 + $0x80] sm:$0xff] }
0x1113   :  { %v7620_v35 = vpack.c.bf16 %v4585_v15, %v4583_v2  ;;  %v7656_v2 = vpack.c.bf16 %v6216_v30, %v6214_v7  ;;  %v6244_v30 = vld [vmem:[%s9531_s7 + $0x130] sm:$0xff] }
0x1115   :  { %7593 = vmatpush1.bf16.msra.mxu1 %v7592_v36  ;;  %v7622_v36 = vpack.c.bf16 %v4590_v33, %v4588_v32  ;;  %v6218_v32 = vld [vmem:[%s9530_s17 + $0x2c0] sm:$0xff]  ;;  %v6220_v33 = vld [vmem:[%s9530_s17 + $0x2d0] sm:$0xff] }
0x1116   :  { %7595 = vmatprep.subr.bf16.mxu1 %v7594_v31  ;;  %v4587_v31 = vld [vmem:[%s9530_s17 + $0xa0] sm:$0xff] }
0x1119   :  { %7597 = vmatpush1.bf16.msra.mxu1 %v7596_v38  ;;  %v4594_v38 = vld [vmem:[%s9530_s17 + $0xd8] sm:$0xff] }
0x11d3   :  { %v4470_v39 = vpop.f32.mrb[40].mxu1 }
0x11d4   :  { %v4474_v42 = vadd.f32 %v4470_v39, %v9159_v51  ;;  %v7160_v43 = vpop.f32.mrb[41].mxu1  ;;  %v6189_v51 = vld [vmem:[%s9530_s17 + $0x1f8] sm:$0xff]  ;;  %v7624_v39 = vpack.c.bf16 %v4589_v34, %v4587_v31  ;;  %v7660_v31 = vpack.c.bf16 %v6220_v33, %v6218_v32  ;;  %v6263_v32 = vld [vmem:[%s9531_s7 + $0x1c8] sm:$0xff] }
0x11d5   :  { %v7598_v54 = vpack.c.bf16 %v6189_v51, %v6187_v50  ;;  %v4593_v43 = vld [vmem:[%s9530_s17 + $0xd0] sm:$0xff]  ;;  %v6197_v50 = vld [vmem:[%s9530_s17 + $0x218] sm:$0xff] }
0x11d6   :  { %v4482_v44 = vadd.f32 %v6151_v40, %v4474_v42  ;;  %v7626_v40 = vpack.c.bf16 %v4594_v38, %v4592_v37  ;;  %v4591_v42 = vld [vmem:[%s9530_s17 + $0xc0] sm:$0xff]  ;;  %v6224_v38 = vld [vmem:[%s9530_s17 + $0x2f0] sm:$0xff] }
0x11d7   :  { %7599 = vmatprep.subr.bf16.mxu1 %v7598_v54  ;;  %v6222_v37 = vld [vmem:[%s9530_s17 + $0x2e0] sm:$0xff] }
0x11d8   :  { %v4483_v45 = vmax.f32 %v4482_v44, 0.0  ;;  %7601 = vmatpush1.bf16.msra.mxu1 %v7600_v59  ;;  %v4596_v44 = vld [vmem:[%s9530_s17 + $0xe8] sm:$0xff] }
0x11d9   :  { %7603 = vmatprep.subr.bf16.mxu1 %v7602_v63  ;;  %v6199_v59 = vld [vmem:[%s9530_s17 + $0x228] sm:$0xff] }
0x11da   :  { %7161 = vmatprep.subr.mxu0 %v4483_v45  ;;  %v7638_v63 = vpack.c.bf16 %v6201_v61, %v6199_v59  ;;  %v6270_v59 = vld [vmem:[%s9532_s19 + $0x40] sm:$0xff]  ;;  %v7674_v61 = vpack.c.bf16 %v6255_v62, %v6254_v57 }
0x11db   :  { %7162 = vmatpush3.msra.mxu0 %v4483_v45 }
0x11dc   :  { %7164 = vmatmul.mubr.msk.f32.vlgmr.msra.gmra.mrb[40].mxu0 %vm1780_vm4, %v4485_v46  ;;  %7166 = vmatprep.subr.mxu0 %v4483_v45  ;;  %v7628_v46 = vpack.c.bf16 %v4593_v43, %v4591_v42 }
0x11dd   :  { %7167 = vmatpush3.msra.mxu0 %v4483_v45  ;;  %7168 = vmatprep.mubr.msk.f32.mxu0 %vm1780_vm4, %v6154_v5 }
0x11de   :  { %7171 = vmatprep.subr.mxu0 %v4483_v45 }
0x11e0   :  { %7169 = vmatmul.mubr.msk.f32.vlgmr.msra.gmra.mrb[42].mxu0 %vm1780_vm4, %v6155_v47  ;;  %v4595_v47 = vld [vmem:[%s9530_s17 + $0xe0] sm:$0xff] }
0x11e1   :  { %7172 = vmatpush3.msra.mxu0 %v4483_v45  ;;  %7173 = vmatprep.mubr.msk.f32.mxu0 %vm1780_vm4, %v6190_v48  ;;  %v4598_v45 = vld [vmem:[%s9530_s17 + $0xf8] sm:$0xff]  ;;  %v4597_v48 = vld [vmem:[%s9530_s17 + $0xf0] sm:$0xff] }
0x11e2   :  { %v7630_v5 = vpack.c.bf16 %v4598_v45, %v4596_v44  ;;  %v7632_v51 = vpack.c.bf16 %v4597_v48, %v4595_v47 }
0x11e4   :  { %7174 = vmatmul.mubr.msk.f32.vlgmr.msra.gmra.mrb[44].mxu0 %vm1780_vm4, %v6191_v49  ;;  %v6195_v49 = vld [vmem:[%s9530_s17 + $0x208] sm:$0xff] }
0x11e5   :  { %5168 = vmatprep.mubr.f32.mxu0 %v8304_v41  ;;  %v7634_v54 = vpack.c.bf16 %v6197_v50, %v6195_v49 }
0x12af   :  { %v9211_v0 = vpop.f32.mrb[40].mxu0 }
0x12b0   :  { %v9215_v4 = vpop.f32.mrb[41].mxu0 }
0x12b3   :  { %v7170_v11 = vpop.f32.mrb[42].mxu0 }
0x12b4   :  { %v4674_v56 = vpop.f32.mrb[43].mxu0 }
0x12b5   :  { %4781 = vmatmul.mubr.f32.vlgmr.msra.gmra.mrb[42].mxu1 %v4674_v56  ;;  %v6209_v56 = vld [vmem:[%s9530_s17 + $0x278] sm:$0xff] }
0x12b6   :  { %7605 = vmatpush1.bf16.msra.mxu1 %v7604_v6  ;;  %4786 = vmatprep.mubr.f32.mxu1 %v8304_v41  ;;  %v7640_v6 = vpack.c.bf16 %v6200_v3, %v6198_v1  ;;  %v7646_v14 = vpack.c.bf16 %v6209_v56, %v6207_v10  ;;  %v5090_v1 = vld [vmem:[%s9532_s19 + $0x10] sm:$0xff]  ;;  %v6230_v10 = vld [vmem:[%s9532_s19 + $0x20] sm:$0xff] }
0x12b7   :  { %7607 = vmatprep.subr.bf16.mxu1 %v7606_v13  ;;  %v9226_v21 = vpop.f32.mrb[44].mxu0  ;;  %v6202_v13 = vld [vmem:[%s9530_s17 + $0x240] sm:$0xff]  ;;  %v6272_v3 = vld [vmem:[%s9532_s19 + $0x50] sm:$0xff] }
0x12b8   :  { %v9230_v24 = vpop.f32.mrb[45].mxu0 }
0x12b9   :  { %4787 = vmatmul.mubr.f32.gmra.mrb[44].mxu1 %v7170_v11  ;;  %v7642_v11 = vpack.c.bf16 %v6205_v52, %v6203_v8  ;;  %v5091_v8 = vld [vmem:[%s9532_s19 + $0x18] sm:$0xff] }
0x12ba   :  { %7609 = vmatpush1.bf16.msra.mxu1 %v7608_v17  ;;  %4857 = vmatprep.mubr.f32.mxu1 %v8304_v41  ;;  %v6208_v17 = vld [vmem:[%s9530_s17 + $0x270] sm:$0xff]  ;;  %v6273_v52 = vld [vmem:[%s9532_s19 + $0x58] sm:$0xff] }
0x12bb   :  { %7611 = vmatprep.subr.bf16.mxu1 %v7610_v18  ;;  %v6211_v18 = vld [vmem:[%s9530_s17 + $0x288] sm:$0xff]  ;;  %v7648_v20 = vpack.c.bf16 %v6208_v17, %v6206_v16  ;;  %v6241_v16 = vld [vmem:[%s9531_s7 + $0x118] sm:$0xff]  ;;  %v6258_v17 = vld [vmem:[%s9531_s7 + $0x1a0] sm:$0xff] }
0x12be   :  { %7613 = vmatpush1.bf16.msra.mxu1 %v7612_v25  ;;  %v6215_v25 = vld [vmem:[%s9530_s17 + $0x2a8] sm:$0xff] }
0x12bf   :  { %7615 = vmatprep.subr.bf16.mxu1 %v7614_v26  ;;  %v6217_v26 = vld [vmem:[%s9530_s17 + $0x2b8] sm:$0xff] }
0x12c0   :  { %v7654_v53 = vpack.c.bf16 %v6217_v26, %v6215_v25  ;;  %v6260_v25 = vld [vmem:[%s9531_s7 + $0x1b0] sm:$0xff]  ;;  %v6261_v26 = vld [vmem:[%s9531_s7 + $0x1b8] sm:$0xff] }
0x12c1   :  { %v7686_v7 = vpack.c.bf16 %v6261_v26, %v6260_v25 }
0x12c2   :  { %7617 = vmatpush1.bf16.msra.mxu1 %v7616_v28  ;;  %v6219_v28 = vld [vmem:[%s9530_s17 + $0x2c8] sm:$0xff] }
0x12c3   :  { %7619 = vmatprep.subr.bf16.mxu1 %v7618_v29  ;;  %v6221_v29 = vld [vmem:[%s9530_s17 + $0x2d8] sm:$0xff] }
0x12c4   :  { %v7658_v15 = vpack.c.bf16 %v6221_v29, %v6219_v28  ;;  %v6245_v28 = vld [vmem:[%s9531_s7 + $0x138] sm:$0xff] }
0x12c5   :  { %v6233_v29 = vld [vmem:[%s9532_s19 + $0x38] sm:$0xff] }
0x12c6   :  { %7621 = vmatpush1.bf16.msra.mxu1 %v7620_v35  ;;  %v6223_v35 = vld [vmem:[%s9530_s17 + $0x2e8] sm:$0xff] }
0x12c7   :  { %7623 = vmatprep.subr.bf16.mxu1 %v7622_v36  ;;  %v6225_v36 = vld [vmem:[%s9530_s17 + $0x2f8] sm:$0xff] }
0x12c8   :  { %v7662_v34 = vpack.c.bf16 %v6225_v36, %v6223_v35  ;;  %v6246_v35 = vld [vmem:[%s9531_s7 + $0x140] sm:$0xff]  ;;  %v6247_v36 = vld [vmem:[%s9531_s7 + $0x148] sm:$0xff] }
0x12ca   :  { %7625 = vmatpush1.bf16.msra.mxu1 %v7624_v39  ;;  %v7664_v39 = vpack.c.bf16 %v6224_v38, %v6222_v37  ;;  %v6248_v38 = vld [vmem:[%s9531_s7 + $0x150] sm:$0xff] }
0x12cb   :  { %7627 = vmatprep.subr.bf16.mxu1 %v7626_v40  ;;  %v5068_v40 = vld [vmem:[#allocation17] sm:$0x3] }
0x12cc   :  { %v5073_v42 = vrot.slane %v5068_v40, %v1037_v58  ;;  %v5077_v44 = vrot.slane %v5068_v40, %v1041_v60  ;;  %v5088_v60 = vld [vmem:[%s9532_s19] sm:$0xff] }
0x12ce   :  { %7629 = vmatpush1.bf16.msra.mxu1 %v7628_v46 }
0x12cf   :  { %7631 = vmatprep.subr.bf16.mxu1 %v7630_v5 }
0x12d2   :  { %7633 = vmatpush1.bf16.msra.mxu1 %v7632_v51 }
0x12d3   :  { %7635 = vmatprep.subr.bf16.mxu1 %v7634_v54 }
0x12d5   :  { %4858 = vmatmul.mubr.f32.vlgmr.msra.gmra.mrb[42].mxu1 %v9215_v4  ;;  %v7644_v4 = vpack.c.bf16 %v6204_v9, %v6202_v13  ;;  %v6256_v13 = vld [vmem:[%s9531_s7 + $0x190] sm:$0xff]  ;;  %v6257_v9 = vld [vmem:[%s9531_s7 + $0x198] sm:$0xff] }
0x12d6   :  { %7637 = vmatpush1.bf16.msra.mxu1 %v7636_v12  ;;  %4863 = vmatprep.mubr.f32.mxu1 %v8304_v41  ;;  %v5089_v12 = vld [vmem:[%s9532_s19 + $0x8] sm:$0xff] }
0x12d7   :  { %7639 = vmatprep.subr.bf16.mxu1 %v7638_v63  ;;  %v6271_v63 = vld [vmem:[%s9532_s19 + $0x48] sm:$0xff] }
0x12d9   :  { %4864 = vmatmul.mubr.f32.gmra.mrb[44].mxu1 %v9211_v0  ;;  %v7650_v0 = vpack.c.bf16 %v6213_v19, %v6211_v18  ;;  %v6259_v18 = vld [vmem:[%s9531_s7 + $0x1a8] sm:$0xff] }
0x12da   :  { %7641 = vmatpush1.bf16.msra.mxu1 %v7640_v6  ;;  %5051 = vmatprep.mubr.f32.mxu1 %v8304_v41  ;;  %v6238_v6 = vld [vmem:[%s9531_s7 + $0x100] sm:$0xff]  ;;  %v6231_v19 = vld [vmem:[%s9532_s19 + $0x28] sm:$0xff] }
0x12db   :  { %7643 = vmatprep.subr.bf16.mxu1 %v7642_v11  ;;  %v6239_v11 = vld [vmem:[%s9531_s7 + $0x108] sm:$0xff] }
0x12dc   :  { %v7676_v56 = vpack.c.bf16 %v6239_v11, %v6238_v6 }
0x12de   :  { %7645 = vmatpush1.bf16.msra.mxu1 %v7644_v4  ;;  %v7678_v4 = vpack.c.bf16 %v6257_v9, %v6256_v13  ;;  %v5193_v9 = vld [vmem:[%s9531_s7] sm:$0xff] }
0x12df   :  { %7647 = vmatprep.subr.bf16.mxu1 %v7646_v14  ;;  %v6240_v14 = vld [vmem:[%s9531_s7 + $0x110] sm:$0xff] }
0x12e2   :  { %7649 = vmatpush1.bf16.msra.mxu1 %v7648_v20  ;;  %v7680_v20 = vpack.c.bf16 %v6241_v16, %v6240_v14  ;;  %v5212_v14 = vld [vmem:[%s9531_s7 + $0x98] sm:$0xff] }
0x12e3   :  { %7651 = vmatprep.subr.bf16.mxu1 %v7650_v0  ;;  %v7682_v0 = vpack.c.bf16 %v6259_v18, %v6258_v17 }
0x12e6   :  { %7653 = vmatpush1.bf16.msra.mxu1 %v7652_v27  ;;  %v6232_v27 = vld [vmem:[%s9532_s19 + $0x30] sm:$0xff] }
0x12e7   :  { %7655 = vmatprep.subr.bf16.mxu1 %v7654_v53  ;;  %v7684_v53 = vpack.c.bf16 %v6243_v23, %v6242_v22  ;;  %v5213_v22 = vld [vmem:[%s9531_s7 + $0xa0] sm:$0xff]  ;;  %v5214_v23 = vld [vmem:[%s9531_s7 + $0xa8] sm:$0xff] }
0x12ea   :  { %7657 = vmatpush1.bf16.msra.mxu1 %v7656_v2  ;;  %v7688_v2 = vpack.c.bf16 %v6245_v28, %v6244_v30  ;;  %v5198_v30 = vld [vmem:[%s9531_s7 + $0x28] sm:$0xff]  ;;  %v5215_v28 = vld [vmem:[%s9531_s7 + $0xb0] sm:$0xff] }
0x12eb   :  { %7659 = vmatprep.subr.bf16.mxu1 %v7658_v15  ;;  %v6262_v15 = vld [vmem:[%s9531_s7 + $0x1c0] sm:$0xff] }
0x12ec   :  { %v7690_v33 = vpack.c.bf16 %v6263_v32, %v6262_v15 }
0x12ee   :  { %7661 = vmatpush1.bf16.msra.mxu1 %v7660_v31  ;;  %v6264_v31 = vld [vmem:[%s9531_s7 + $0x1d0] sm:$0xff] }
0x12ef   :  { %7663 = vmatprep.subr.bf16.mxu1 %v7662_v34  ;;  %v6265_v34 = vld [vmem:[%s9531_s7 + $0x1d8] sm:$0xff] }
0x12f0   :  { %v7694_v37 = vpack.c.bf16 %v6265_v34, %v6264_v31  ;;  %v5218_v31 = vld [vmem:[%s9531_s7 + $0xc8] sm:$0xff] }
0x12f2   :  { %7665 = vmatpush1.bf16.msra.mxu1 %v7664_v39  ;;  %v6249_v39 = vld [vmem:[%s9531_s7 + $0x158] sm:$0xff] }
0x12f3   :  { %v7696_v40 = vpack.c.bf16 %v6249_v39, %v6248_v38 }
0x12f5   :  { %5052 = vmatmul.mubr.f32.vlgmr.msra.gmra.mrb[42].mxu1 %v9230_v24 }
0x12f6   :  { %5057 = vmatprep.mubr.f32.mxu1 %v8304_v41 }
0x12f9   :  { %5058 = vmatmul.mubr.f32.gmra.mrb[44].mxu1 %v9226_v21 }
0x12fa   :  { %5615 = vmatprep.mubr.f32.mxu1 %v8304_v41 }
0x13c8   :  { %v5053_v43 = vpop.f32.mrb[42].mxu1 }
0x13c9   :  { %v5055_v45 = vpop.f32.mrb[43].mxu1  ;;  %v5080_v46 = vadd.f32 %v5073_v42, %v5053_v43  ;;  %v6267_v43 = vld [vmem:[%s9531_s7 + $0x1e8] sm:$0xff] }
0x13ca   :  { %v5081_v5 = vadd.f32 %v5077_v44, %v5055_v45  ;;  %v6250_v45 = vld [vmem:[%s9531_s7 + $0x160] sm:$0xff] }
0x13cb   :  { %v5084_v49 = vmax.f32 %v5080_v46, 0.0  ;;  %v6251_v46 = vld [vmem:[%s9531_s7 + $0x168] sm:$0xff] }
0x13cc   :  { %v5059_v24 = vpop.f32.mrb[44].mxu1  ;;  %v5085_v51 = vmax.f32 %v5081_v5, 0.0  ;;  %v7700_v5 = vpack.c.bf16 %v6251_v46, %v6250_v45 }
0x13cd   :  { %v5082_v47 = vadd.f32 %v5073_v42, %v5059_v24  ;;  %v5061_v21 = vpop.f32.mrb[45].mxu1  ;;  %v6266_v42 = vld [vmem:[%s9531_s7 + $0x1e0] sm:$0xff]  ;;  %v6268_v24 = vld [vmem:[%s9531_s7 + $0x1f0] sm:$0xff] }
0x13ce   :  { %v5083_v48 = vadd.f32 %v5077_v44, %v5061_v21  ;;  %v7698_v44 = vpack.c.bf16 %v6267_v43, %v6266_v42  ;;  %v5202_v42 = vld [vmem:[%s9531_s7 + $0x48] sm:$0xff]  ;;  %v5219_v43 = vld [vmem:[%s9531_s7 + $0xd0] sm:$0xff] }
0x13cf   :  { %v5086_v50 = vmax.f32 %v5082_v47, 0.0  ;;  %v6269_v47 = vld [vmem:[%s9531_s7 + $0x1f8] sm:$0xff] }
0x13d0   :  { %v5087_v54 = vmax.f32 %v5083_v48, 0.0  ;;  %v7702_v21 = vpack.c.bf16 %v6269_v47, %v6268_v24  ;;  %v6252_v48 = vld [vmem:[%s9531_s7 + $0x170] sm:$0xff]  ;;  %v5204_v24 = vld [vmem:[%s9531_s7 + $0x58] sm:$0xff]  ;;  %v5221_v47 = vld [vmem:[%s9531_s7 + $0xe0] sm:$0xff] }
0x13d1   :  { %v7668_v58 = vpack.c.bf16 %v5086_v50, %v5084_v49  ;;  %v6253_v49 = vld [vmem:[%s9531_s7 + $0x178] sm:$0xff] }
0x13d2   :  { %v7666_v55 = vpack.c.bf16 %v5087_v54, %v5085_v51  ;;  %v7704_v50 = vpack.c.bf16 %v6253_v49, %v6252_v48  ;;  %v5209_v51 = vld [vmem:[%s9531_s7 + $0x80] sm:$0xff]  ;;  %v5210_v54 = vld [vmem:[%s9531_s7 + $0x88] sm:$0xff] }
0x13d4   :  { %7667 = vmatprep.subr.bf16.mxu0 %v7666_v55  ;;  %7739 = vmatprep.subr.bf16.mxu1 %v7666_v55 }
0x13d5   :  { %7669 = vmatpush1.bf16.msra.mxu0 %v7668_v58  ;;  %7741 = vmatpush1.bf16.msra.mxu1 %v7668_v58 }
0x13d6   :  { %7671 = vmatprep.subr.bf16.mxu0 %v7666_v55 }
0x13d8   :  { %6226 = vmatmul.mubr.msk.f32.vlgmr.msra.gmra.mrb[46].mxu0 %vm1054_vm2, %v5088_v60  ;;  %6274 = vmatmul.mubr.msk.f32.vlgmr.msra.gmra.mrb[46].mxu1 %vm1054_vm2, %v6270_v59 }
0x13d9   :  { %7673 = vmatpush1.bf16.msra.mxu0 %v7668_v58  ;;  %5174 = vmatprep.mubr.f32.mxu0 %v8304_v41  ;;  %v7706_v58 = vpack.c.bf16 %v5210_v54, %v5209_v51  ;;  %v5206_v51 = vld [vmem:[%s9531_s7 + $0x68] sm:$0xff]  ;;  %v5223_v54 = vld [vmem:[%s9531_s7 + $0xf0] sm:$0xff] }
0x13da   :  { %5621 = vmatprep.mubr.f32.mxu1 %v8304_v41  ;;  %7675 = vmatprep.subr.bf16.mxu0 %v7674_v61 }
0x13dc   :  { %6227 = vmatmul.mubr.msk.f32.gmra.mrb[48].mxu0 %vm1054_vm2, %v5089_v12  ;;  %6275 = vmatmul.mubr.msk.f32.gmra.mrb[48].mxu1 %vm1054_vm2, %v6271_v63 }
0x13dd   :  { %5180 = vmatprep.mubr.f32.mxu0 %v8304_v41  ;;  %5627 = vmatprep.mubr.f32.mxu1 %v8304_v41 }
0x13e0   :  { %6228 = vmatmul.mubr.msk.f32.gmra.mrb[50].mxu0 %vm1054_vm2, %v5090_v1  ;;  %6276 = vmatmul.mubr.msk.f32.gmra.mrb[50].mxu1 %vm1054_vm2, %v6272_v3 }
0x13e1   :  { %5186 = vmatprep.mubr.f32.mxu0 %v8304_v41  ;;  %5633 = vmatprep.mubr.f32.mxu1 %v8304_v41 }
0x13e4   :  { %6229 = vmatmul.mubr.msk.f32.gmra.mrb[52].mxu0 %vm1054_vm2, %v5091_v8  ;;  %6277 = vmatmul.mubr.msk.f32.gmra.mrb[52].mxu1 %vm1054_vm2, %v6273_v52 }
0x13e5   :  { %5306 = vmatprep.mubr.f32.mxu0 %v8304_v41 }
0x13e8   :  { %6234 = vmatmul.mubr.msk.f32.vlgmr.msra.gmra.mrb[54].mxu0 %vm1054_vm2, %v6230_v10  ;;  %v5194_v10 = vld [vmem:[%s9531_s7 + $0x8] sm:$0xff] }
0x13e9   :  { %5312 = vmatprep.mubr.f32.mxu0 %v8304_v41  ;;  %7677 = vmatpush3.bf16.msra.mxu0 %v7676_v56  ;;  %v7708_v17 = vpack.c.bf16 %v5194_v10, %v5193_v9  ;;  %v5207_v10 = vld [vmem:[%s9531_s7 + $0x70] sm:$0xff] }
0x13ea   :  { %7679 = vmatprep.subr.bf16.mxu0 %v7678_v4  ;;  %v5211_v4 = vld [vmem:[%s9531_s7 + $0x90] sm:$0xff] }
0x13ec   :  { %6235 = vmatmul.mubr.msk.f32.gmra.mrb[56].mxu0 %vm1054_vm2, %v6231_v19  ;;  %v7710_v19 = vpack.c.bf16 %v5212_v14, %v5211_v4  ;;  %v5208_v4 = vld [vmem:[%s9531_s7 + $0x78] sm:$0xff]  ;;  %v6294_v14 = vld [vmem:[%s9531_s7 + $0x280] sm:$0xff] }
0x13ed   :  { %5318 = vmatprep.mubr.f32.mxu0 %v8304_v41  ;;  %7681 = vmatpush3.bf16.msra.mxu0 %v7680_v20  ;;  %v5195_v20 = vld [vmem:[%s9531_s7 + $0x10] sm:$0xff] }
0x13ee   :  { %7683 = vmatprep.subr.bf16.mxu0 %v7682_v0  ;;  %v5196_v0 = vld [vmem:[%s9531_s7 + $0x18] sm:$0xff] }
0x13ef   :  { %v7712_v26 = vpack.c.bf16 %v5196_v0, %v5195_v20  ;;  %v6279_v20 = vld [vmem:[%s9531_s7 + $0x208] sm:$0xff]  ;;  %v6296_v0 = vld [vmem:[%s9531_s7 + $0x290] sm:$0xff] }
0x13f0   :  { %6236 = vmatmul.mubr.msk.f32.gmra.mrb[58].mxu0 %vm1054_vm2, %v6232_v27 }
0x13f1   :  { %5324 = vmatprep.mubr.f32.mxu0 %v8304_v41  ;;  %7685 = vmatpush3.bf16.msra.mxu0 %v7684_v53  ;;  %v7692_v41 = vpack.c.bf16 %v6247_v36, %v6246_v35  ;;  %v7714_v53 = vpack.c.bf16 %v5214_v23, %v5213_v22  ;;  %v5199_v35 = vld [vmem:[%s9531_s7 + $0x30] sm:$0xff]  ;;  %v5200_v36 = vld [vmem:[%s9531_s7 + $0x38] sm:$0xff] }
0x13f2   :  { %7687 = vmatprep.subr.bf16.mxu0 %v7686_v7  ;;  %v5197_v7 = vld [vmem:[%s9531_s7 + $0x20] sm:$0xff]  ;;  %v6297_v22 = vld [vmem:[%s9531_s7 + $0x298] sm:$0xff] }
0x13f3   :  { %v7716_v15 = vpack.c.bf16 %v5198_v30, %v5197_v7  ;;  %v6299_v7 = vld [vmem:[%s9531_s7 + $0x2a8] sm:$0xff] }
0x13f4   :  { %6237 = vmatmul.mubr.msk.f32.gmra.mrb[60].mxu0 %vm1054_vm2, %v6233_v29  ;;  %v5216_v29 = vld [vmem:[%s9531_s7 + $0xb8] sm:$0xff] }
0x13f5   :  { %7689 = vmatpush3.bf16.msra.mxu0 %v7688_v2 }
0x13f6   :  { %7691 = vmatprep.subr.bf16.mxu0 %v7690_v33  ;;  %v7718_v33 = vpack.c.bf16 %v5216_v29, %v5215_v28  ;;  %v6282_v29 = vld [vmem:[%s9531_s7 + $0x220] sm:$0xff] }
0x13f9   :  { %7693 = vmatpush3.bf16.msra.mxu0 %v7692_v41  ;;  %v5217_v41 = vld [vmem:[%s9531_s7 + $0xc0] sm:$0xff] }
0x13fa   :  { %7695 = vmatprep.subr.bf16.mxu0 %v7694_v37  ;;  %v7720_v37 = vpack.c.bf16 %v5200_v36, %v5199_v35  ;;  %v7722_v39 = vpack.c.bf16 %v5218_v31, %v5217_v41  ;;  %v6285_v35 = vld [vmem:[%s9531_s7 + $0x238] sm:$0xff]  ;;  %v6302_v36 = vld [vmem:[%s9531_s7 + $0x2c0] sm:$0xff]  ;;  %v6303_v41 = vld [vmem:[%s9531_s7 + $0x2c8] sm:$0xff] }
0x13fb   :  { %v6286_v31 = vld [vmem:[%s9531_s7 + $0x240] sm:$0xff] }
0x13fd   :  { %7697 = vmatpush3.bf16.msra.mxu0 %v7696_v40  ;;  %v5201_v40 = vld [vmem:[%s9531_s7 + $0x40] sm:$0xff] }
0x13fe   :  { %7699 = vmatprep.subr.bf16.mxu0 %v7698_v44  ;;  %v5220_v44 = vld [vmem:[%s9531_s7 + $0xd8] sm:$0xff]  ;;  %v7724_v45 = vpack.c.bf16 %v5202_v42, %v5201_v40  ;;  %v6306_v42 = vld [vmem:[%s9531_s7 + $0x2e0] sm:$0xff] }
0x13ff   :  { %v7726_v46 = vpack.c.bf16 %v5220_v44, %v5219_v43  ;;  %v6289_v40 = vld [vmem:[%s9531_s7 + $0x258] sm:$0xff]  ;;  %v6307_v43 = vld [vmem:[%s9531_s7 + $0x2e8] sm:$0xff] }
0x1401   :  { %7701 = vmatpush3.bf16.msra.mxu0 %v7700_v5  ;;  %v5203_v5 = vld [vmem:[%s9531_s7 + $0x50] sm:$0xff] }
0x1402   :  { %7703 = vmatprep.subr.bf16.mxu0 %v7702_v21  ;;  %v5222_v21 = vld [vmem:[%s9531_s7 + $0xe8] sm:$0xff]  ;;  %v7728_v48 = vpack.c.bf16 %v5204_v24, %v5203_v5  ;;  %v6308_v5 = vld [vmem:[%s9531_s7 + $0x2f0] sm:$0xff]  ;;  %v6309_v24 = vld [vmem:[%s9531_s7 + $0x2f8] sm:$0xff] }
0x1403   :  { %v7730_v49 = vpack.c.bf16 %v5222_v21, %v5221_v47  ;;  %v6292_v21 = vld [vmem:[%s9531_s7 + $0x270] sm:$0xff] }
0x1405   :  { %7705 = vmatpush3.bf16.msra.mxu0 %v7704_v50  ;;  %v5205_v50 = vld [vmem:[%s9531_s7 + $0x60] sm:$0xff] }
0x1406   :  { %7707 = vmatprep.subr.bf16.mxu0 %v7706_v58  ;;  %v5224_v58 = vld [vmem:[%s9531_s7 + $0xf8] sm:$0xff] }
0x1407   :  { %v7734_v9 = vpack.c.bf16 %v5224_v58, %v5223_v54 }
0x14ab   :  { %v9363_v55 = vpop.f32.mrb[46].mxu0  ;;  %v9365_v57 = vpop.f32.mrb[46].mxu1 }
0x14ac   :  { %v9367_v62 = vpop.f32.mrb[47].mxu0  ;;  %v9369_v60 = vpop.f32.mrb[47].mxu1 }
0x14af   :  { %v9371_v59 = vpop.f32.mrb[48].mxu0  ;;  %v9373_v61 = vpop.f32.mrb[48].mxu1 }
0x14b0   :  { %v9375_v12 = vpop.f32.mrb[49].mxu0  ;;  %v9377_v63 = vpop.f32.mrb[49].mxu1 }
0x14b3   :  { %v9379_v1 = vpop.f32.mrb[50].mxu0  ;;  %v9381_v3 = vpop.f32.mrb[50].mxu1 }
0x14b4   :  { %v9383_v8 = vpop.f32.mrb[51].mxu0  ;;  %v9385_v52 = vpop.f32.mrb[51].mxu1 }
0x14b7   :  { %v9387_v6 = vpop.f32.mrb[52].mxu0  ;;  %v9389_v11 = vpop.f32.mrb[52].mxu1 }
0x14b8   :  { %v9391_v13 = vpop.f32.mrb[53].mxu0  ;;  %v9395_v56 = vpop.f32.mrb[53].mxu1 }
0x14bb   :  { %v5308_v16 = vpop.f32.mrb[54].mxu0 }
0x14bc   :  { %v5310_v18 = vpop.f32.mrb[55].mxu0 }
0x14bd   :  { %5428 = vmatprep.mubr.f32.mxu0 %v5310_v18 }
0x14be   :  { %5429 = vmatmul.mubr.f32.vlgmr.msra.gmra.mrb[62].mxu0 %v5308_v16  ;;  %v6295_v16 = vld [vmem:[%s9531_s7 + $0x288] sm:$0xff] }
0x14bf   :  { %7709 = vmatpush3.bf16.msra.mxu0 %v7708_v17  ;;  %v5314_v25 = vpop.f32.mrb[56].mxu0  ;;  %v7736_v17 = vpack.c.bf16 %v5208_v4, %v5207_v10  ;;  %v7742_v18 = vpack.c.bf16 %v6295_v16, %v6294_v14 }
0x14c0   :  { %v5316_v27 = vpop.f32.mrb[57].mxu0  ;;  %7711 = vmatprep.subr.bf16.mxu0 %v7710_v19  ;;  %v6278_v19 = vld [vmem:[%s9531_s7 + $0x200] sm:$0xff] }
0x14c1   :  { %5433 = vmatprep.mubr.f32.mxu0 %v5316_v27  ;;  %v7744_v23 = vpack.c.bf16 %v6279_v20, %v6278_v19  ;;  %v6281_v27 = vld [vmem:[%s9531_s7 + $0x218] sm:$0xff] }
0x14c2   :  { %5434 = vmatmul.mubr.f32.gmra.mrb[64].mxu0 %v5314_v25  ;;  %v7746_v25 = vpack.c.bf16 %v6297_v22, %v6296_v0 }
0x14c3   :  { %7713 = vmatpush3.bf16.msra.mxu0 %v7712_v26  ;;  %v5320_v2 = vpop.f32.mrb[58].mxu0  ;;  %v6280_v26 = vld [vmem:[%s9531_s7 + $0x210] sm:$0xff] }
0x14c4   :  { %v5322_v32 = vpop.f32.mrb[59].mxu0  ;;  %7715 = vmatprep.subr.bf16.mxu0 %v7714_v53  ;;  %v6298_v53 = vld [vmem:[%s9531_s7 + $0x2a0] sm:$0xff]  ;;  %v7748_v30 = vpack.c.bf16 %v6281_v27, %v6280_v26 }
0x14c5   :  { %5438 = vmatprep.mubr.f32.mxu0 %v5322_v32  ;;  %v7750_v28 = vpack.c.bf16 %v6299_v7, %v6298_v53  ;;  %v6301_v32 = vld [vmem:[%s9531_s7 + $0x2b8] sm:$0xff] }
0x14c6   :  { %5439 = vmatmul.mubr.f32.gmra.mrb[66].mxu0 %v5320_v2  ;;  %v6283_v2 = vld [vmem:[%s9531_s7 + $0x228] sm:$0xff] }
0x14c7   :  { %7717 = vmatpush3.bf16.msra.mxu0 %v7716_v15  ;;  %v5326_v34 = vpop.f32.mrb[60].mxu0  ;;  %v6300_v15 = vld [vmem:[%s9531_s7 + $0x2b0] sm:$0xff] }
0x14c8   :  { %v5328_v38 = vpop.f32.mrb[61].mxu0  ;;  %7719 = vmatprep.subr.bf16.mxu0 %v7718_v33  ;;  %v6284_v33 = vld [vmem:[%s9531_s7 + $0x230] sm:$0xff] }
0x14c9   :  { %5443 = vmatprep.mubr.f32.mxu0 %v5328_v38  ;;  %v6305_v38 = vld [vmem:[%s9531_s7 + $0x2d8] sm:$0xff] }
0x14ca   :  { %5444 = vmatmul.mubr.f32.gmra.mrb[68].mxu0 %v5326_v34  ;;  %v6287_v34 = vld [vmem:[%s9531_s7 + $0x248] sm:$0xff] }
0x14cb   :  { %7721 = vmatpush3.bf16.msra.mxu0 %v7720_v37  ;;  %5513 = vmatprep.mubr.f32.mxu0 %v9367_v62  ;;  %v7732_v62 = vpack.c.bf16 %v5206_v51, %v5205_v50  ;;  %v6304_v37 = vld [vmem:[%s9531_s7 + $0x2d0] sm:$0xff] }
0x14cc   :  { %7723 = vmatprep.subr.bf16.mxu0 %v7722_v39  ;;  %v6288_v39 = vld [vmem:[%s9531_s7 + $0x250] sm:$0xff] }
0x14cd   :  { %v7764_v44 = vpack.c.bf16 %v6289_v40, %v6288_v39 }
0x14cf   :  { %7725 = vmatpush3.bf16.msra.mxu0 %v7724_v45  ;;  %v7766_v45 = vpack.c.bf16 %v6307_v43, %v6306_v42 }
0x14d0   :  { %7727 = vmatprep.subr.bf16.mxu0 %v7726_v46  ;;  %v6290_v46 = vld [vmem:[%s9531_s7 + $0x260] sm:$0xff] }
0x14d3   :  { %7729 = vmatpush3.bf16.msra.mxu0 %v7728_v48  ;;  %v6293_v48 = vld [vmem:[%s9531_s7 + $0x278] sm:$0xff] }
0x14d4   :  { %7731 = vmatprep.subr.bf16.mxu0 %v7730_v49  ;;  %v7772_v49 = vpack.c.bf16 %v6293_v48, %v6292_v21 }
0x14d7   :  { %7733 = vmatpush3.bf16.msra.mxu0 %v7732_v62 }
0x14d8   :  { %7735 = vmatprep.subr.bf16.mxu0 %v7734_v9 }
0x14db   :  { %7737 = vmatpush3.bf16.msra.mxu0 %v7736_v17 }
0x14dc   :  { %7743 = vmatprep.subr.bf16.mxu0 %v7742_v18 }
0x14de   :  { %5514 = vmatmul.mubr.f32.vlgmr.msra.gmra.mrb[70].mxu0 %v9363_v55  ;;  %v7752_v55 = vpack.c.bf16 %v6283_v2, %v6282_v29 }
0x14df   :  { %5518 = vmatprep.mubr.f32.mxu0 %v9375_v12  ;;  %7745 = vmatpush3.bf16.msra.mxu0 %v7744_v23  ;;  %v7754_v12 = vpack.c.bf16 %v6301_v32, %v6300_v15 }
0x14e0   :  { %7747 = vmatprep.subr.bf16.mxu0 %v7746_v25 }
0x14e2   :  { %5519 = vmatmul.mubr.f32.gmra.mrb[72].mxu0 %v9371_v59  ;;  %v7756_v59 = vpack.c.bf16 %v6285_v35, %v6284_v33 }
0x14e3   :  { %5523 = vmatprep.mubr.f32.mxu0 %v9383_v8  ;;  %7749 = vmatpush3.bf16.msra.mxu0 %v7748_v30  ;;  %v7758_v8 = vpack.c.bf16 %v6303_v41, %v6302_v36 }
0x14e4   :  { %7751 = vmatprep.subr.bf16.mxu0 %v7750_v28 }
0x14e6   :  { %5524 = vmatmul.mubr.f32.gmra.mrb[74].mxu0 %v9379_v1  ;;  %v7760_v1 = vpack.c.bf16 %v6287_v34, %v6286_v31 }
0x14e7   :  { %5528 = vmatprep.mubr.f32.mxu0 %v9391_v13  ;;  %7753 = vmatpush3.bf16.msra.mxu0 %v7752_v55  ;;  %v7762_v13 = vpack.c.bf16 %v6305_v38, %v6304_v37 }
0x14e8   :  { %7755 = vmatprep.subr.bf16.mxu0 %v7754_v12 }
0x14ea   :  { %5529 = vmatmul.mubr.f32.gmra.mrb[76].mxu0 %v9387_v6  ;;  %v6291_v6 = vld [vmem:[%s9531_s7 + $0x268] sm:$0xff] }
0x14eb   :  { %7757 = vmatpush3.bf16.msra.mxu0 %v7756_v59  ;;  %5737 = vmatprep.mubr.f32.mxu0 %v9369_v60  ;;  %v7768_v47 = vpack.c.bf16 %v6291_v6, %v6290_v46  ;;  %v7770_v60 = vpack.c.bf16 %v6309_v24, %v6308_v5 }
0x14ec   :  { %7759 = vmatprep.subr.bf16.mxu0 %v7758_v8 }
0x14ef   :  { %7761 = vmatpush3.bf16.msra.mxu0 %v7760_v1 }
0x14f0   :  { %7763 = vmatprep.subr.bf16.mxu0 %v7762_v13 }
0x14f3   :  { %7765 = vmatpush3.bf16.msra.mxu0 %v7764_v44 }
0x14f4   :  { %7767 = vmatprep.subr.bf16.mxu0 %v7766_v45 }
0x14f7   :  { %7769 = vmatpush3.bf16.msra.mxu0 %v7768_v47 }
0x14f8   :  { %7771 = vmatprep.subr.bf16.mxu0 %v7770_v60 }
0x14fb   :  { %7773 = vmatpush3.bf16.msra.mxu0 %v7772_v49 }
0x14fe   :  { %5738 = vmatmul.mubr.f32.vlgmr.msra.gmra.mrb[78].mxu0 %v9365_v57 }
0x14ff   :  { %5742 = vmatprep.mubr.f32.mxu0 %v9377_v63 }
0x1502   :  { %5743 = vmatmul.mubr.f32.gmra.mrb[80].mxu0 %v9373_v61 }
0x1503   :  { %5747 = vmatprep.mubr.f32.mxu0 %v9385_v52 }
0x1506   :  { %5748 = vmatmul.mubr.f32.gmra.mrb[82].mxu0 %v9381_v3 }
0x1507   :  { %5752 = vmatprep.mubr.f32.mxu0 %v9395_v56 }
0x150a   :  { %5753 = vmatmul.mubr.f32.gmra.mrb[84].mxu0 %v9389_v11 }
0x150b   :  { %8186 = shalt.err (!%p8183_p10)
}
0x150c   :  { %s8187_s30 = scalar_lea.hbm %s8463_s25, 16 }
0x150d   :  { %p8188_p11 = scmp.ne.s32.totalorder %s8463_s25, %s8187_s30  ;;  %p8191_p12 = scmp.lt.u32.totalorder %s8187_s30, %s8463_s25 }
0x150f   :  { %p8193_p13 = pnand %p8191_p12, %p8188_p11 }
0x1511   :  { %8196 = shalt.err (!%p8193_p13)
}
0x1512   :  { %5816 = dma.vmem_to_hbm [thread:$0]  %s5814_s20, 16, %s8463_s25, [#allocation25]  }
0x1513   :  { %s8197_s16 = scalar_lea.vmem %s5801_s4, 512  ;;  %p8202_p1 = scmp.lt.s32.totalorder %s5801_s4, %s5801_s4 }
0x1514   :  { %p8198_p0 = scmp.ne.s32.totalorder %s5801_s4, %s8197_s16  ;;  %p8203_p2 = scmp.lt.s32.totalorder %s8197_s16, %s8197_s16 }
0x1516   :  { %p8204_p3 = por %p8203_p2, %p8202_p1 }
0x1518   :  { %p8205_p4 = pnand %p8204_p3, %p8198_p0 }
0x151a   :  { %8208 = shalt.err (!%p8205_p4)
}
0x151b   :  { %s8209_s12 = scalar_lea.hbm %s8458_s27, 512 }
0x151c   :  { %p8210_p5 = scmp.ne.s32.totalorder %s8458_s27, %s8209_s12  ;;  %p8213_p6 = scmp.lt.u32.totalorder %s8209_s12, %s8458_s27 }
0x151e   :  { %p8215_p7 = pnand %p8213_p6, %p8210_p5 }
0x1520   :  { %8218 = shalt.err (!%p8215_p7)
}
0x1521   :  { %5806 = dma.vmem_to_hbm [thread:$0]  %s5801_s4, 512, %s8458_s27, [#allocation4], %s8294_s23, %s8294_s23, %s8295_s14  }
0x1522   :  { %s8309_s25 = smov [#allocation26]  }
0x1523   :  { %s5823_s5 = sshll.u32 %s8309_s25, 4  ;;  %s5824_s5 = int_to_ptr.vmem [resolvable:$true] %s5823_s5 }
0x1524   :  { %s8219_s8 = scalar_lea.vmem %s5824_s5, 16  ;;  %s8223_s18 = scalar_lea.vmem %s5824_s5, 32 }
0x1525   :  { %p8220_p8 = scmp.ne.s32.totalorder %s5824_s5, %s8219_s8  ;;  %p8224_p9 = scmp.lt.s32.totalorder %s5824_s5, %s5824_s5 }
0x1526   :  { %p8225_p10 = scmp.lt.s32.totalorder %s8223_s18, %s8219_s8 }
0x1528   :  { %p8226_p11 = por %p8225_p10, %p8224_p9 }
0x152a   :  { %p8227_p12 = pnand %p8226_p11, %p8220_p8 }
0x152c   :  { %8230 = shalt.err (!%p8227_p12)
}
0x152d   :  { %s8231_s22 = scalar_lea.hbm %s8468_s13, 16 }
0x152e   :  { %p8232_p13 = scmp.ne.s32.totalorder %s8468_s13, %s8231_s22  ;;  %p8235_p0 = scmp.lt.u32.totalorder %s8231_s22, %s8468_s13 }
0x1530   :  { %p8237_p1 = pnand %p8235_p0, %p8232_p13 }
0x1532   :  { %8240 = shalt.err (!%p8237_p1)
}
0x1533   :  { %5826 = dma.vmem_to_hbm [thread:$0]  %s5824_s5, 16, %s8468_s13, [#allocation25]   ;;  %v6310_v29 = vld [vmem:[#allocation19] ss:$0 sm:$0xff] }
0x1534   :  { %s9533_s13 = sld [smem:[#allocation48_spill]] }
0x1591   :  { %v6679_v57 = vpop.f32.mrb[62].mxu0 }
0x1592   :  { %v6680_v61 = vpop.f32.mrb[63].mxu0 }
0x1593   :  { %v6681_v63 = vadd.f32 %v6680_v61, %v6679_v57 }
0x1595   :  { %v6682_v3 = vpop.f32.mrb[64].mxu0 }
0x1596   :  { %v6683_v52 = vpop.f32.mrb[65].mxu0 }
0x1597   :  { %v6684_v11 = vadd.f32 %v6683_v52, %v6682_v3 }
0x1599   :  { %v6685_v56 = vpop.f32.mrb[66].mxu0 }
0x159a   :  { %v6686_v50 = vpop.f32.mrb[67].mxu0 }
0x159b   :  { %v6687_v51 = vadd.f32 %v6686_v50, %v6685_v56 }
0x159d   :  { %v6688_v54 = vpop.f32.mrb[68].mxu0 }
0x159e   :  { %v6689_v58 = vpop.f32.mrb[69].mxu0 }
0x159f   :  { %v6690_v62 = vadd.f32 %v6689_v58, %v6688_v54 }
0x15b1   :  { %v6723_v9 = vpop.f32.mrb[70].mxu0 }
0x15b2   :  { %v6724_v10 = vpop.f32.mrb[71].mxu0 }
0x15b3   :  { %v6725_v4 = vadd.f32 %v6724_v10, %v6723_v9 }
0x15b5   :  { %v5516_v14 = vadd.f32 %v6725_v4, %v6681_v63  ;;  %v6726_v16 = vpop.f32.mrb[72].mxu0 }
0x15b6   :  { %v6727_v17 = vpop.f32.mrb[73].mxu0 }
0x15b7   :  { %v6728_v18 = vadd.f32 %v6727_v17, %v6726_v16 }
0x15b9   :  { %v5521_v19 = vadd.f32 %v6728_v18, %v6684_v11  ;;  %v6729_v20 = vpop.f32.mrb[74].mxu0 }
0x15ba   :  { %v6730_v0 = vpop.f32.mrb[75].mxu0 }
0x15bb   :  { %v6731_v22 = vadd.f32 %v6730_v0, %v6729_v20 }
0x15bd   :  { %v5526_v23 = vadd.f32 %v6731_v22, %v6687_v51  ;;  %v6732_v25 = vpop.f32.mrb[76].mxu0 }
0x15be   :  { %v6733_v26 = vpop.f32.mrb[77].mxu0 }
0x15bf   :  { %v6734_v27 = vadd.f32 %v6733_v26, %v6732_v25 }
0x15c1   :  { %v5531_v53 = vadd.f32 %v6734_v27, %v6690_v62 }
0x15d1   :  { %v6767_v7 = vpop.f32.mrb[78].mxu0 }
0x15d2   :  { %v6768_v30 = vpop.f32.mrb[79].mxu0 }
0x15d3   :  { %v6769_v28 = vadd.f32 %v6768_v30, %v6767_v7 }
0x15d5   :  { %v5758_v2 = vadd.f32 %v6769_v28, %v5516_v14  ;;  %v6770_v15 = vpop.f32.mrb[80].mxu0 }
0x15d6   :  { %v6771_v32 = vpop.f32.mrb[81].mxu0 }
0x15d7   :  { %v5769_v55 = vadd.f32 %v6310_v29, %v5758_v2  ;;  %v6772_v12 = vadd.f32 %v6771_v32, %v6770_v15 }
0x15d9   :  { %5773 = vst.msk [vmem:[%s9533_s13] sm:$0xff] %vm490_vm1, %v5769_v55  ;;  %v5759_v33 = vadd.f32 %v6772_v12, %v5521_v19  ;;  %v6773_v35 = vpop.f32.mrb[82].mxu0 }
0x15da   :  { %v6774_v36 = vpop.f32.mrb[83].mxu0 }
0x15db   :  { %v5770_v41 = vadd.f32 %v6310_v29, %v5759_v33  ;;  %v6775_v59 = vadd.f32 %v6774_v36, %v6773_v35 }
0x15dd   :  { %5774 = vst.msk [vmem:[%s9533_s13 + $0x8] sm:$0xff] %vm490_vm1, %v5770_v41  ;;  %v5760_v8 = vadd.f32 %v6775_v59, %v5526_v23  ;;  %v6776_v31 = vpop.f32.mrb[84].mxu0 }
0x15de   :  { %v6777_v34 = vpop.f32.mrb[85].mxu0 }
0x15df   :  { %v5771_v37 = vadd.f32 %v6310_v29, %v5760_v8  ;;  %v6778_v38 = vadd.f32 %v6777_v34, %v6776_v31 }
0x15e1   :  { %5775 = vst.msk [vmem:[%s9533_s13 + $0x10] sm:$0xff] %vm490_vm1, %v5771_v37  ;;  %v5761_v1 = vadd.f32 %v6778_v38, %v5531_v53 }
0x15e3   :  { %v5772_v13 = vadd.f32 %v6310_v29, %v5761_v1 }
0x15e5   :  { %5776 = vst.msk [vmem:[%s9533_s13 + $0x18] sm:$0xff] %vm490_vm1, %v5772_v13 }
0x15e6   :  { %8255 = dma.done.wait [#allocation4], 512  }
0x15e7   :  { %8256 = vsyncadd [#allocation4], 4294966784 }
0x15e8   :  { %8257 = dma.done.wait [#allocation25], 32  }
0x15e9   :  { %8258 = vsyncadd [#allocation25], 4294967264 }
0x15ea   :  { %5840 = vsyncpa [#allocation3], 1 }
0x15eb   :  { %5841 = vsyncpa [#allocation6], 1 }
0x15ec   :  { %5842 = vsyncpa [#allocation9], 1 }
0x15ed   :  { %5843 = vsyncpa [#allocation12], 1 }
0x15ee   :  { %5844 = vsyncpa [#allocation15], 1 }
0x15ef   :  { %5845 = vsyncpa [#allocation18], 1 }
0x15f0   :  { %5846 = vsyncpa [#allocation21], 1 }
0x15f1   :  { %5847 = vsyncpa [#allocation4], 1 }
0x15f2   :  { %5848 = vsyncpa [#allocation25], 1 }

</bundles_post_ra>
